<compile_context>
chip_gen: v7x
topology: tpu7x:2x2x1
jax: 0.10.0
libtpu: 0.0.40
codegen_flags: <defaults>
</compile_context>

<pallas_src>
import functools

import jax
import jax.numpy as jnp
from jax import lax
from jax.experimental import pallas as pl
from jax.experimental.pallas import tpu as pltpu


def _dot3d(patches, w):
    # patches: (H, W, K) bf16, w: (K, C) bf16 -> (H, W, C) f32 (MXU, f32 acc)
    return lax.dot_general(
        patches, w, (((2,), (0,)), ((), ())), preferred_element_type=jnp.float32
    )


def residual_block_kernel(
    xt_ref,     # (1, H, W, 9*Cin) bf16   conv1 im2col patches (built by XLA)
    w1_ref,     # (9*Cin, Cout)    bf16   conv1 weights, BN1 scale folded in
    w2_ref,     # (9, Cout, Cout)  bf16   conv2 weights per tap, BN2 scale folded in
    wid_ref,    # (9*Cin, Cout)    bf16   zero except centre-tap rows = wd*sd
    b_ref,      # (2, Cout)        f32    rows = [b1, b2 + bd]
    out_ref,    # (1, H, W, Cout)  f32    output block (real channels, no padding)
    y1pad_ref,  # VMEM (H+2, W+2, Cout)  bf16   conv1 output with 1-px zero halo
):
    H = out_ref.shape[1]
    W = out_ref.shape[2]
    Cout = out_ref.shape[3]

    # ---- conv1 + BN1 + ReLU: ONE im2col matmul (H,W,9*Cin) @ (9*Cin,Cout) ----
    y1 = _dot3d(xt_ref[0], w1_ref[...])
    y1 = jnp.maximum(y1 + b_ref[0], 0.0)            # f32 epilogue

    # ---- stage bf16 y1 with a 1-px zero halo for conv2's taps ----
    # Border is re-zeroed every step (megacore-safe under the "parallel" batch
    # grid); at Cout=8 this is ~1 KB of stores, negligible.
    zrow = jnp.zeros((1, W + 2, Cout), jnp.bfloat16)
    zcol = jnp.zeros((H + 2, 1, Cout), jnp.bfloat16)
    y1pad_ref[pl.ds(0, 1), :, :] = zrow
    y1pad_ref[pl.ds(H + 1, 1), :, :] = zrow
    y1pad_ref[:, pl.ds(0, 1), :] = zcol
    y1pad_ref[:, pl.ds(W + 1, 1), :] = zcol
    y1pad_ref[pl.ds(1, H), pl.ds(1, W), :] = y1.astype(jnp.bfloat16)  # single cast

    # ---- conv2 + BN2 + identity(1x1 conv + BN) + final ReLU ----
    # No im2col scratch: 1 dot for the identity branch (reuses the conv1 patch
    # block with a centre-tap-only weight) + 9 accumulating dots over y1 taps.
    acc = _dot3d(xt_ref[0], wid_ref[...])            # f32 accumulator value
    for kh in range(3):
        for kw in range(3):
            t = kh * 3 + kw
            acc += _dot3d(
                y1pad_ref[pl.ds(kh, H), pl.ds(kw, W), :], w2_ref[t]
            )
    out_ref[0] = jnp.maximum(acc + b_ref[1], 0.0)    # dense store, real Cout only


@functools.partial(jax.jit, static_argnames=("stride",))
def residual_block(x_nhwc, w1, w2, wd, s1, b1, s2, b2, sd, bd, *, stride=1):
    """x_nhwc: (N, H, W, Cin) f32. Returns (N, H, W, Cout) f32."""
    assert stride == 1  # TODO(synk): stride>1 not supported in-kernel
    N, H, W, Cin = x_nhwc.shape
    Cout = w1.shape[-1]

    # ---- fold BN scales into conv weights; six vectors -> one (2, Cout) bias ----
    w1f = (w1 * s1).reshape(9 * Cin, Cout)                    # (9*Cin, Cout)
    w2f = (w2 * s2).reshape(9, Cout, Cout)                    # (9, Cout, Cout)
    wdf = (wd * sd).reshape(Cin, Cout)                        # (Cin, Cout)
    # identity branch expressed over the same 9*Cin patch axis (centre tap only)
    wid = jnp.zeros((9 * Cin, Cout), jnp.float32).at[4 * Cin:5 * Cin, :].set(wdf)
    bias = jnp.stack([b1, b2 + bd], axis=0)                   # (2, Cout) f32

    # ---- conv1 im2col built once by XLA (hoisted out of the kernel) ----
    # Bytes grow 9x over x but are tiny at Cin=4; removes per-step masked stores.
    x_pad = jnp.pad(x_nhwc, ((0, 0), (1, 1), (1, 1), (0, 0)))
    taps = [x_pad[:, kh:kh + H, kw:kw + W, :] for kh in range(3) for kw in range(3)]
    x_taps = jnp.concatenate(taps, axis=-1).astype(jnp.bfloat16)   # (N,H,W,9*Cin)

    w1b = w1f.astype(jnp.bfloat16)
    w2b = w2f.astype(jnp.bfloat16)
    widb = wid.astype(jnp.bfloat16)

    grid_spec = pltpu.PrefetchScalarGridSpec(
        num_scalar_prefetch=0,
        grid=(N,),
        in_specs=[
            pl.BlockSpec((1, H, W, 9 * Cin), lambda n: (n, 0, 0, 0)),
            pl.BlockSpec((9 * Cin, Cout), lambda n: (0, 0)),
            pl.BlockSpec((9, Cout, Cout), lambda n: (0, 0, 0)),
            pl.BlockSpec((9 * Cin, Cout), lambda n: (0, 0)),
            pl.BlockSpec((2, Cout), lambda n: (0, 0)),
        ],
        out_specs=pl.BlockSpec((1, H, W, Cout), lambda n: (n, 0, 0, 0)),
        scratch_shapes=[
            pltpu.VMEM((H + 2, W + 2, Cout), jnp.bfloat16),   # y1 + halo, bf16
        ],
    )

    out = pl.pallas_call(
        residual_block_kernel,
        out_shape=jax.ShapeDtypeStruct((N, H, W, Cout), jnp.float32),
        grid_spec=grid_spec,
        compiler_params=pltpu.CompilerParams(dimension_semantics=("parallel",)),
    )(x_taps, w1b, w2b, widb, bias)
    return out                                                # no padding to strip


# --------------------- pure-JAX f32 reference (sanity check) ---------------------
def _conv_ref(x, w, padding):
    return lax.conv_general_dilated(
        x, w, window_strides=(1, 1),
        padding=((padding, padding), (padding, padding)),
        dimension_numbers=("NHWC", "HWIO", "NHWC"),
    )


def residual_block_ref(x, w1, w2, wd, s1, b1, s2, b2, sd, bd):
    y1 = jnp.maximum(_conv_ref(x, w1, 1) * s1 + b1, 0.0)
    y2 = _conv_ref(y1, w2, 1) * s2 + b2
    idn = _conv_ref(x, wd, 0) * sd + bd
    return jnp.maximum(y2 + idn, 0.0)


def _fold_bn(gamma, beta, mean, var, eps=1e-5):
    scale = gamma / jnp.sqrt(var + eps)
    bias = beta - mean * scale
    return scale, bias


if __name__ == "__main__":
    key = jax.random.PRNGKey(0)
    ks = jax.random.split(key, 16)

    N, Cin, Cout, H, W = 2, 4, 8, 16, 16   # stride=1, Cin != Cout -> downsample active

    # input (conceptually NCHW like PyTorch, transposed to NHWC for the kernel)
    x_nchw = jax.random.normal(ks[0], (N, Cin, H, W), jnp.float32)
    x_nhwc = jnp.transpose(x_nchw, (0, 2, 3, 1))

    # conv weights (HWIO)
    w1 = 0.1 * jax.random.normal(ks[1], (3, 3, Cin, Cout), jnp.float32)
    w2 = 0.1 * jax.random.normal(ks[2], (3, 3, Cout, Cout), jnp.float32)
    wd = 0.1 * jax.random.normal(ks[3], (1, 1, Cin, Cout), jnp.float32)

    # BatchNorm params (deterministic), folded to scale/bias (inference mode)
    def bn_params(k):
        k1, k2, k3, k4 = jax.random.split(k, 4)
        gamma = 1.0 + 0.1 * jax.random.normal(k1, (Cout,), jnp.float32)
        beta = 0.1 * jax.random.normal(k2, (Cout,), jnp.float32)
        mean = 0.1 * jax.random.normal(k3, (Cout,), jnp.float32)
        var = jax.random.uniform(k4, (Cout,), jnp.float32, 0.5, 1.5)
        return _fold_bn(gamma, beta, mean, var)

    s1, b1 = bn_params(ks[4])
    s2, b2 = bn_params(ks[5])
    sd, bd = bn_params(ks[6])

    out = residual_block(x_nhwc, w1, w2, wd, s1, b1, s2, b2, sd, bd)
    out = jax.block_until_ready(out)

    ref = residual_block_ref(x_nhwc, w1, w2, wd, s1, b1, s2, b2, sd, bd)
    assert out.shape == (N, H, W, Cout)
    max_err = float(jnp.max(jnp.abs(out - ref)))
    # bf16 MXU operands with f32 accumulation -> loosened tolerance vs f32 reference
    assert jnp.allclose(out, ref, rtol=5e-2, atol=5e-2), max_err

    print("KERNEL_OK")
</pallas_src>

<mosaic_0001>
module attributes {stable_mosaic.version = 11 : i64} {
  func.func @residual_block_kernel(%arg0: i32, %arg1: memref<1x16x16x36xbf16, #tpu.memory_space<vmem>>, %arg2: memref<36x8xbf16, #tpu.memory_space<vmem>>, %arg3: memref<9x8x8xbf16, #tpu.memory_space<vmem>>, %arg4: memref<36x8xbf16, #tpu.memory_space<vmem>>, %arg5: memref<2x8xf32, #tpu.memory_space<vmem>>, %arg6: memref<1x16x16x8xf32, #tpu.memory_space<vmem>>, %arg7: memref<18x18x8xbf16, #tpu.memory_space<vmem>>) attributes {dimension_semantics = [#tpu.dimension_semantics<parallel>], iteration_bounds = array<i64: 2>, scalar_prefetch = 0 : i64, scratch_operands = 1 : i64, tpu.core_type = #tpu.core_type<tc>, window_params = [{transform_indices = @transform_0, window_bounds = array<i64: 1, 16, 16, 36>}, {pipeline_mode = #tpu.pipeline_mode<synchronous>, transform_indices = @transform_1, window_bounds = array<i64: 36, 8>}, {pipeline_mode = #tpu.pipeline_mode<synchronous>, transform_indices = @transform_2, window_bounds = array<i64: 9, 8, 8>}, {pipeline_mode = #tpu.pipeline_mode<synchronous>, transform_indices = @transform_3, window_bounds = array<i64: 36, 8>}, {pipeline_mode = #tpu.pipeline_mode<synchronous>, transform_indices = @transform_4, window_bounds = array<i64: 2, 8>}, {transform_indices = @transform_5, window_bounds = array<i64: 1, 16, 16, 8>}]} {
    %c0 = arith.constant 0 : index
    %c0_0 = arith.constant 0 : index
    %c0_1 = arith.constant 0 : index
    %c0_2 = arith.constant 0 : index
    %0 = vector.load %arg1[%c0, %c0_0, %c0_1, %c0_2] : memref<1x16x16x36xbf16, #tpu.memory_space<vmem>>, vector<1x16x16x36xbf16>
    %1 = vector.shape_cast %0 : vector<1x16x16x36xbf16> to vector<16x16x36xbf16>
    %c0_3 = arith.constant 0 : index
    %c0_4 = arith.constant 0 : index
    %2 = vector.load %arg2[%c0_3, %c0_4] : memref<36x8xbf16, #tpu.memory_space<vmem>>, vector<36x8xbf16>
    %cst = arith.constant dense<0.000000e+00> : vector<16x16x8xf32>
    %3 = tpu.matmul %1, %2, %cst {dimension_numbers = #tpu.dot_dimension_numbers<[2], [0], [0, 1], [1], [0, 0, 0, 1, 1, 1], [], []>} : vector<16x16x36xbf16>, vector<36x8xbf16>, vector<16x16x8xf32> -> vector<16x16x8xf32>
    %c0_5 = arith.constant 0 : index
    %c0_6 = arith.constant 0 : index
    %4 = vector.load %arg5[%c0_5, %c0_6] : memref<2x8xf32, #tpu.memory_space<vmem>>, vector<1x8xf32>
    %5 = vector.shape_cast %4 : vector<1x8xf32> to vector<8xf32>
    %6 = vector.shape_cast %5 : vector<8xf32> to vector<1x1x8xf32>
    %7 = vector.broadcast %6 : vector<1x1x8xf32> to vector<16x16x8xf32>
    %8 = arith.addf %3, %7 : vector<16x16x8xf32>
    %cst_7 = arith.constant 0.000000e+00 : f32
    %9 = vector.broadcast %cst_7 : f32 to vector<16x16x8xf32>
    %10 = arith.maximumf %8, %9 : vector<16x16x8xf32>
    %cst_8 = arith.constant 0.000000e+00 : bf16
    %11 = vector.broadcast %cst_8 : bf16 to vector<1x18x8xbf16>
    %cst_9 = arith.constant 0.000000e+00 : bf16
    %12 = vector.broadcast %cst_9 : bf16 to vector<18x1x8xbf16>
    %c0_10 = arith.constant 0 : index
    %c0_11 = arith.constant 0 : index
    %c0_12 = arith.constant 0 : index
    %13 = vector.load %arg7[%c0_10, %c0_11, %c0_12] : memref<18x18x8xbf16, #tpu.memory_space<vmem>>, vector<1x18x8xbf16>
    tpu.vector_store %arg7[%c0_10, %c0_11, %c0_12], %11 {strides = array<i32>} : memref<18x18x8xbf16, #tpu.memory_space<vmem>>, vector<1x18x8xbf16>,
    %c17 = arith.constant 17 : index
    %c0_13 = arith.constant 0 : index
    %c0_14 = arith.constant 0 : index
    %14 = vector.load %arg7[%c17, %c0_13, %c0_14] : memref<18x18x8xbf16, #tpu.memory_space<vmem>>, vector<1x18x8xbf16>
    tpu.vector_store %arg7[%c17, %c0_13, %c0_14], %11 {strides = array<i32>} : memref<18x18x8xbf16, #tpu.memory_space<vmem>>, vector<1x18x8xbf16>,
    %c0_15 = arith.constant 0 : index
    %c0_16 = arith.constant 0 : index
    %c0_17 = arith.constant 0 : index
    %15 = vector.load %arg7[%c0_15, %c0_16, %c0_17] : memref<18x18x8xbf16, #tpu.memory_space<vmem>>, vector<18x1x8xbf16>
    tpu.vector_store %arg7[%c0_15, %c0_16, %c0_17], %12 {strides = array<i32>} : memref<18x18x8xbf16, #tpu.memory_space<vmem>>, vector<18x1x8xbf16>,
    %c0_18 = arith.constant 0 : index
    %c17_19 = arith.constant 17 : index
    %c0_20 = arith.constant 0 : index
    %16 = vector.load %arg7[%c0_18, %c17_19, %c0_20] : memref<18x18x8xbf16, #tpu.memory_space<vmem>>, vector<18x1x8xbf16>
    tpu.vector_store %arg7[%c0_18, %c17_19, %c0_20], %12 {strides = array<i32>} : memref<18x18x8xbf16, #tpu.memory_space<vmem>>, vector<18x1x8xbf16>,
    %17 = arith.truncf %10 : vector<16x16x8xf32> to vector<16x16x8xbf16>
    %c1 = arith.constant 1 : index
    %c1_21 = arith.constant 1 : index
    %c0_22 = arith.constant 0 : index
    %18 = vector.load %arg7[%c1, %c1_21, %c0_22] : memref<18x18x8xbf16, #tpu.memory_space<vmem>>, vector<16x16x8xbf16>
    tpu.vector_store %arg7[%c1, %c1_21, %c0_22], %17 {strides = array<i32>} : memref<18x18x8xbf16, #tpu.memory_space<vmem>>, vector<16x16x8xbf16>,
    %c0_23 = arith.constant 0 : index
    %c0_24 = arith.constant 0 : index
    %c0_25 = arith.constant 0 : index
    %c0_26 = arith.constant 0 : index
    %19 = vector.load %arg1[%c0_23, %c0_24, %c0_25, %c0_26] : memref<1x16x16x36xbf16, #tpu.memory_space<vmem>>, vector<1x16x16x36xbf16>
    %20 = vector.shape_cast %19 : vector<1x16x16x36xbf16> to vector<16x16x36xbf16>
    %c0_27 = arith.constant 0 : index
    %c0_28 = arith.constant 0 : index
    %21 = vector.load %arg4[%c0_27, %c0_28] : memref<36x8xbf16, #tpu.memory_space<vmem>>, vector<36x8xbf16>
    %cst_29 = arith.constant dense<0.000000e+00> : vector<16x16x8xf32>
    %22 = tpu.matmul %20, %21, %cst_29 {dimension_numbers = #tpu.dot_dimension_numbers<[2], [0], [0, 1], [1], [0, 0, 0, 1, 1, 1], [], []>} : vector<16x16x36xbf16>, vector<36x8xbf16>, vector<16x16x8xf32> -> vector<16x16x8xf32>
    %c0_30 = arith.constant 0 : index
    %c0_31 = arith.constant 0 : index
    %c0_32 = arith.constant 0 : index
    %23 = vector.load %arg7[%c0_30, %c0_31, %c0_32] : memref<18x18x8xbf16, #tpu.memory_space<vmem>>, vector<16x16x8xbf16>
    %c0_33 = arith.constant 0 : index
    %c0_34 = arith.constant 0 : index
    %c0_35 = arith.constant 0 : index
    %24 = vector.load %arg3[%c0_33, %c0_34, %c0_35] : memref<9x8x8xbf16, #tpu.memory_space<vmem>>, vector<1x8x8xbf16>
    %25 = vector.shape_cast %24 : vector<1x8x8xbf16> to vector<8x8xbf16>
    %cst_36 = arith.constant dense<0.000000e+00> : vector<16x16x8xf32>
    %26 = tpu.matmul %23, %25, %cst_36 {dimension_numbers = #tpu.dot_dimension_numbers<[2], [0], [0, 1], [1], [0, 0, 0, 1, 1, 1], [], []>} : vector<16x16x8xbf16>, vector<8x8xbf16>, vector<16x16x8xf32> -> vector<16x16x8xf32>
    %27 = arith.addf %22, %26 : vector<16x16x8xf32>
    %c0_37 = arith.constant 0 : index
    %c1_38 = arith.constant 1 : index
    %c0_39 = arith.constant 0 : index
    %28 = vector.load %arg7[%c0_37, %c1_38, %c0_39] : memref<18x18x8xbf16, #tpu.memory_space<vmem>>, vector<16x16x8xbf16>
    %c1_40 = arith.constant 1 : index
    %c0_41 = arith.constant 0 : index
    %c0_42 = arith.constant 0 : index
    %29 = vector.load %arg3[%c1_40, %c0_41, %c0_42] : memref<9x8x8xbf16, #tpu.memory_space<vmem>>, vector<1x8x8xbf16>
    %30 = vector.shape_cast %29 : vector<1x8x8xbf16> to vector<8x8xbf16>
    %cst_43 = arith.constant dense<0.000000e+00> : vector<16x16x8xf32>
    %31 = tpu.matmul %28, %30, %cst_43 {dimension_numbers = #tpu.dot_dimension_numbers<[2], [0], [0, 1], [1], [0, 0, 0, 1, 1, 1], [], []>} : vector<16x16x8xbf16>, vector<8x8xbf16>, vector<16x16x8xf32> -> vector<16x16x8xf32>
    %32 = arith.addf %27, %31 : vector<16x16x8xf32>
    %c0_44 = arith.constant 0 : index
    %c2 = arith.constant 2 : index
    %c0_45 = arith.constant 0 : index
    %33 = vector.load %arg7[%c0_44, %c2, %c0_45] : memref<18x18x8xbf16, #tpu.memory_space<vmem>>, vector<16x16x8xbf16>
    %c2_46 = arith.constant 2 : index
    %c0_47 = arith.constant 0 : index
    %c0_48 = arith.constant 0 : index
    %34 = vector.load %arg3[%c2_46, %c0_47, %c0_48] : memref<9x8x8xbf16, #tpu.memory_space<vmem>>, vector<1x8x8xbf16>
    %35 = vector.shape_cast %34 : vector<1x8x8xbf16> to vector<8x8xbf16>
    %cst_49 = arith.constant dense<0.000000e+00> : vector<16x16x8xf32>
    %36 = tpu.matmul %33, %35, %cst_49 {dimension_numbers = #tpu.dot_dimension_numbers<[2], [0], [0, 1], [1], [0, 0, 0, 1, 1, 1], [], []>} : vector<16x16x8xbf16>, vector<8x8xbf16>, vector<16x16x8xf32> -> vector<16x16x8xf32>
    %37 = arith.addf %32, %36 : vector<16x16x8xf32>
    %c1_50 = arith.constant 1 : index
    %c0_51 = arith.constant 0 : index
    %c0_52 = arith.constant 0 : index
    %38 = vector.load %arg7[%c1_50, %c0_51, %c0_52] : memref<18x18x8xbf16, #tpu.memory_space<vmem>>, vector<16x16x8xbf16>
    %c3 = arith.constant 3 : index
    %c0_53 = arith.constant 0 : index
    %c0_54 = arith.constant 0 : index
    %39 = vector.load %arg3[%c3, %c0_53, %c0_54] : memref<9x8x8xbf16, #tpu.memory_space<vmem>>, vector<1x8x8xbf16>
    %40 = vector.shape_cast %39 : vector<1x8x8xbf16> to vector<8x8xbf16>
    %cst_55 = arith.constant dense<0.000000e+00> : vector<16x16x8xf32>
    %41 = tpu.matmul %38, %40, %cst_55 {dimension_numbers = #tpu.dot_dimension_numbers<[2], [0], [0, 1], [1], [0, 0, 0, 1, 1, 1], [], []>} : vector<16x16x8xbf16>, vector<8x8xbf16>, vector<16x16x8xf32> -> vector<16x16x8xf32>
    %42 = arith.addf %37, %41 : vector<16x16x8xf32>
    %c1_56 = arith.constant 1 : index
    %c1_57 = arith.constant 1 : index
    %c0_58 = arith.constant 0 : index
    %43 = vector.load %arg7[%c1_56, %c1_57, %c0_58] : memref<18x18x8xbf16, #tpu.memory_space<vmem>>, vector<16x16x8xbf16>
    %c4 = arith.constant 4 : index
    %c0_59 = arith.constant 0 : index
    %c0_60 = arith.constant 0 : index
    %44 = vector.load %arg3[%c4, %c0_59, %c0_60] : memref<9x8x8xbf16, #tpu.memory_space<vmem>>, vector<1x8x8xbf16>
    %45 = vector.shape_cast %44 : vector<1x8x8xbf16> to vector<8x8xbf16>
    %cst_61 = arith.constant dense<0.000000e+00> : vector<16x16x8xf32>
    %46 = tpu.matmul %43, %45, %cst_61 {dimension_numbers = #tpu.dot_dimension_numbers<[2], [0], [0, 1], [1], [0, 0, 0, 1, 1, 1], [], []>} : vector<16x16x8xbf16>, vector<8x8xbf16>, vector<16x16x8xf32> -> vector<16x16x8xf32>
    %47 = arith.addf %42, %46 : vector<16x16x8xf32>
    %c1_62 = arith.constant 1 : index
    %c2_63 = arith.constant 2 : index
    %c0_64 = arith.constant 0 : index
    %48 = vector.load %arg7[%c1_62, %c2_63, %c0_64] : memref<18x18x8xbf16, #tpu.memory_space<vmem>>, vector<16x16x8xbf16>
    %c5 = arith.constant 5 : index
    %c0_65 = arith.constant 0 : index
    %c0_66 = arith.constant 0 : index
    %49 = vector.load %arg3[%c5, %c0_65, %c0_66] : memref<9x8x8xbf16, #tpu.memory_space<vmem>>, vector<1x8x8xbf16>
    %50 = vector.shape_cast %49 : vector<1x8x8xbf16> to vector<8x8xbf16>
    %cst_67 = arith.constant dense<0.000000e+00> : vector<16x16x8xf32>
    %51 = tpu.matmul %48, %50, %cst_67 {dimension_numbers = #tpu.dot_dimension_numbers<[2], [0], [0, 1], [1], [0, 0, 0, 1, 1, 1], [], []>} : vector<16x16x8xbf16>, vector<8x8xbf16>, vector<16x16x8xf32> -> vector<16x16x8xf32>
    %52 = arith.addf %47, %51 : vector<16x16x8xf32>
    %c2_68 = arith.constant 2 : index
    %c0_69 = arith.constant 0 : index
    %c0_70 = arith.constant 0 : index
    %53 = vector.load %arg7[%c2_68, %c0_69, %c0_70] : memref<18x18x8xbf16, #tpu.memory_space<vmem>>, vector<16x16x8xbf16>
    %c6 = arith.constant 6 : index
    %c0_71 = arith.constant 0 : index
    %c0_72 = arith.constant 0 : index
    %54 = vector.load %arg3[%c6, %c0_71, %c0_72] : memref<9x8x8xbf16, #tpu.memory_space<vmem>>, vector<1x8x8xbf16>
    %55 = vector.shape_cast %54 : vector<1x8x8xbf16> to vector<8x8xbf16>
    %cst_73 = arith.constant dense<0.000000e+00> : vector<16x16x8xf32>
    %56 = tpu.matmul %53, %55, %cst_73 {dimension_numbers = #tpu.dot_dimension_numbers<[2], [0], [0, 1], [1], [0, 0, 0, 1, 1, 1], [], []>} : vector<16x16x8xbf16>, vector<8x8xbf16>, vector<16x16x8xf32> -> vector<16x16x8xf32>
    %57 = arith.addf %52, %56 : vector<16x16x8xf32>
    %c2_74 = arith.constant 2 : index
    %c1_75 = arith.constant 1 : index
    %c0_76 = arith.constant 0 : index
    %58 = vector.load %arg7[%c2_74, %c1_75, %c0_76] : memref<18x18x8xbf16, #tpu.memory_space<vmem>>, vector<16x16x8xbf16>
    %c7 = arith.constant 7 : index
    %c0_77 = arith.constant 0 : index
    %c0_78 = arith.constant 0 : index
    %59 = vector.load %arg3[%c7, %c0_77, %c0_78] : memref<9x8x8xbf16, #tpu.memory_space<vmem>>, vector<1x8x8xbf16>
    %60 = vector.shape_cast %59 : vector<1x8x8xbf16> to vector<8x8xbf16>
    %cst_79 = arith.constant dense<0.000000e+00> : vector<16x16x8xf32>
    %61 = tpu.matmul %58, %60, %cst_79 {dimension_numbers = #tpu.dot_dimension_numbers<[2], [0], [0, 1], [1], [0, 0, 0, 1, 1, 1], [], []>} : vector<16x16x8xbf16>, vector<8x8xbf16>, vector<16x16x8xf32> -> vector<16x16x8xf32>
    %62 = arith.addf %57, %61 : vector<16x16x8xf32>
    %c2_80 = arith.constant 2 : index
    %c2_81 = arith.constant 2 : index
    %c0_82 = arith.constant 0 : index
    %63 = vector.load %arg7[%c2_80, %c2_81, %c0_82] : memref<18x18x8xbf16, #tpu.memory_space<vmem>>, vector<16x16x8xbf16>
    %c8 = arith.constant 8 : index
    %c0_83 = arith.constant 0 : index
    %c0_84 = arith.constant 0 : index
    %64 = vector.load %arg3[%c8, %c0_83, %c0_84] : memref<9x8x8xbf16, #tpu.memory_space<vmem>>, vector<1x8x8xbf16>
    %65 = vector.shape_cast %64 : vector<1x8x8xbf16> to vector<8x8xbf16>
    %cst_85 = arith.constant dense<0.000000e+00> : vector<16x16x8xf32>
    %66 = tpu.matmul %63, %65, %cst_85 {dimension_numbers = #tpu.dot_dimension_numbers<[2], [0], [0, 1], [1], [0, 0, 0, 1, 1, 1], [], []>} : vector<16x16x8xbf16>, vector<8x8xbf16>, vector<16x16x8xf32> -> vector<16x16x8xf32>
    %67 = arith.addf %62, %66 : vector<16x16x8xf32>
    %c1_86 = arith.constant 1 : index
    %c0_87 = arith.constant 0 : index
    %68 = vector.load %arg5[%c1_86, %c0_87] : memref<2x8xf32, #tpu.memory_space<vmem>>, vector<1x8xf32>
    %69 = vector.shape_cast %68 : vector<1x8xf32> to vector<8xf32>
    %70 = vector.shape_cast %69 : vector<8xf32> to vector<1x1x8xf32>
    %71 = vector.broadcast %70 : vector<1x1x8xf32> to vector<16x16x8xf32>
    %72 = arith.addf %67, %71 : vector<16x16x8xf32>
    %cst_88 = arith.constant 0.000000e+00 : f32
    %73 = vector.broadcast %cst_88 : f32 to vector<16x16x8xf32>
    %74 = arith.maximumf %72, %73 : vector<16x16x8xf32>
    %c0_89 = arith.constant 0 : index
    %c0_90 = arith.constant 0 : index
    %c0_91 = arith.constant 0 : index
    %c0_92 = arith.constant 0 : index
    %75 = vector.load %arg6[%c0_89, %c0_90, %c0_91, %c0_92] : memref<1x16x16x8xf32, #tpu.memory_space<vmem>>, vector<1x16x16x8xf32>
    %76 = vector.shape_cast %75 : vector<1x16x16x8xf32> to vector<16x16x8xf32>
    %77 = vector.shape_cast %74 : vector<16x16x8xf32> to vector<1x16x16x8xf32>
    tpu.vector_store %arg6[%c0_89, %c0_90, %c0_91, %c0_92], %77 {strides = array<i32>} : memref<1x16x16x8xf32, #tpu.memory_space<vmem>>, vector<1x16x16x8xf32>,
    return
  }
  func.func @transform_0(%arg0: i32) -> (i32, i32, i32, i32) {
    %c0_i32 = arith.constant 0 : i32
    %c0_i32_0 = arith.constant 0 : i32
    %c0_i32_1 = arith.constant 0 : i32
    %c0_i32_2 = arith.constant 0 : i32
    return %arg0, %c0_i32, %c0_i32_0, %c0_i32_1 : i32, i32, i32, i32
  }
  func.func @transform_1(%arg0: i32) -> (i32, i32) {
    %c0_i32 = arith.constant 0 : i32
    %c0_i32_0 = arith.constant 0 : i32
    %c0_i32_1 = arith.constant 0 : i32
    return %c0_i32, %c0_i32_0 : i32, i32
  }
  func.func @transform_2(%arg0: i32) -> (i32, i32, i32) {
    %c0_i32 = arith.constant 0 : i32
    %c0_i32_0 = arith.constant 0 : i32
    %c0_i32_1 = arith.constant 0 : i32
    %c0_i32_2 = arith.constant 0 : i32
    return %c0_i32, %c0_i32_0, %c0_i32_1 : i32, i32, i32
  }
  func.func @transform_3(%arg0: i32) -> (i32, i32) {
    %c0_i32 = arith.constant 0 : i32
    %c0_i32_0 = arith.constant 0 : i32
    %c0_i32_1 = arith.constant 0 : i32
    return %c0_i32, %c0_i32_0 : i32, i32
  }
  func.func @transform_4(%arg0: i32) -> (i32, i32) {
    %c0_i32 = arith.constant 0 : i32
    %c0_i32_0 = arith.constant 0 : i32
    %c0_i32_1 = arith.constant 0 : i32
    return %c0_i32, %c0_i32_0 : i32, i32
  }
  func.func @transform_5(%arg0: i32) -> (i32, i32, i32, i32) {
    %c0_i32 = arith.constant 0 : i32
    %c0_i32_0 = arith.constant 0 : i32
    %c0_i32_1 = arith.constant 0 : i32
    %c0_i32_2 = arith.constant 0 : i32
    return %arg0, %c0_i32, %c0_i32_0, %c0_i32_1 : i32, i32, i32, i32
  }
}

</mosaic_0001>

<bundles_post_ra>
// kernel: residual_block.1
= control target key start
LH: loop header
LB: loop body
LE: loop exit
PB: predicated region body
PF: predicated region fallthrough
CT: control target
= control target key end

     0   :  { %s7927_s18 = smov 0   ;;  %s9795_s0 = inlined_call_operand.vmem [shape: bf16[2,16,16,36], index: 0, kind: input, shape index: {}]   ;;  %s9796_s1 = inlined_call_operand.vmem [shape: bf16[36,8], index: 1, kind: input, shape index: {}]   ;;  %s9797_s2 = inlined_call_operand.vmem [shape: bf16[9,8,8], index: 2, kind: input, shape index: {}]   ;;  %s9798_s3 = inlined_call_operand.vmem [shape: bf16[36,8], index: 3, kind: input, shape index: {}]   ;;  %s9799_s4 = inlined_call_operand.vmem [shape: f32[2,8], index: 4, kind: input, shape index: {}]   ;;  %s9800_s5 = inlined_call_operand.vmem [shape: f32[2,16,16,8], index: 5, kind: output, shape index: {}]  }
   0x1 LB: > { %s6402_s19 = sadd.s32 4294967295, %s7894_s18   ;;  %p6406_p0 = scmp.ge.s32.totalorder %s7894_s18, 1  ;;  %s7894_s18 = sphi %s7927_s18, %s15_s18  }
   0x2   : > { %p187_p1 = scmp.lt.s32.totalorder %s7894_s18, 3 }
   0x4   : > { %p188_p2 = pnand %p6406_p0, %p187_p1 }
   0x6   : > { %191 = sbr.rel (%p188_p2) target bundleno = 903 (0x387), region = 40 }
   0xd   : > { %v7779_v0 = vld [vmem:[%s9796_s1] sm:$0xff]   ;;  %v7780_v1 = vld [vmem:[%s9796_s1 + $0x8] sm:$0xff]   ;;  %p215_p3 = scmp.lt.s32.totalorder %s6402_s19, 1  ;;  %v7781_v2 = vld [vmem:[%s9796_s1 + $0x10] ss:$0 sps:$4 sm:$0x33]  }
   0xe   : > { %7086 = vmatprep.subr.bf16.mxu0 %v7779_v0  ;;  %vm412_vm0 = vcmask 1041408   ;;  %vm363_vm1 = vcmask 293888   ;;  %vm612_vm2 = vcmask 57344   ;;  %vm619_vm3 = vsmask.f32 256 }
   0xf   : > { %7087 = vmatpush3.bf16.msra.mxu0 %v7779_v0  ;;  %s9835_s19 = smov (!%p215_p3, %s6402_s19), 1  ;;  %v414_v4 = vsel %vm412_vm0, %v7781_v2, 0  ;;  %vm7988_vm4 = vmand %vm612_vm2, %vm619_vm3  ;;  %v627_v21 = vld [vmem:[#allocation2 + $0x18] sm:$0x1]  ;;  %vm675_vm5 = vsmask.f32 7938 }
  0x10   : > { %7088 = vmatprep.subr.bf16.mxu0 %v7780_v1  ;;  %s6861_s26 = sshll.u32 %s9835_s19, 7  ;;  %v628_v22 = vsel %vm7988_vm4, 0, %v627_v21  ;;  %vm7996_vm6 = vmand %vm612_vm2, %vm675_vm5  ;;  %v624_v24 = vld [vmem:[#allocation2 + $0xc] sm:$0x1]  ;;  %v683_v26 = vld [vmem:[#allocation2 + $0x20] sm:$0x1] }
  0x11   : > { %s7950_s29 = scalar_lea.vmem %s9795_s0, %s6861_s26  ;;  %629 = vst [vmem:[#allocation2 + $0x18] sm:$0x1] %v628_v22  ;;  %v625_v25 = vsel %vm7988_vm4, 0, %v624_v24  ;;  %v684_v27 = vsel %vm7996_vm6, 0, %v683_v26  ;;  %v680_v28 = vld [vmem:[#allocation2 + $0x14] sm:$0x1] }
  0x12   : > { %v7782_v3 = vld [vmem:[%s7950_s29] sm:$0xff]   ;;  %v7783_v5 = vld [vmem:[%s7950_s29 + $0x8] sm:$0xff]   ;;  %v7784_v6 = vld [vmem:[%s7950_s29 + $0x10] sm:$0xff]   ;;  %626 = vst [vmem:[#allocation2 + $0xc] sm:$0x1] %v625_v25  ;;  %v681_v29 = vsel %vm7996_vm6, 0, %v680_v28 }
  0x13   : > { %7089 = vmatpush3.bf16.msra.mxu0 %v7780_v1  ;;  %7092 = vmatprep.mubr.msk.bf16.mxu0 %vm363_vm1, %v7782_v3  ;;  %v7785_v7 = vld [vmem:[%s7950_s29 + $0x18] sm:$0xff]   ;;  %v7786_v8 = vld [vmem:[%s7950_s29 + $0x20] sm:$0xff]   ;;  %v7787_v9 = vld [vmem:[%s7950_s29 + $0x28] sm:$0xff]   ;;  %685 = vst [vmem:[#allocation2 + $0x20] sm:$0x1] %v684_v27  ;;  %vm609_vm7 = vcmask 60416  }
  0x14   : > { %7758 = vmatprep.subr.msk.bf16.mxu0 %vm412_vm0, %v7781_v2  ;;  %v7788_v10 = vld [vmem:[%s7950_s29 + $0x30] sm:$0xff]   ;;  %v7789_v11 = vld [vmem:[%s7950_s29 + $0x38] sm:$0xff]   ;;  %v7790_v12 = vld [vmem:[%s7950_s29 + $0x40] sm:$0xff]   ;;  %682 = vst [vmem:[#allocation2 + $0x14] sm:$0x1] %v681_v29  ;;  %v7896_v34 = vmov 0  }
  0x15   : > { %v7791_v13 = vld [vmem:[%s7950_s29 + $0x48] sm:$0xff]   ;;  %v7792_v14 = vld [vmem:[%s7950_s29 + $0x50] sm:$0xff]   ;;  %v7793_v15 = vld [vmem:[%s7950_s29 + $0x58] sm:$0xff]   ;;  %610 = vst.msk [vmem:[#allocation2] sm:$0xf] %vm609_vm7, %v7896_v34  ;;  %vm1463_vm8 = vcmask 1043456  }
  0x16   : > { %v7794_v16 = vld [vmem:[%s7950_s29 + $0x60] sm:$0xff]   ;;  %v7795_v17 = vld [vmem:[%s7950_s29 + $0x68] sm:$0xff]   ;;  %v7796_v18 = vld [vmem:[%s7950_s29 + $0x70] sm:$0xff]   ;;  %611 = vst.msk [vmem:[#allocation2 + $0x4] sm:$0xf] %vm609_vm7, %v7896_v34  ;;  %vm1414_vm9 = vcmask 64512  }
  0x17   : > { %7091 = vmatpush3.bf16.msra.mxu0 %v414_v4  ;;  %v7797_v19 = vld [vmem:[%s7950_s29 + $0x78] sm:$0xff]   ;;  %v633_v30 = vld [vmem:[#allocation2 + $0x30] sm:$0x1]  ;;  %v630_v32 = vld [vmem:[#allocation2 + $0x24] sm:$0x1]  ;;  %s6862_s16 = sshll.u32 %s9835_s19, 8 }
  0x18   : > { %v634_v31 = vsel %vm7988_vm4, 0, %v633_v30  ;;  %v631_v33 = vsel %vm7988_vm4, 0, %v630_v32  ;;  %613 = vst.msk [vmem:[#allocation2 + $0x8] sm:$0x1] %vm612_vm2, %v7896_v34  ;;  %617 = vst.msk [vmem:[#allocation2 + $0xd4] sm:$0x1] %vm612_vm2, %v7896_v34  ;;  %s9675_s21 = scalar_lea.vmem %s9800_s5, %s6862_s16 }
  0x19   : > { %635 = vst [vmem:[#allocation2 + $0x30] sm:$0x1] %v634_v31  ;;  %632 = vst [vmem:[#allocation2 + $0x24] sm:$0x1] %v631_v33  ;;  %v689_v35 = vld [vmem:[#allocation2 + $0x38] sm:$0x1] }
  0x1a   : > { %7093 = vmatmul.mubr.msk.bf16.vlgmr.msra.gmra.mrb[0].mxu0 %vm363_vm1, %v7783_v5  ;;  %615 = vst.msk [vmem:[#allocation2 + $0xcc] sm:$0xf] %vm609_vm7, %v7896_v34  ;;  %616 = vst.msk [vmem:[#allocation2 + $0xd0] sm:$0xf] %vm609_vm7, %v7896_v34  ;;  %v690_v36 = vsel %vm7996_vm6, 0, %v689_v35  ;;  %v8094_v33 = vld [vmem:[%s9798_s3] sm:$0xff]  }
  0x1b   : > { %7096 = vmatprep.mubr.msk.bf16.mxu0 %vm363_vm1, %v7784_v6  ;;  %v686_v37 = vld [vmem:[#allocation2 + $0x2c] sm:$0x1]  ;;  %691 = vst [vmem:[#allocation2 + $0x38] sm:$0x1] %v690_v36  ;;  %v639_v41 = vld [vmem:[#allocation2 + $0x48] sm:$0x1]  ;;  %vm8109_vm11 = vmand %vm609_vm7, %vm675_vm5 }
  0x1c   : > { %v687_v38 = vsel %vm7996_vm6, 0, %v686_v37  ;;  %v621_v39 = vld [vmem:[#allocation2] sm:$0x1]  ;;  %v640_v42 = vsel %vm7988_vm4, 0, %v639_v41  ;;  %v636_v43 = vld [vmem:[#allocation2 + $0x3c] sm:$0x1] }
  0x1d   : > { %688 = vst [vmem:[#allocation2 + $0x2c] sm:$0x1] %v687_v38  ;;  %v622_v40 = vsel %vm7988_vm4, 0, %v621_v39  ;;  %641 = vst [vmem:[#allocation2 + $0x48] sm:$0x1] %v640_v42  ;;  %v637_v44 = vsel %vm7988_vm4, 0, %v636_v43 }
  0x1e   : > { %623 = vst [vmem:[#allocation2] sm:$0x1] %v622_v40  ;;  %v695_v45 = vld [vmem:[#allocation2 + $0x50] sm:$0x1]  ;;  %638 = vst [vmem:[#allocation2 + $0x3c] sm:$0x1] %v637_v44 }
  0x1f   : > { %v696_v46 = vsel %vm7996_vm6, 0, %v695_v45  ;;  %v1333_v47 = vld [vmem:[%s9797_s2] sm:$0xf]  ;;  %v692_v48 = vld [vmem:[#allocation2 + $0x44] sm:$0x1]  ;;  %vm2731_vm2 = vcmask 1046532  }
  0x20   : > { %697 = vst [vmem:[#allocation2 + $0x50] sm:$0x1] %v696_v46  ;;  %7759 = vmatprep.subr.msk.bf16.mxu0 %vm1463_vm8, %v1333_v47  ;;  %v1465_v49 = vsel %vm1463_vm8, %v1333_v47, 0  ;;  %v693_v50 = vsel %vm7996_vm6, 0, %v692_v48  ;;  %v645_v52 = vld [vmem:[#allocation2 + $0x60] sm:$0x1] }
  0x21   : > { %7125 = vmatpush3.bf16.msra.mxu0 %v1465_v49  ;;  %694 = vst [vmem:[#allocation2 + $0x44] sm:$0x1] %v693_v50  ;;  %v646_v53 = vsel %vm7988_vm4, 0, %v645_v52  ;;  %v642_v54 = vld [vmem:[#allocation2 + $0x54] sm:$0x1] }
  0x22   : > { %7097 = vmatmul.mubr.msk.bf16.gmra.mrb[4].mxu0 %vm363_vm1, %v7785_v7  ;;  %647 = vst [vmem:[#allocation2 + $0x60] sm:$0x1] %v646_v53  ;;  %v643_v55 = vsel %vm7988_vm4, 0, %v642_v54  ;;  %v701_v56 = vld [vmem:[#allocation2 + $0x68] sm:$0x1]  ;;  %7158 = vmatprep.subr.bf16.mxu0 %v8094_v33 }
  0x23   : > { %7100 = vmatprep.mubr.msk.bf16.mxu0 %vm363_vm1, %v7786_v8  ;;  %644 = vst [vmem:[#allocation2 + $0x54] sm:$0x1] %v643_v55  ;;  %v702_v57 = vsel %vm7996_vm6, 0, %v701_v56  ;;  %v698_v58 = vld [vmem:[#allocation2 + $0x5c] sm:$0x1] }
  0x24   : > { %703 = vst [vmem:[#allocation2 + $0x68] sm:$0x1] %v702_v57  ;;  %v699_v59 = vsel %vm7996_vm6, 0, %v698_v58  ;;  %v651_v60 = vld [vmem:[#allocation2 + $0x78] sm:$0x1] }
  0x25   : > { %v7798_v51 = vld [vmem:[#allocation2] sm:$0xff]   ;;  %700 = vst [vmem:[#allocation2 + $0x5c] sm:$0x1] %v699_v59  ;;  %v652_v61 = vsel %vm7988_vm4, 0, %v651_v60  ;;  %v648_v62 = vld [vmem:[#allocation2 + $0x6c] sm:$0x1] }
  0x26   : > { %653 = vst [vmem:[#allocation2 + $0x78] sm:$0x1] %v652_v61  ;;  %v649_v63 = vsel %vm7988_vm4, 0, %v648_v62  ;;  %v707_v0 = vld [vmem:[#allocation2 + $0x80] sm:$0x1] }
  0x27   : > { %650 = vst [vmem:[#allocation2 + $0x6c] sm:$0x1] %v649_v63  ;;  %v708_v1 = vsel %vm7996_vm6, 0, %v707_v0  ;;  %v704_v2 = vld [vmem:[#allocation2 + $0x74] sm:$0x1] }
  0x28   : > { %709 = vst [vmem:[#allocation2 + $0x80] sm:$0x1] %v708_v1  ;;  %v705_v3 = vsel %vm7996_vm6, 0, %v704_v2  ;;  %v657_v4 = vld [vmem:[#allocation2 + $0x90] sm:$0x1] }
  0x29   : > { %706 = vst [vmem:[#allocation2 + $0x74] sm:$0x1] %v705_v3  ;;  %v658_v5 = vsel %vm7988_vm4, 0, %v657_v4  ;;  %v654_v6 = vld [vmem:[#allocation2 + $0x84] sm:$0x1] }
  0x2a   : > { %7101 = vmatmul.mubr.msk.bf16.gmra.mrb[8].mxu0 %vm363_vm1, %v7787_v9  ;;  %659 = vst [vmem:[#allocation2 + $0x90] sm:$0x1] %v658_v5  ;;  %v655_v7 = vsel %vm7988_vm4, 0, %v654_v6  ;;  %v713_v8 = vld [vmem:[#allocation2 + $0x98] sm:$0x1] }
  0x2b   : > { %7104 = vmatprep.mubr.msk.bf16.mxu0 %vm363_vm1, %v7788_v10  ;;  %656 = vst [vmem:[#allocation2 + $0x84] sm:$0x1] %v655_v7  ;;  %v714_v9 = vsel %vm7996_vm6, 0, %v713_v8  ;;  %v710_v10 = vld [vmem:[#allocation2 + $0x8c] sm:$0x1] }
  0x2c   : > { %715 = vst [vmem:[#allocation2 + $0x98] sm:$0x1] %v714_v9  ;;  %v716_v21 = vld [vmem:[#allocation2 + $0xa4] sm:$0x1]  ;;  %v669_v24 = vld [vmem:[#allocation2 + $0xc0] sm:$0x1] }
  0x2d   : > { %v717_v22 = vsel %vm7996_vm6, 0, %v716_v21  ;;  %v670_v25 = vsel %vm7988_vm4, 0, %v669_v24  ;;  %v666_v26 = vld [vmem:[#allocation2 + $0xb4] sm:$0x1]  ;;  %v725_v28 = vld [vmem:[#allocation2 + $0xc8] sm:$0x1] }
  0x2e   : > { %718 = vst [vmem:[#allocation2 + $0xa4] sm:$0x1] %v717_v22  ;;  %671 = vst [vmem:[#allocation2 + $0xc0] sm:$0x1] %v670_v25  ;;  %v667_v27 = vsel %vm7988_vm4, 0, %v666_v26  ;;  %v726_v29 = vsel %vm7996_vm6, 0, %v725_v28 }
  0x2f   : > { %668 = vst [vmem:[#allocation2 + $0xb4] sm:$0x1] %v667_v27  ;;  %v722_v30 = vld [vmem:[#allocation2 + $0xbc] sm:$0x1]  ;;  %v8085_v31 = vld [vmem:[%s9797_s2 + $0x10] sm:$0xf] }
  0x30   : > { %727 = vst [vmem:[#allocation2 + $0xc8] sm:$0x1] %v726_v29  ;;  %v723_v32 = vsel %vm7996_vm6, 0, %v722_v30  ;;  %v8100_v34 = vld [vmem:[%s9799_s4] ss:$0 sm:$0xff] }
  0x31   : > { %724 = vst [vmem:[#allocation2 + $0xbc] sm:$0x1] %v723_v32  ;;  %vm827_vm10 = vsmask.f32 4368  ;;  %v1159_v62 = vld [vmem:[#allocation2 + $0x18] sm:$0xf] }
  0x32   : > { %7105 = vmatmul.mubr.msk.bf16.gmra.mrb[12].mxu0 %vm363_vm1, %v7789_v11  ;;  %v711_v11 = vsel %vm7996_vm6, 0, %v710_v10  ;;  %v1152_v6 = vld [vmem:[#allocation2 + $0xc] sm:$0xf]  ;;  %vm8116_vm12 = vmor %vm619_vm3, %vm827_vm10  ;;  %v1156_v21 = vld [vmem:[#allocation2 + $0x14] sm:$0x1] }
  0x33   : > { %7108 = vmatprep.mubr.msk.bf16.mxu0 %vm363_vm1, %v7790_v12  ;;  %v6628_v12 = vld [vmem:[%s9797_s2 + $0xc] sm:$0xf]  ;;  %712 = vst [vmem:[#allocation2 + $0x8c] sm:$0x1] %v711_v11  ;;  %vm1985_vm13 = vsmask.f32 3328 }
  0x34   : > { %7764 = vmatprep.subr.msk.bf16.mxu1 %vm1463_vm8, %v6628_v12  ;;  %v8127_v28 = vld [vmem:[%s9798_s3 + $0x10] ss:$0 sps:$4 sm:$0x33]   ;;  %vm1986_vm14 = vsmask.f32 7440 }
  0x35   : > { %vm8374_vm15 = vmor %vm1985_vm13, %vm1986_vm14 }
  0x3a   : > { %7109 = vmatmul.mubr.msk.bf16.gmra.mrb[16].mxu0 %vm363_vm1, %v7791_v13  ;;  %v8065_v13 = vsel %vm1463_vm8, %v6628_v12, 0 }
  0x3b   : > { %7112 = vmatprep.mubr.msk.bf16.mxu0 %vm363_vm1, %v7792_v14  ;;  %7469 = vmatpush3.bf16.msra.mxu1 %v8065_v13  ;;  %v663_v14 = vld [vmem:[#allocation2 + $0xa8] sm:$0x1] }
  0x3c   : > { %7765 = vmatprep.subr.msk.bf16.mxu1 %vm1463_vm8, %v8085_v31 }
  0x42   : > { %7113 = vmatmul.mubr.msk.bf16.gmra.mrb[20].mxu0 %vm363_vm1, %v7793_v15  ;;  %v664_v15 = vsel %vm7988_vm4, 0, %v663_v14  ;;  %v1163_v14 = vld [vmem:[#allocation2 + $0x20] sm:$0x1] }
  0x43   : > { %7116 = vmatprep.mubr.msk.bf16.mxu0 %vm363_vm1, %v7794_v16  ;;  %v660_v16 = vld [vmem:[#allocation2 + $0x9c] sm:$0x1]  ;;  %665 = vst [vmem:[#allocation2 + $0xa8] sm:$0x1] %v664_v15 }
  0x4a   : > { %7117 = vmatmul.mubr.msk.bf16.gmra.mrb[24].mxu0 %vm363_vm1, %v7795_v17  ;;  %v661_v17 = vsel %vm7988_vm4, 0, %v660_v16 }
  0x4b   : > { %7120 = vmatprep.mubr.msk.bf16.mxu0 %vm363_vm1, %v7796_v18  ;;  %v719_v18 = vld [vmem:[#allocation2 + $0xb0] sm:$0x1]  ;;  %662 = vst [vmem:[#allocation2 + $0x9c] sm:$0x1] %v661_v17 }
  0x52   : > { %7121 = vmatmul.mubr.msk.bf16.gmra.mrb[28].mxu0 %vm363_vm1, %v7797_v19  ;;  %v720_v19 = vsel %vm7996_vm6, 0, %v719_v18 }
  0x53   : > { %7126 = vmatprep.mubr.msk.bf16.mxu0 %vm1414_vm9, %v7798_v51  ;;  %721 = vst [vmem:[#allocation2 + $0xb0] sm:$0x1] %v720_v19 }
  0xed   : > { %v7094_v35 = vpop.f32.mrb[0].mxu0 }
  0xee   : > { %v459_v36 = vadd.f32 %v7094_v35, %v8100_v34  ;;  %v450_v37 = vpop.f32.mrb[1].mxu0  ;;  %v8135_v35 = vsel %vm1463_vm8, %v8085_v31, 0 }
  0xef   : > { %v451_v38 = vadd.f32 %v8100_v34, %v450_v37  ;;  %v7095_v39 = vpop.f32.mrb[2].mxu0 }
  0xf0   : > { %v579_v40 = vmax.f32 %v459_v36, 0.0  ;;  %v462_v41 = vadd.f32 %v7095_v39, %v8100_v34  ;;  %v453_v42 = vpop.f32.mrb[3].mxu0 }
  0xf1   : > { %v577_v43 = vmax.f32 %v451_v38, 0.0  ;;  %v454_v44 = vadd.f32 %v8100_v34, %v453_v42 }
  0xf2   : > { %v6865_v45 = vpack.c.bf16 %v579_v40, %v579_v40  ;;  %v580_v46 = vmax.f32 %v462_v41, 0.0 }
  0xf3   : > { %v6863_v47 = vpack.c.bf16 %v577_v43, %v577_v43  ;;  %v578_v48 = vmax.f32 %v454_v44, 0.0 }
  0xf4   : > { %v847_v49 = vshrl.u32 %v6865_v45, 16  ;;  %v6866_v50 = vpack.c.bf16 %v580_v46, %v580_v46  ;;  %v850_v51 = vshll.u32 %v6865_v45, 16  ;;  %v1173_v45 = vld [vmem:[#allocation2 + $0x30] sm:$0xf] }
  0xf5   : > { %v830_v52 = vshrl.u32 %v6863_v47, 16  ;;  %v833_v53 = vshll.u32 %v6863_v47, 16  ;;  %v6864_v54 = vpack.c.bf16 %v578_v48, %v578_v48  ;;  %v7098_v55 = vpop.f32.mrb[4].mxu0 }
  0xf6   : > { %v849_v56 = vrot.slane %v847_v49, 7  ;;  %v855_v57 = vshrl.u32 %v6866_v50, 16  ;;  %v858_v58 = vshll.u32 %v6866_v50, 16  ;;  %v475_v59 = vadd.f32 %v7098_v55, %v8100_v34  ;;  %v466_v60 = vpop.f32.mrb[5].mxu0 }
  0xf7   : > { %v832_v63 = vrot.slane %v830_v52, 7  ;;  %v838_v0 = vshrl.u32 %v6864_v54, 16  ;;  %v841_v1 = vshll.u32 %v6864_v54, 16  ;;  %v467_v2 = vadd.f32 %v8100_v34, %v466_v60  ;;  %v7099_v3 = vpop.f32.mrb[6].mxu0 }
  0xf8   : > { %v852_v4 = vor.u32 %v850_v51, %v849_v56  ;;  %v853_v5 = vrot.slane %v849_v56, 4  ;;  %v857_v7 = vrot.slane %v855_v57, 7  ;;  %v583_v8 = vmax.f32 %v475_v59, 0.0  ;;  %v469_v9 = vpop.f32.mrb[7].mxu0 }
  0xf9   : > { %v835_v10 = vor.u32 %v833_v53, %v832_v63  ;;  %v836_v11 = vrot.slane %v832_v63, 4  ;;  %v840_v15 = vrot.slane %v838_v0, 7  ;;  %v581_v16 = vmax.f32 %v467_v2, 0.0  ;;  %v1166_v53 = vld [vmem:[#allocation2 + $0x24] sm:$0xf] }
  0xfa   : > { %v1160_v17 = vsel %vm8109_vm11, %v852_v4, %v1159_v62  ;;  %v860_v18 = vor.u32 %v858_v58, %v857_v7  ;;  %v862_v19 = vrot.slane %v857_v7, 4  ;;  %v6869_v22 = vpack.c.bf16 %v583_v8, %v583_v8 }
  0xfb   : > { %1161 = vst [vmem:[#allocation2 + $0x18] sm:$0xf] %v1160_v17  ;;  %v1153_v24 = vsel %vm8109_vm11, %v835_v10, %v1152_v6  ;;  %v843_v25 = vor.u32 %v841_v1, %v840_v15  ;;  %v845_v26 = vrot.slane %v840_v15, 4  ;;  %v6867_v27 = vpack.c.bf16 %v581_v16, %v581_v16  ;;  %v7823_v6 = vld [vmem:[%s9798_s3 + $0x8] sm:$0xff]  }
  0xfc   : > { %1154 = vst [vmem:[#allocation2 + $0xc] sm:$0xf] %v1153_v24  ;;  %v861_v29 = vsel %vm8116_vm12, %v853_v5, %v860_v18  ;;  %v1164_v30 = vsel %vm7988_vm4, %v862_v19, %v1163_v14  ;;  %v881_v32 = vshrl.u32 %v6869_v22, 16  ;;  %v884_v38 = vshll.u32 %v6869_v22, 16  ;;  %v1170_v14 = vld [vmem:[#allocation2 + $0x2c] sm:$0x1] }
  0xfd   : > { %1162 = vst.msk [vmem:[#allocation2 + $0x1c] sm:$0xf] %vm609_vm7, %v861_v29  ;;  %1165 = vst [vmem:[#allocation2 + $0x20] sm:$0x1] %v1164_v30  ;;  %v844_v36 = vsel %vm8116_vm12, %v836_v11, %v843_v25  ;;  %v1157_v37 = vsel %vm7988_vm4, %v845_v26, %v1156_v21  ;;  %v864_v39 = vshrl.u32 %v6867_v27, 16  ;;  %v7102_v40 = vpop.f32.mrb[8].mxu0  ;;  %v478_v31 = vadd.f32 %v7099_v3, %v8100_v34 }
  0xfe   : > { %1155 = vst.msk [vmem:[#allocation2 + $0x10] sm:$0xf] %vm609_vm7, %v844_v36  ;;  %1158 = vst [vmem:[#allocation2 + $0x14] sm:$0x1] %v1157_v37  ;;  %v8143_v41 = vrot.slane %v881_v32, 7  ;;  %v470_v42 = vadd.f32 %v8100_v34, %v469_v9  ;;  %v491_v43 = vadd.f32 %v7102_v40, %v8100_v34  ;;  %v482_v44 = vpop.f32.mrb[9].mxu0 }
  0xff   : > { %v8148_v46 = vrot.slane %v864_v39, 7  ;;  %v867_v47 = vshll.u32 %v6867_v27, 16  ;;  %v483_v48 = vadd.f32 %v8100_v34, %v482_v44  ;;  %v7103_v49 = vpop.f32.mrb[10].mxu0  ;;  %v8153_v50 = vsel %vm412_vm0, %v8127_v28, 0  ;;  %v1177_v11 = vld [vmem:[#allocation2 + $0x38] sm:$0x1] }
 0x100   : > { %v886_v51 = vor.u32 %v884_v38, %v8143_v41  ;;  %v887_v52 = vrot.slane %v8143_v41, 4  ;;  %v584_v54 = vmax.f32 %v478_v31, 0.0  ;;  %v582_v55 = vmax.f32 %v470_v42, 0.0  ;;  %v485_v56 = vpop.f32.mrb[11].mxu0  ;;  %v1187_v25 = vld [vmem:[#allocation2 + $0x48] sm:$0xf] }
 0x101   : > { %v869_v57 = vor.u32 %v867_v47, %v8148_v46  ;;  %v870_v58 = vrot.slane %v8148_v46, 4  ;;  %v587_v59 = vmax.f32 %v491_v43, 0.0  ;;  %v585_v60 = vmax.f32 %v483_v48, 0.0  ;;  %v1180_v43 = vld [vmem:[#allocation2 + $0x3c] sm:$0xf] }
 0x102   : > { %v1174_v62 = vsel %vm8109_vm11, %v886_v51, %v1173_v45  ;;  %v6870_v63 = vpack.c.bf16 %v584_v54, %v584_v54  ;;  %v6868_v0 = vpack.c.bf16 %v582_v55, %v582_v55  ;;  %v494_v1 = vadd.f32 %v7103_v49, %v8100_v34 }
 0x103   : > { %1175 = vst [vmem:[#allocation2 + $0x30] sm:$0xf] %v1174_v62  ;;  %v1167_v2 = vsel %vm8109_vm11, %v869_v57, %v1166_v53  ;;  %v6873_v3 = vpack.c.bf16 %v587_v59, %v587_v59  ;;  %v6871_v4 = vpack.c.bf16 %v585_v60, %v585_v60  ;;  %v486_v5 = vadd.f32 %v8100_v34, %v485_v56 }
 0x104   : > { %1168 = vst [vmem:[#allocation2 + $0x24] sm:$0xf] %v1167_v2  ;;  %v889_v7 = vshrl.u32 %v6870_v63, 16  ;;  %v892_v8 = vshll.u32 %v6870_v63, 16  ;;  %v872_v9 = vshrl.u32 %v6868_v0, 16  ;;  %v875_v10 = vshll.u32 %v6868_v0, 16 }
 0x105   : > { %v915_v15 = vshrl.u32 %v6873_v3, 16  ;;  %v918_v16 = vshll.u32 %v6873_v3, 16  ;;  %v898_v17 = vshrl.u32 %v6871_v4, 16  ;;  %v901_v18 = vshll.u32 %v6871_v4, 16  ;;  %v7106_v19 = vpop.f32.mrb[12].mxu0  ;;  %v7799_v21 = vld [vmem:[#allocation2 + $0xc] sm:$0xff]  }
 0x106   : > { %v891_v22 = vrot.slane %v889_v7, 7  ;;  %v874_v24 = vrot.slane %v872_v9, 7  ;;  %v588_v26 = vmax.f32 %v494_v1, 0.0  ;;  %v586_v27 = vmax.f32 %v486_v5, 0.0  ;;  %v498_v29 = vpop.f32.mrb[13].mxu0  ;;  %v7800_v30 = vld [vmem:[#allocation2 + $0x18] sm:$0xff]   ;;  %7127 = vmatmul.mubr.msk.bf16.vlgmr.msra.gmra.mrb[32].mxu0 %vm1414_vm9, %v7799_v21 }
 0x107   : > { %v8168_v32 = vrot.slane %v915_v15, 7  ;;  %v8170_v36 = vrot.slane %v898_v17, 7  ;;  %v507_v37 = vadd.f32 %v7106_v19, %v8100_v34  ;;  %v499_v38 = vadd.f32 %v8100_v34, %v498_v29  ;;  %v7107_v39 = vpop.f32.mrb[14].mxu0  ;;  %7130 = vmatprep.mubr.msk.bf16.mxu0 %vm1414_vm9, %v7800_v30  ;;  %7159 = vmatpush3.bf16.msra.mxu0 %v8094_v33  ;;  %v1191_v3 = vld [vmem:[#allocation2 + $0x50] sm:$0x1] }
 0x108   : > { %v894_v40 = vor.u32 %v892_v8, %v891_v22  ;;  %v896_v41 = vrot.slane %v891_v22, 4  ;;  %v877_v31 = vor.u32 %v875_v10, %v874_v24  ;;  %v879_v42 = vrot.slane %v874_v24, 4  ;;  %v501_v44 = vpop.f32.mrb[15].mxu0  ;;  %7160 = vmatprep.subr.bf16.mxu0 %v7823_v6  ;;  %v1184_v4 = vld [vmem:[#allocation2 + $0x44] sm:$0x1] }
 0x109   : > { %v920_v45 = vor.u32 %v918_v16, %v8168_v32  ;;  %v921_v46 = vrot.slane %v8168_v32, 4  ;;  %v903_v47 = vor.u32 %v901_v18, %v8170_v36  ;;  %v904_v48 = vrot.slane %v8170_v36, 4  ;;  %v6546_v17 = vld [vmem:[%s9797_s2 + $0x4] sm:$0xf]  ;;  %v1201_v29 = vld [vmem:[#allocation2 + $0x60] sm:$0xf] }
 0x10a   : > { %v895_v49 = vsel %vm8116_vm12, %v887_v52, %v894_v40  ;;  %v1178_v51 = vsel %vm7988_vm4, %v896_v41, %v1177_v11  ;;  %v878_v53 = vsel %vm8116_vm12, %v870_v58, %v877_v31  ;;  %v1171_v33 = vsel %vm7988_vm4, %v879_v42, %v1170_v14  ;;  %v1194_v30 = vld [vmem:[#allocation2 + $0x54] sm:$0xf]  ;;  %v8349_v61 = vld [vmem:[#allocation2 + $0x1c] sm:$0xf] }
 0x10b   : > { %1176 = vst.msk [vmem:[#allocation2 + $0x34] sm:$0xf] %vm609_vm7, %v895_v49  ;;  %1179 = vst [vmem:[#allocation2 + $0x38] sm:$0x1] %v1178_v51  ;;  %v1188_v54 = vsel %vm8109_vm11, %v920_v45, %v1187_v25  ;;  %v1181_v52 = vsel %vm8109_vm11, %v903_v47, %v1180_v43  ;;  %v6874_v55 = vpack.c.bf16 %v588_v26, %v588_v26  ;;  %v591_v57 = vmax.f32 %v507_v37, 0.0 }
 0x10c   : > { %1169 = vst.msk [vmem:[#allocation2 + $0x28] sm:$0xf] %vm609_vm7, %v878_v53  ;;  %1172 = vst [vmem:[#allocation2 + $0x2c] sm:$0x1] %v1171_v33  ;;  %v6872_v56 = vpack.c.bf16 %v586_v27, %v586_v27  ;;  %v589_v58 = vmax.f32 %v499_v38, 0.0  ;;  %v510_v59 = vadd.f32 %v7107_v39, %v8100_v34  ;;  %v502_v60 = vadd.f32 %v8100_v34, %v501_v44 }
 0x10d   : > { %1189 = vst [vmem:[#allocation2 + $0x48] sm:$0xf] %v1188_v54  ;;  %1182 = vst [vmem:[#allocation2 + $0x3c] sm:$0xf] %v1181_v52  ;;  %7161 = vmatpush3.bf16.msra.mxu0 %v7823_v6  ;;  %v923_v62 = vshrl.u32 %v6874_v55, 16  ;;  %v926_v63 = vshll.u32 %v6874_v55, 16  ;;  %v6877_v5 = vpack.c.bf16 %v591_v57, %v591_v57 }
 0x10e   : > { %v906_v0 = vshrl.u32 %v6872_v56, 16  ;;  %v909_v1 = vshll.u32 %v6872_v56, 16  ;;  %v7110_v2 = vpop.f32.mrb[16].mxu0  ;;  %7760 = vmatprep.subr.msk.bf16.mxu0 %vm412_vm0, %v8127_v28  ;;  %v6875_v7 = vpack.c.bf16 %v589_v58, %v589_v58  ;;  %v592_v8 = vmax.f32 %v510_v59, 0.0 }
 0x10f   : > { %v590_v9 = vmax.f32 %v502_v60, 0.0  ;;  %v514_v10 = vpop.f32.mrb[17].mxu0  ;;  %v925_v11 = vrot.slane %v923_v62, 7  ;;  %v523_v15 = vadd.f32 %v7110_v2, %v8100_v34  ;;  %v949_v18 = vshrl.u32 %v6877_v5, 16 }
 0x110   : > { %v908_v14 = vrot.slane %v906_v0, 7  ;;  %v515_v6 = vadd.f32 %v8100_v34, %v514_v10  ;;  %v7111_v16 = vpop.f32.mrb[18].mxu0  ;;  %v952_v28 = vshll.u32 %v6877_v5, 16  ;;  %v932_v19 = vshrl.u32 %v6875_v7, 16  ;;  %v1198_v0 = vld [vmem:[#allocation2 + $0x5c] sm:$0x1] }
 0x111   : > { %v935_v21 = vshll.u32 %v6875_v7, 16  ;;  %v517_v22 = vpop.f32.mrb[19].mxu0  ;;  %7163 = vmatpush3.bf16.msra.mxu0 %v8153_v50  ;;  %v928_v24 = vor.u32 %v926_v63, %v925_v11  ;;  %v930_v25 = vrot.slane %v925_v11, 4  ;;  %v951_v32 = vrot.slane %v949_v18, 7  ;;  %v1205_v63 = vld [vmem:[#allocation2 + $0x68] sm:$0x1] }
 0x112   : > { %v911_v26 = vor.u32 %v909_v1, %v908_v14  ;;  %v913_v27 = vrot.slane %v908_v14, 4  ;;  %7761 = vmatprep.subr.msk.bf16.mxu0 %vm1463_vm8, %v6546_v17  ;;  %v934_v36 = vrot.slane %v932_v19, 7  ;;  %v6878_v37 = vpack.c.bf16 %v592_v8, %v592_v8  ;;  %v7802_v40 = vld [vmem:[#allocation2 + $0x30] sm:$0xff]   ;;  %v1215_v19 = vld [vmem:[#allocation2 + $0x78] sm:$0xf] }
 0x113   : > { %v6876_v38 = vpack.c.bf16 %v590_v9, %v590_v9  ;;  %v7801_v39 = vld [vmem:[#allocation2 + $0x24] sm:$0xff]   ;;  %v929_v41 = vsel %vm8116_vm12, %v921_v46, %v928_v24  ;;  %v1192_v50 = vsel %vm7988_vm4, %v930_v25, %v1191_v3  ;;  %v954_v43 = vor.u32 %v952_v28, %v951_v32 }
 0x114   : > { %v912_v31 = vsel %vm8116_vm12, %v904_v48, %v911_v26  ;;  %v1185_v42 = vsel %vm7988_vm4, %v913_v27, %v1184_v4  ;;  %1190 = vst.msk [vmem:[#allocation2 + $0x4c] sm:$0xf] %vm609_vm7, %v929_v41  ;;  %1193 = vst [vmem:[#allocation2 + $0x50] sm:$0x1] %v1192_v50  ;;  %v955_v44 = vrot.slane %v951_v32, 4  ;;  %v937_v45 = vor.u32 %v935_v21, %v934_v36 }
 0x115   : > { %1183 = vst.msk [vmem:[#allocation2 + $0x40] sm:$0xf] %vm609_vm7, %v912_v31  ;;  %1186 = vst [vmem:[#allocation2 + $0x44] sm:$0x1] %v1185_v42  ;;  %v938_v47 = vrot.slane %v934_v36, 4  ;;  %7131 = vmatmul.mubr.msk.bf16.gmra.mrb[36].mxu0 %vm1414_vm9, %v7801_v39  ;;  %v957_v46 = vshrl.u32 %v6878_v37, 16  ;;  %v1202_v33 = vsel %vm8109_vm11, %v954_v43, %v1201_v29  ;;  %v526_v59 = vadd.f32 %v7111_v16, %v8100_v34 }
 0x116   : > { %v960_v49 = vshll.u32 %v6878_v37, 16  ;;  %v940_v51 = vshrl.u32 %v6876_v38, 16  ;;  %v943_v53 = vshll.u32 %v6876_v38, 16  ;;  %7134 = vmatprep.mubr.msk.bf16.mxu0 %vm1414_vm9, %v7802_v40  ;;  %v7114_v48 = vpop.f32.mrb[20].mxu0  ;;  %v1195_v54 = vsel %vm8109_vm11, %v937_v45, %v1194_v30  ;;  %1203 = vst [vmem:[#allocation2 + $0x60] sm:$0xf] %v1202_v33 }
 0x117   : > { %v595_v52 = vmax.f32 %v523_v15, 0.0  ;;  %v593_v55 = vmax.f32 %v515_v6, 0.0  ;;  %v530_v56 = vpop.f32.mrb[21].mxu0  ;;  %1196 = vst [vmem:[#allocation2 + $0x54] sm:$0xf] %v1195_v54  ;;  %v959_v57 = vrot.slane %v957_v46, 7  ;;  %v518_v60 = vadd.f32 %v8100_v34, %v517_v22 }
 0x118   : > { %v942_v58 = vrot.slane %v940_v51, 7  ;;  %v7115_v62 = vpop.f32.mrb[22].mxu0  ;;  %v539_v3 = vadd.f32 %v7114_v48, %v8100_v34  ;;  %v531_v4 = vadd.f32 %v8100_v34, %v530_v56  ;;  %v596_v25 = vmax.f32 %v526_v59, 0.0  ;;  %v1208_v29 = vld [vmem:[#allocation2 + $0x6c] sm:$0xf] }
 0x119   : > { %v6881_v1 = vpack.c.bf16 %v595_v52, %v595_v52  ;;  %v6879_v2 = vpack.c.bf16 %v593_v55, %v593_v55  ;;  %v533_v5 = vpop.f32.mrb[23].mxu0  ;;  %v962_v7 = vor.u32 %v960_v49, %v959_v57  ;;  %v964_v8 = vrot.slane %v959_v57, 4  ;;  %v1219_v56 = vld [vmem:[#allocation2 + $0x80] sm:$0x1]  ;;  %v1212_v57 = vld [vmem:[#allocation2 + $0x74] sm:$0x1] }
 0x11a   : > { %v945_v9 = vor.u32 %v943_v53, %v942_v58  ;;  %v947_v10 = vrot.slane %v942_v58, 4  ;;  %v594_v26 = vmax.f32 %v518_v60, 0.0  ;;  %v599_v30 = vmax.f32 %v539_v3, 0.0 }
 0x11b   : > { %v983_v11 = vshrl.u32 %v6881_v1, 16  ;;  %v986_v14 = vshll.u32 %v6881_v1, 16  ;;  %v966_v15 = vshrl.u32 %v6879_v2, 16  ;;  %v969_v6 = vshll.u32 %v6879_v2, 16  ;;  %v7804_v27 = vld [vmem:[#allocation2 + $0x48] sm:$0xff]  }
 0x11c   : > { %v963_v16 = vsel %vm8116_vm12, %v955_v44, %v962_v7  ;;  %v1206_v17 = vsel %vm7988_vm4, %v964_v8, %v1205_v63  ;;  %v946_v18 = vsel %vm8116_vm12, %v938_v47, %v945_v9  ;;  %v1199_v28 = vsel %vm7988_vm4, %v947_v10, %v1198_v0  ;;  %v7803_v21 = vld [vmem:[#allocation2 + $0x3c] sm:$0xff]   ;;  %v1229_v1 = vld [vmem:[#allocation2 + $0x90] sm:$0xf]  ;;  %v1222_v2 = vld [vmem:[#allocation2 + $0x84] sm:$0xf] }
 0x11d   : > { %1204 = vst.msk [vmem:[#allocation2 + $0x64] sm:$0xf] %vm609_vm7, %v963_v16  ;;  %1207 = vst [vmem:[#allocation2 + $0x68] sm:$0x1] %v1206_v17  ;;  %v8236_v22 = vrot.slane %v983_v11, 7  ;;  %v8238_v24 = vrot.slane %v966_v15, 7  ;;  %v542_v36 = vadd.f32 %v7115_v62, %v8100_v34  ;;  %v534_v37 = vadd.f32 %v8100_v34, %v533_v5  ;;  %7135 = vmatmul.mubr.msk.bf16.gmra.mrb[40].mxu0 %vm1414_vm9, %v7803_v21 }
 0x11e   : > { %1197 = vst.msk [vmem:[#allocation2 + $0x58] sm:$0xf] %vm609_vm7, %v946_v18  ;;  %1200 = vst [vmem:[#allocation2 + $0x5c] sm:$0x1] %v1199_v28  ;;  %v597_v32 = vmax.f32 %v531_v4, 0.0  ;;  %v7118_v38 = vpop.f32.mrb[24].mxu0  ;;  %7138 = vmatprep.mubr.msk.bf16.mxu0 %vm1414_vm9, %v7804_v27  ;;  %v6882_v42 = vpack.c.bf16 %v596_v25, %v596_v25  ;;  %v6880_v43 = vpack.c.bf16 %v594_v26, %v594_v26 }
 0x11f   : > { %v988_v39 = vor.u32 %v986_v14, %v8236_v22  ;;  %v989_v40 = vrot.slane %v8236_v22, 4  ;;  %v971_v41 = vor.u32 %v969_v6, %v8238_v24  ;;  %v972_v50 = vrot.slane %v8238_v24, 4  ;;  %v546_v31 = vpop.f32.mrb[25].mxu0 }
 0x120   : > { %v6885_v44 = vpack.c.bf16 %v599_v30, %v599_v30  ;;  %v6883_v45 = vpack.c.bf16 %v597_v32, %v597_v32  ;;  %v8248_v47 = vpop.f32.mrb[26].mxu0  ;;  %v600_v51 = vmax.f32 %v542_v36, 0.0  ;;  %v598_v53 = vmax.f32 %v534_v37, 0.0  ;;  %v8280_v32 = vld [vmem:[%s9797_s2 + $0x14] sm:$0xf] }
 0x121   : > { %v1216_v46 = vsel %vm8109_vm11, %v988_v39, %v1215_v19  ;;  %v1209_v49 = vsel %vm8109_vm11, %v971_v41, %v1208_v29  ;;  %v8254_v48 = vpop.f32.mrb[27].mxu0  ;;  %v991_v33 = vshrl.u32 %v6882_v42, 16  ;;  %v994_v54 = vshll.u32 %v6882_v42, 16 }
 0x122   : > { %1217 = vst [vmem:[#allocation2 + $0x78] sm:$0xf] %v1216_v46  ;;  %1210 = vst [vmem:[#allocation2 + $0x6c] sm:$0xf] %v1209_v49  ;;  %v974_v52 = vshrl.u32 %v6880_v43, 16  ;;  %v977_v55 = vshll.u32 %v6880_v43, 16  ;;  %v6886_v3 = vpack.c.bf16 %v600_v51, %v600_v51  ;;  %v6884_v4 = vpack.c.bf16 %v598_v53, %v598_v53 }
 0x123   : > { %v1017_v58 = vshrl.u32 %v6885_v44, 16  ;;  %v1020_v59 = vshll.u32 %v6885_v44, 16  ;;  %v1000_v60 = vshrl.u32 %v6883_v45, 16  ;;  %v1003_v62 = vshll.u32 %v6883_v45, 16  ;;  %v1233_v51 = vld [vmem:[#allocation2 + $0x98] sm:$0x1] }
 0x124   : > { %v993_v63 = vrot.slane %v991_v33, 7  ;;  %v976_v0 = vrot.slane %v974_v52, 7  ;;  %v555_v10 = vadd.f32 %v7118_v38, %v8100_v34  ;;  %v547_v11 = vadd.f32 %v8100_v34, %v546_v31  ;;  %v7807_v17 = vld [vmem:[#allocation2 + $0x60] sm:$0xff]  }
 0x125   : > { %v7805_v5 = vld [vmem:[#allocation2 + $0x54] sm:$0xff]   ;;  %v8256_v8 = vrot.slane %v1017_v58, 7  ;;  %v8258_v9 = vrot.slane %v1000_v60, 7  ;;  %v7808_v22 = vld [vmem:[#allocation2 + $0x60] sm:$0xff]   ;;  %v7122_v24 = vpop.f32.mrb[28].mxu0  ;;  %v1025_v38 = vshrl.u32 %v6886_v3, 16  ;;  %v558_v45 = vadd.f32 %v8248_v47, %v8100_v34 }
 0x126   : > { %v7806_v7 = vld [vmem:[#allocation2 + $0x54] sm:$0xff]   ;;  %v996_v14 = vor.u32 %v994_v54, %v993_v63  ;;  %v998_v15 = vrot.slane %v993_v63, 4  ;;  %v979_v6 = vor.u32 %v977_v55, %v976_v0  ;;  %v981_v16 = vrot.slane %v976_v0, 4  ;;  %7139 = vmatmul.mubr.msk.bf16.gmra.mrb[44].mxu0 %vm1414_vm9, %v7805_v5  ;;  %v562_v30 = vpop.f32.mrb[29].mxu0  ;;  %v1243_v0 = vld [vmem:[#allocation2 + $0xa8] sm:$0xf] }
 0x127   : > { %7278 = vmatprep.mubr.msk.bf16.mxu1 %vm1414_vm9, %v7806_v7  ;;  %v1022_v18 = vor.u32 %v1020_v59, %v8256_v8  ;;  %v1023_v28 = vrot.slane %v8256_v8, 4  ;;  %v1005_v19 = vor.u32 %v1003_v62, %v8258_v9  ;;  %v1006_v21 = vrot.slane %v8258_v9, 4  ;;  %7142 = vmatprep.mubr.msk.bf16.mxu0 %vm1414_vm9, %v7807_v17  ;;  %v1236_v7 = vld [vmem:[#allocation2 + $0x9c] sm:$0xf] }
 0x128   : > { %v997_v25 = vsel %vm8116_vm12, %v989_v40, %v996_v14  ;;  %v1220_v26 = vsel %vm7988_vm4, %v998_v15, %v1219_v56  ;;  %v980_v27 = vsel %vm8116_vm12, %v972_v50, %v979_v6  ;;  %v1213_v29 = vsel %vm7988_vm4, %v981_v16, %v1212_v57  ;;  %7279 = vmatmul.mubr.msk.bf16.vlgmr.msra.gmra.mrb[0].mxu1 %vm1414_vm9, %v7808_v22  ;;  %v8289_v40 = vpop.f32.mrb[30].mxu0  ;;  %v1226_v56 = vld [vmem:[#allocation2 + $0x8c] sm:$0x1] }
 0x129   : > { %1218 = vst.msk [vmem:[#allocation2 + $0x7c] sm:$0xf] %vm609_vm7, %v997_v25  ;;  %1221 = vst [vmem:[#allocation2 + $0x80] sm:$0x1] %v1220_v26  ;;  %v1230_v36 = vsel %vm8109_vm11, %v1022_v18, %v1229_v1  ;;  %v1223_v37 = vsel %vm8109_vm11, %v1005_v19, %v1222_v2  ;;  %v1028_v39 = vshll.u32 %v6886_v3, 16  ;;  %v1008_v41 = vshrl.u32 %v6884_v4, 16  ;;  %7299 = vmatpush3.bf16.msra.mxu1 %v8135_v35 }
 0x12a   : > { %1211 = vst.msk [vmem:[#allocation2 + $0x70] sm:$0xf] %vm609_vm7, %v980_v27  ;;  %1214 = vst [vmem:[#allocation2 + $0x74] sm:$0x1] %v1213_v29  ;;  %v1011_v50 = vshll.u32 %v6884_v4, 16  ;;  %v603_v31 = vmax.f32 %v555_v10, 0.0  ;;  %v550_v46 = vadd.f32 %v8100_v34, %v8254_v48  ;;  %v571_v49 = vadd.f32 %v7122_v24, %v8100_v34  ;;  %7766 = vmatprep.subr.msk.bf16.mxu1 %vm1463_vm8, %v8280_v32 }
 0x12b   : > { %1231 = vst [vmem:[#allocation2 + $0x90] sm:$0xf] %v1230_v36  ;;  %1224 = vst [vmem:[#allocation2 + $0x84] sm:$0xf] %v1223_v37  ;;  %v601_v42 = vmax.f32 %v547_v11, 0.0  ;;  %v8292_v43 = vpop.f32.mrb[31].mxu0  ;;  %v563_v35 = vadd.f32 %v8100_v34, %v562_v30 }
 0x12c   : > { %v1027_v44 = vrot.slane %v1025_v38, 7  ;;  %v1010_v53 = vrot.slane %v1008_v41, 7  ;;  %v6889_v33 = vpack.c.bf16 %v603_v31, %v603_v31  ;;  %v604_v57 = vmax.f32 %v558_v45, 0.0  ;;  %v1247_v24 = vld [vmem:[#allocation2 + $0xb0] sm:$0x1] }
 0x12d   : > { %v6887_v54 = vpack.c.bf16 %v601_v42, %v601_v42  ;;  %v602_v58 = vmax.f32 %v550_v46, 0.0  ;;  %v607_v14 = vmax.f32 %v571_v49, 0.0  ;;  %v605_v15 = vmax.f32 %v563_v35, 0.0  ;;  %v1240_v41 = vld [vmem:[#allocation2 + $0xa4] sm:$0x1] }
 0x12e   : > { %v1030_v52 = vor.u32 %v1028_v39, %v1027_v44  ;;  %v1032_v55 = vrot.slane %v1027_v44, 4  ;;  %v1013_v47 = vor.u32 %v1011_v50, %v1010_v53  ;;  %v1015_v59 = vrot.slane %v1010_v53, 4  ;;  %v3495_v49 = vld [vmem:[#allocation2 + $0xc] sm:$0xf] }
 0x12f   : > { %v1051_v60 = vshrl.u32 %v6889_v33, 16  ;;  %v1054_v48 = vshll.u32 %v6889_v33, 16  ;;  %v1034_v1 = vshrl.u32 %v6887_v54, 16  ;;  %v1037_v2 = vshll.u32 %v6887_v54, 16  ;;  %v1257_v33 = vld [vmem:[#allocation2 + $0xc0] sm:$0xf] }
 0x130   : > { %v1031_v62 = vsel %vm8116_vm12, %v1023_v28, %v1030_v52  ;;  %v1234_v63 = vsel %vm7988_vm4, %v1032_v55, %v1233_v51  ;;  %v1014_v3 = vsel %vm8116_vm12, %v1006_v21, %v1013_v47  ;;  %v1227_v4 = vsel %vm7988_vm4, %v1015_v59, %v1226_v56  ;;  %v7811_v19 = vld [vmem:[#allocation2 + $0x78] sm:$0xff]  }
 0x131   : > { %1232 = vst.msk [vmem:[#allocation2 + $0x94] sm:$0xf] %vm609_vm7, %v1031_v62  ;;  %1235 = vst [vmem:[#allocation2 + $0x98] sm:$0x1] %v1234_v63  ;;  %v1053_v5 = vrot.slane %v1051_v60, 7  ;;  %v6890_v8 = vpack.c.bf16 %v604_v57, %v604_v57  ;;  %v7809_v9 = vld [vmem:[#allocation2 + $0x6c] sm:$0xff]   ;;  %v6888_v11 = vpack.c.bf16 %v602_v58, %v602_v58  ;;  %v6893_v36 = vpack.c.bf16 %v607_v14, %v607_v14 }
 0x132   : > { %1225 = vst.msk [vmem:[#allocation2 + $0x88] sm:$0xf] %vm609_vm7, %v1014_v3  ;;  %1228 = vst [vmem:[#allocation2 + $0x8c] sm:$0x1] %v1227_v4  ;;  %v1036_v10 = vrot.slane %v1034_v1, 7  ;;  %v7810_v6 = vld [vmem:[#allocation2 + $0x6c] sm:$0xff]   ;;  %7143 = vmatmul.mubr.msk.bf16.gmra.mrb[48].mxu0 %vm1414_vm9, %v7809_v9  ;;  %v6891_v37 = vpack.c.bf16 %v605_v15, %v605_v15  ;;  %v574_v50 = vadd.f32 %v8289_v40, %v8100_v34 }
 0x133   : > { %v1056_v16 = vor.u32 %v1054_v48, %v1053_v5  ;;  %v1057_v17 = vrot.slane %v1053_v5, 4  ;;  %v1059_v18 = vshrl.u32 %v6890_v8, 16  ;;  %v1062_v28 = vshll.u32 %v6890_v8, 16  ;;  %7282 = vmatprep.mubr.msk.bf16.mxu1 %vm1414_vm9, %v7810_v6  ;;  %v7812_v27 = vld [vmem:[#allocation2 + $0x78] sm:$0xff]   ;;  %7146 = vmatprep.mubr.msk.bf16.mxu0 %vm1414_vm9, %v7811_v19  ;;  %v1250_v62 = vld [vmem:[#allocation2 + $0xb4] sm:$0xf] }
 0x134   : > { %v1039_v21 = vor.u32 %v1037_v2, %v1036_v10  ;;  %v1040_v22 = vrot.slane %v1036_v10, 4  ;;  %v1042_v25 = vshrl.u32 %v6888_v11, 16  ;;  %v1045_v26 = vshll.u32 %v6888_v11, 16  ;;  %7283 = vmatmul.mubr.msk.bf16.gmra.mrb[4].mxu1 %vm1414_vm9, %v7812_v27  ;;  %v3498_v9 = vld [vmem:[#allocation2 + $0x18] sm:$0xf] }
 0x135   : > { %v1244_v29 = vsel %vm8109_vm11, %v1056_v16, %v1243_v0  ;;  %v1061_v30 = vrot.slane %v1059_v18, 7  ;;  %v566_v31 = vadd.f32 %v8100_v34, %v8292_v43  ;;  %v1085_v45 = vshrl.u32 %v6893_v36, 16  ;;  %v8336_v0 = vld [vmem:[#allocation2 + $0x10] sm:$0xf]  ;;  %v1261_v16 = vld [vmem:[#allocation2 + $0xc8] sm:$0x1] }
 0x136   : > { %1245 = vst [vmem:[#allocation2 + $0xa8] sm:$0xf] %v1244_v29  ;;  %v1237_v38 = vsel %vm8109_vm11, %v1039_v21, %v1236_v7  ;;  %v1044_v39 = vrot.slane %v1042_v25, 7  ;;  %v1088_v46 = vshll.u32 %v6893_v36, 16  ;;  %v1068_v54 = vshrl.u32 %v6891_v37, 16 }
 0x137   : > { %1238 = vst [vmem:[#allocation2 + $0x9c] sm:$0xf] %v1237_v38  ;;  %v1064_v42 = vor.u32 %v1062_v28, %v1061_v30  ;;  %v1066_v44 = vrot.slane %v1061_v30, 4  ;;  %v1071_v35 = vshll.u32 %v6891_v37, 16  ;;  %v1087_v43 = vrot.slane %v1085_v45, 7 }
 0x138   : > { %v1047_v51 = vor.u32 %v1045_v26, %v1044_v39  ;;  %v1049_v53 = vrot.slane %v1044_v39, 4  ;;  %v7815_v52 = vld [vmem:[#allocation2 + $0x90] sm:$0xff]   ;;  %v608_v55 = vmax.f32 %v574_v50, 0.0  ;;  %v1070_v59 = vrot.slane %v1068_v54, 7  ;;  %v1254_v28 = vld [vmem:[#allocation2 + $0xbc] sm:$0x1] }
 0x139   : > { %v1065_v40 = vsel %vm8116_vm12, %v1057_v17, %v1064_v42  ;;  %v1248_v34 = vsel %vm7988_vm4, %v1066_v44, %v1247_v24  ;;  %v7813_v56 = vld [vmem:[#allocation2 + $0x84] sm:$0xff]   ;;  %v606_v60 = vmax.f32 %v566_v31, 0.0  ;;  %v1090_v48 = vor.u32 %v1088_v46, %v1087_v43  ;;  %v7816_v5 = vld [vmem:[#allocation2 + $0x90] sm:$0xff]   ;;  %v8351_v37 = vld [vmem:[#allocation2 + $0x20] sm:$0x1] }
 0x13a   : > { %v7814_v57 = vld [vmem:[#allocation2 + $0x84] sm:$0xff]   ;;  %1246 = vst.msk [vmem:[#allocation2 + $0xac] sm:$0xf] %vm609_vm7, %v1065_v40  ;;  %1249 = vst [vmem:[#allocation2 + $0xb0] sm:$0x1] %v1248_v34  ;;  %v1048_v58 = vsel %vm8116_vm12, %v1040_v22, %v1047_v51  ;;  %v1241_v47 = vsel %vm7988_vm4, %v1049_v53, %v1240_v41  ;;  %v6894_v63 = vpack.c.bf16 %v608_v55, %v608_v55  ;;  %7147 = vmatmul.mubr.msk.bf16.gmra.mrb[52].mxu0 %vm1414_vm9, %v7813_v56  ;;  %vm2730_vm0 = vcmask 1042432  }
 0x13b   : > { %1239 = vst.msk [vmem:[#allocation2 + $0xa0] sm:$0xf] %vm609_vm7, %v1048_v58  ;;  %1242 = vst [vmem:[#allocation2 + $0xa4] sm:$0x1] %v1241_v47  ;;  %7286 = vmatprep.mubr.msk.bf16.mxu1 %vm1414_vm9, %v7814_v57  ;;  %v3546_v1 = vshrl.u32 %v3495_v49, 16  ;;  %v1091_v2 = vrot.slane %v1087_v43, 4  ;;  %v1073_v3 = vor.u32 %v1071_v35, %v1070_v59  ;;  %v6892_v4 = vpack.c.bf16 %v606_v60, %v606_v60 }
 0x13c   : > { %7150 = vmatprep.mubr.msk.bf16.mxu0 %vm1414_vm9, %v7815_v52  ;;  %v8339_v7 = vld [vmem:[#allocation2 + $0x14] sm:$0x1]  ;;  %v3549_v8 = vshll.u32 %v3495_v49, 16  ;;  %v1258_v10 = vsel %vm8109_vm11, %v1090_v48, %v1257_v33  ;;  %v1074_v11 = vrot.slane %v1070_v59, 4  ;;  %v1093_v14 = vshrl.u32 %v6894_v63, 16  ;;  %7287 = vmatmul.mubr.msk.bf16.gmra.mrb[8].mxu1 %vm1414_vm9, %v7816_v5  ;;  %vm8528_vm3 = vmor %vm2730_vm0, %vm2731_vm2 }
 0x13d   : > { %1259 = vst [vmem:[#allocation2 + $0xc0] sm:$0xf] %v1258_v10  ;;  %v1251_v15 = vsel %vm8109_vm11, %v1073_v3, %v1250_v62  ;;  %v1096_v6 = vshll.u32 %v6894_v63, 16  ;;  %v1076_v17 = vshrl.u32 %v6892_v4, 16  ;;  %v3548_v19 = vrot.slane %v3546_v1, 4 }
 0x13e   : > { %1252 = vst [vmem:[#allocation2 + $0xb4] sm:$0xf] %v1251_v15  ;;  %v1095_v18 = vrot.slane %v1093_v14, 7  ;;  %v3551_v21 = vrot.slane %v3549_v8, 5  ;;  %v3555_v22 = vshll.u32 %v8336_v0, 16  ;;  %v1079_v25 = vshll.u32 %v6892_v4, 16 }
 0x13f   : > { %v1078_v24 = vrot.slane %v1076_v17, 7  ;;  %v3559_v26 = vshrl.u32 %v8336_v0, 16  ;;  %v3565_v27 = vshll.u32 %v8339_v7, 16  ;;  %v3570_v38 = vshrl.u32 %v3498_v9, 16  ;;  %v3501_v51 = vld [vmem:[#allocation2 + $0x24] sm:$0xf] }
 0x140   : > { %v1098_v29 = vor.u32 %v1096_v6, %v1095_v18  ;;  %v1100_v30 = vrot.slane %v1095_v18, 4  ;;  %v3552_v36 = vor.u32 %v3551_v21, %v3548_v19  ;;  %v3557_v46 = vrot.slane %v3555_v22, 5  ;;  %v8367_v40 = vld [vmem:[#allocation2 + $0x28] sm:$0xf]  ;;  %v8382_v60 = vld [vmem:[#allocation2 + $0x2c] sm:$0x1] }
 0x141   : > { %v1081_v39 = vor.u32 %v1079_v25, %v1078_v24  ;;  %v1083_v41 = vrot.slane %v1078_v24, 4  ;;  %v7819_v45 = vld [vmem:[#allocation2 + $0xa8] sm:$0xff]   ;;  %v8359_v49 = vsel %vm1463_vm8, %v8280_v32, 0  ;;  %v3561_v52 = vrot.slane %v3559_v26, 4  ;;  %v3504_v6 = vld [vmem:[#allocation2 + $0x30] sm:$0xf] }
 0x142   : > { %v7817_v50 = vld [vmem:[#allocation2 + $0x9c] sm:$0xff]   ;;  %v1099_v31 = vsel %vm8116_vm12, %v1091_v2, %v1098_v29  ;;  %v1262_v42 = vsel %vm7988_vm4, %v1100_v30, %v1261_v16  ;;  %v7820_v54 = vld [vmem:[#allocation2 + $0xa8] sm:$0xff]   ;;  %v3553_v35 = vrot.slane %v3552_v36, 4  ;;  %v3567_v32 = vrot.slane %v3565_v27, 5  ;;  %v8391_v16 = vld [vmem:[#allocation2 + $0x34] sm:$0xf] }
 0x143   : > { %v7818_v44 = vld [vmem:[#allocation2 + $0x9c] sm:$0xff]   ;;  %1260 = vst.msk [vmem:[#allocation2 + $0xc4] sm:$0xf] %vm609_vm7, %v1099_v31  ;;  %1263 = vst [vmem:[#allocation2 + $0xc8] sm:$0x1] %v1262_v42  ;;  %v1082_v53 = vsel %vm8116_vm12, %v1074_v11, %v1081_v39  ;;  %v1255_v33 = vsel %vm7988_vm4, %v1083_v41, %v1254_v28  ;;  %7151 = vmatmul.mubr.msk.bf16.gmra.mrb[56].mxu0 %vm1414_vm9, %v7817_v50  ;;  %v3572_v34 = vrot.slane %v3570_v38, 4 }
 0x144   : > { %1253 = vst.msk [vmem:[#allocation2 + $0xb8] sm:$0xf] %vm609_vm7, %v1082_v53  ;;  %1256 = vst [vmem:[#allocation2 + $0xbc] sm:$0x1] %v1255_v33  ;;  %7290 = vmatprep.mubr.msk.bf16.mxu1 %vm1414_vm9, %v7818_v44  ;;  %7154 = vmatprep.mubr.msk.bf16.mxu0 %vm1414_vm9, %v7819_v45  ;;  %v3573_v43 = vshll.u32 %v3498_v9, 16  ;;  %v3579_v55 = vshll.u32 %v8349_v61, 16  ;;  %v3562_v56 = vor.u32 %v3561_v52, %v3557_v46 }
 0x145   : > { %7291 = vmatmul.mubr.msk.bf16.gmra.mrb[12].mxu1 %vm1414_vm9, %v7820_v54  ;;  %v3583_v57 = vshrl.u32 %v8349_v61, 16  ;;  %v3589_v58 = vshll.u32 %v8351_v37, 16  ;;  %v3594_v48 = vshrl.u32 %v3501_v51, 16  ;;  %v3597_v62 = vshll.u32 %v3501_v51, 16  ;;  %v7827_v17 = vld [vmem:[%s7950_s29] sm:$0xff]  }
 0x146   : > { %v3575_v47 = vrot.slane %v3573_v43, 5  ;;  %v3581_v59 = vrot.slane %v3579_v55, 5  ;;  %v3558_v63 = vsel %vm8374_vm15, %v3553_v35, %v3557_v46  ;;  %v3563_v1 = vrot.slane %v3562_v56, 4  ;;  %v8396_v38 = vld [vmem:[#allocation2 + $0x38] sm:$0x1] }
 0x147   : > { %v3585_v2 = vrot.slane %v3583_v57, 4  ;;  %v3603_v3 = vshll.u32 %v8367_v40, 16  ;;  %v3596_v5 = vrot.slane %v3594_v48, 4  ;;  %v3599_v8 = vrot.slane %v3597_v62, 5  ;;  %v3507_v44 = vld [vmem:[#allocation2 + $0x3c] sm:$0xf] }
 0x148   : > { %v3576_v4 = vor.u32 %v3575_v47, %v3572_v34  ;;  %v3607_v9 = vshrl.u32 %v8367_v40, 16  ;;  %v3568_v10 = vsel %vm8374_vm15, %v3563_v1, %v3567_v32  ;;  %v3613_v15 = vshll.u32 %v8382_v60, 16  ;;  %v8407_v33 = vld [vmem:[#allocation2 + $0x40] sm:$0xf]  ;;  %v3510_v34 = vld [vmem:[#allocation2 + $0x48] sm:$0xf] }
 0x149   : > { %v3586_v11 = vor.u32 %v3585_v2, %v3581_v59  ;;  %v3605_v14 = vrot.slane %v3603_v3, 5  ;;  %v3591_v28 = vrot.slane %v3589_v58, 5  ;;  %v3600_v19 = vor.u32 %v3599_v8, %v3596_v5  ;;  %v8414_v56 = vld [vmem:[#allocation2 + $0x44] sm:$0x1]  ;;  %v7828_v47 = vld [vmem:[%s7950_s29 + $0x8] sm:$0xff]   ;;  %v7829_v1 = vld [vmem:[%s7950_s29 + $0x10] sm:$0xff]  }
 0x14a   : > { %v3577_v18 = vrot.slane %v3576_v4, 4  ;;  %v3609_v21 = vrot.slane %v3607_v9, 4  ;;  %v6662_v24 = vcombine.low %v3558_v63, %v3568_v10  ;;  %v3615_v36 = vrot.slane %v3613_v15, 5  ;;  %v7825_v39 = vld [vmem:[#allocation2 + $0xc0] sm:$0xff]   ;;  %v8420_v8 = vld [vmem:[#allocation2 + $0x4c] sm:$0xf] }
 0x14b   : > { %v7822_v22 = vld [vmem:[#allocation2 + $0xb4] sm:$0xff]   ;;  %v3587_v25 = vrot.slane %v3586_v11, 4  ;;  %v3601_v29 = vrot.slane %v3600_v19, 4  ;;  %v3618_v50 = vshrl.u32 %v3504_v6, 16  ;;  %v3621_v31 = vshll.u32 %v3504_v6, 16 }
 0x14c   : > { %v7824_v26 = vld [vmem:[#allocation2 + $0xb4] sm:$0xff]   ;;  %v3582_v27 = vsel %vm8374_vm15, %v3577_v18, %v3581_v59  ;;  %v3610_v30 = vor.u32 %v3609_v21, %v3605_v14  ;;  %7155 = vmatmul.mubr.msk.bf16.gmra.mrb[60].mxu0 %vm1414_vm9, %v7822_v22  ;;  %v3627_v42 = vshll.u32 %v8391_v16, 16  ;;  %v3631_v53 = vshrl.u32 %v8391_v16, 16  ;;  %v8423_v18 = vld [vmem:[#allocation2 + $0x50] sm:$0x1] }
 0x14d   : > { %v3592_v41 = vsel %vm8374_vm15, %v3587_v25, %v3591_v28  ;;  %7294 = vmatprep.mubr.msk.bf16.mxu1 %vm1414_vm9, %v7824_v26  ;;  %7164 = vmatprep.mubr.msk.bf16.mxu0 %vm363_vm1, %v7827_v17  ;;  %v3606_v46 = vsel %vm8374_vm15, %v3601_v29, %v3605_v14  ;;  %v3620_v54 = vrot.slane %v3618_v50, 4  ;;  %v3623_v35 = vrot.slane %v3621_v31, 5  ;;  %v3513_v25 = vld [vmem:[#allocation2 + $0x54] sm:$0xf] }
 0x14e   : > { %v6663_v45 = vcombine.low %v3582_v27, %v3592_v41  ;;  %v3611_v51 = vrot.slane %v3610_v30, 4  ;;  %7295 = vmatmul.mubr.msk.bf16.gmra.mrb[16].mxu1 %vm1414_vm9, %v7825_v39  ;;  %v3629_v52 = vrot.slane %v3627_v42, 5  ;;  %v3637_v32 = vshll.u32 %v8396_v38, 16  ;;  %v8437_v39 = vld [vmem:[%s9797_s2 + $0x18] sm:$0xf] }
 0x14f   : > { %7300 = vmatprep.mubr.msk.bf16.mxu1 %vm1414_vm9, %v6662_v24  ;;  %v3633_v55 = vrot.slane %v3631_v53, 4  ;;  %v3642_v57 = vshrl.u32 %v3507_v44, 16  ;;  %v3645_v58 = vshll.u32 %v3507_v44, 16  ;;  %v3624_v48 = vor.u32 %v3623_v35, %v3620_v54  ;;  %v7830_v44 = vld [vmem:[%s7950_s29 + $0x18] sm:$0xff]  }
 0x150   : > { %v3616_v43 = vsel %vm8374_vm15, %v3611_v51, %v3615_v36  ;;  %v3639_v62 = vrot.slane %v3637_v32, 5  ;;  %v3651_v63 = vshll.u32 %v8407_v33, 16  ;;  %v3655_v5 = vshrl.u32 %v8407_v33, 16  ;;  %v8432_v36 = vld [vmem:[#allocation2 + $0x58] sm:$0xf] }
 0x151   : > { %v6664_v59 = vcombine.low %v3606_v46, %v3616_v43  ;;  %v3634_v2 = vor.u32 %v3633_v55, %v3629_v52  ;;  %v3644_v3 = vrot.slane %v3642_v57, 4  ;;  %v3647_v4 = vrot.slane %v3645_v58, 5  ;;  %v8447_v54 = vld [vmem:[#allocation2 + $0x5c] sm:$0x1]  ;;  %v3516_v43 = vld [vmem:[#allocation2 + $0x60] sm:$0xf] }
 0x152   : > { %v3625_v9 = vrot.slane %v3624_v48, 4  ;;  %v3653_v10 = vrot.slane %v3651_v63, 5  ;;  %v3661_v11 = vshll.u32 %v8414_v56, 16  ;;  %v3666_v14 = vshrl.u32 %v3510_v34, 16  ;;  %v7831_v55 = vld [vmem:[%s7950_s29 + $0x20] sm:$0xff]  }
 0x153   : > { %v3635_v15 = vrot.slane %v3634_v2, 4  ;;  %v3648_v6 = vor.u32 %v3647_v4, %v3644_v3  ;;  %v3657_v17 = vrot.slane %v3655_v5, 4  ;;  %v3669_v28 = vshll.u32 %v3510_v34, 16 }
 0x154   : > { %7165 = vmatmul.mubr.msk.bf16.vlgmr.msra.gmra.mrb[32].mxu0 %vm363_vm1, %v7828_v47  ;;  %v3630_v19 = vsel %vm8374_vm15, %v3625_v9, %v3629_v52  ;;  %v3663_v21 = vrot.slane %v3661_v11, 5  ;;  %v3668_v22 = vrot.slane %v3666_v14, 4  ;;  %v3675_v24 = vshll.u32 %v8420_v8, 16  ;;  %v3518_v11 = vld [vmem:[#allocation2 + $0x68] sm:$0x1] }
 0x155   : > { %7168 = vmatprep.mubr.msk.bf16.mxu0 %vm363_vm1, %v7829_v1  ;;  %v3640_v26 = vsel %vm8374_vm15, %v3635_v15, %v3639_v62  ;;  %v3649_v27 = vrot.slane %v3648_v6, 4  ;;  %v3658_v29 = vor.u32 %v3657_v17, %v3653_v10  ;;  %v3671_v30 = vrot.slane %v3669_v28, 5 }
 0x156   : > { %7301 = vmatmul.mubr.msk.bf16.vlgmr.msra.gmra.mrb[20].mxu1 %vm1414_vm9, %v6663_v45  ;;  %v6665_v41 = vcombine.low %v3630_v19, %v3640_v26  ;;  %v3677_v50 = vrot.slane %v3675_v24, 5  ;;  %v3679_v31 = vshrl.u32 %v8420_v8, 16  ;;  %v3685_v42 = vshll.u32 %v8423_v18, 16 }
 0x157   : > { %7333 = vmatpush3.bf16.msra.mxu1 %v8359_v49  ;;  %7304 = vmatprep.mubr.msk.bf16.mxu1 %vm1414_vm9, %v6664_v59  ;;  %v3654_v46 = vsel %vm8374_vm15, %v3649_v27, %v3653_v10  ;;  %v3659_v51 = vrot.slane %v3658_v29, 4  ;;  %v3672_v53 = vor.u32 %v3671_v30, %v3668_v22  ;;  %v3690_v45 = vshrl.u32 %v3513_v25, 16  ;;  %v3517_v59 = vld [vmem:[#allocation2 + $0x64] sm:$0xf]  ;;  %v3520_v27 = vld [vmem:[#allocation2 + $0x70] sm:$0xf] }
 0x158   : > { %v3681_v35 = vrot.slane %v3679_v31, 4  ;;  %v3687_v52 = vrot.slane %v3685_v42, 5  ;;  %v3693_v32 = vshll.u32 %v3513_v25, 16  ;;  %v3699_v34 = vshll.u32 %v8432_v36, 16  ;;  %7767 = vmatprep.subr.msk.bf16.mxu1 %vm1463_vm8, %v8437_v39  ;;  %v7832_v42 = vld [vmem:[%s7950_s29 + $0x28] sm:$0xff]  }
 0x159   : > { %v3664_v49 = vsel %vm8374_vm15, %v3659_v51, %v3663_v21  ;;  %v3673_v57 = vrot.slane %v3672_v53, 4  ;;  %v3692_v58 = vrot.slane %v3690_v45, 4  ;;  %v3703_v47 = vshrl.u32 %v8432_v36, 16  ;;  %v3519_v21 = vld [vmem:[#allocation2 + $0x6c] sm:$0xf] }
 0x15a   : > { %v6666_v48 = vcombine.low %v3654_v46, %v3664_v49  ;;  %v3682_v62 = vor.u32 %v3681_v35, %v3677_v50  ;;  %v3695_v63 = vrot.slane %v3693_v32, 5  ;;  %v3701_v1 = vrot.slane %v3699_v34, 5  ;;  %v7833_v35 = vld [vmem:[%s7950_s29 + $0x30] sm:$0xff]  }
 0x15b   : > { %v3678_v2 = vsel %vm8374_vm15, %v3673_v57, %v3677_v50  ;;  %v3705_v3 = vrot.slane %v3703_v47, 4  ;;  %v3709_v4 = vshll.u32 %v8447_v54, 16  ;;  %v3714_v5 = vshrl.u32 %v3516_v43, 16  ;;  %v3523_v47 = vld [vmem:[#allocation2 + $0x7c] sm:$0xf] }
 0x15c   : > { %7169 = vmatmul.mubr.msk.bf16.gmra.mrb[36].mxu0 %vm363_vm1, %v7830_v44  ;;  %v3683_v9 = vrot.slane %v3682_v62, 4  ;;  %v3696_v10 = vor.u32 %v3695_v63, %v3692_v58  ;;  %v3717_v14 = vshll.u32 %v3516_v43, 16  ;;  %v3723_v15 = vshll.u32 %v3517_v59, 16  ;;  %v3522_v43 = vld [vmem:[#allocation2 + $0x78] sm:$0xf] }
 0x15d   : > { %7172 = vmatprep.mubr.msk.bf16.mxu0 %vm363_vm1, %v7831_v55  ;;  %v3706_v6 = vor.u32 %v3705_v3, %v3701_v1  ;;  %v3711_v17 = vrot.slane %v3709_v4, 5  ;;  %v3716_v28 = vrot.slane %v3714_v5, 4  ;;  %v3727_v19 = vshrl.u32 %v3517_v59, 16  ;;  %v3524_v3 = vld [vmem:[#allocation2 + $0x80] sm:$0x1] }
 0x15e   : > { %7305 = vmatmul.mubr.msk.bf16.gmra.mrb[24].mxu1 %vm1414_vm9, %v6665_v41  ;;  %v3688_v22 = vsel %vm8374_vm15, %v3683_v9, %v3687_v52  ;;  %v3697_v24 = vrot.slane %v3696_v10, 4  ;;  %v3719_v25 = vrot.slane %v3717_v14, 5  ;;  %v3725_v26 = vrot.slane %v3723_v15, 5  ;;  %v8468_v41 = vld [vmem:[#allocation2 + $0x74] sm:$0x1] }
 0x15f   : > { %7308 = vmatprep.mubr.msk.bf16.mxu1 %vm1414_vm9, %v6666_v48  ;;  %v6667_v29 = vcombine.low %v3678_v2, %v3688_v22  ;;  %v3707_v30 = vrot.slane %v3706_v6, 4  ;;  %v3729_v50 = vrot.slane %v3727_v19, 4  ;;  %v3733_v31 = vshll.u32 %v3518_v11, 16  ;;  %v3525_v15 = vld [vmem:[#allocation2 + $0x84] sm:$0xf] }
 0x160   : > { %v3702_v44 = vsel %vm8374_vm15, %v3697_v24, %v3701_v1  ;;  %v3720_v46 = vor.u32 %v3719_v25, %v3716_v28  ;;  %v3738_v51 = vshrl.u32 %v3519_v21, 16  ;;  %v3741_v53 = vshll.u32 %v3519_v21, 16  ;;  %v3526_v21 = vld [vmem:[#allocation2 + $0x88] sm:$0xf] }
 0x161   : > { %v3712_v45 = vsel %vm8374_vm15, %v3707_v30, %v3711_v17  ;;  %v3730_v52 = vor.u32 %v3729_v50, %v3725_v26  ;;  %v3735_v32 = vrot.slane %v3733_v31, 5  ;;  %v3747_v34 = vshll.u32 %v3520_v27, 16  ;;  %v3527_v31 = vld [vmem:[#allocation2 + $0x8c] sm:$0x1] }
 0x162   : > { %v6668_v49 = vcombine.low %v3702_v44, %v3712_v45  ;;  %v3721_v55 = vrot.slane %v3720_v46, 4  ;;  %v3740_v57 = vrot.slane %v3738_v51, 4  ;;  %v3743_v58 = vrot.slane %v3741_v53, 5  ;;  %v7835_v46 = vld [vmem:[%s7950_s29 + $0x40] sm:$0xff]  }
 0x163   : > { %v3731_v59 = vrot.slane %v3730_v52, 4  ;;  %v3749_v48 = vrot.slane %v3747_v34, 5  ;;  %v3751_v62 = vshrl.u32 %v3520_v27, 16  ;;  %v3757_v63 = vshll.u32 %v8468_v41, 16  ;;  %v7834_v27 = vld [vmem:[%s7950_s29 + $0x38] sm:$0xff]  }
 0x164   : > { %7173 = vmatmul.mubr.msk.bf16.gmra.mrb[40].mxu0 %vm363_vm1, %v7832_v42  ;;  %v3726_v1 = vsel %vm8374_vm15, %v3721_v55, %v3725_v26  ;;  %v3744_v2 = vor.u32 %v3743_v58, %v3740_v57  ;;  %v3762_v4 = vshrl.u32 %v3522_v43, 16  ;;  %v3765_v5 = vshll.u32 %v3522_v43, 16  ;;  %v3528_v43 = vld [vmem:[#allocation2 + $0x90] sm:$0xf] }
 0x165   : > { %7176 = vmatprep.mubr.msk.bf16.mxu0 %vm363_vm1, %v7833_v35  ;;  %v3736_v9 = vsel %vm8374_vm15, %v3731_v59, %v3735_v32  ;;  %v3753_v10 = vrot.slane %v3751_v62, 4  ;;  %v3759_v11 = vrot.slane %v3757_v63, 5  ;;  %v3771_v14 = vshll.u32 %v3523_v47, 16 }
 0x166   : > { %7309 = vmatmul.mubr.msk.bf16.gmra.mrb[28].mxu1 %vm1414_vm9, %v6667_v29  ;;  %v6669_v6 = vcombine.low %v3726_v1, %v3736_v9  ;;  %v3745_v17 = vrot.slane %v3744_v2, 4  ;;  %v3764_v28 = vrot.slane %v3762_v4, 4  ;;  %v3767_v19 = vrot.slane %v3765_v5, 5  ;;  %v3530_v1 = vld [vmem:[#allocation2 + $0x98] sm:$0x1] }
 0x167   : > { %7312 = vmatprep.mubr.msk.bf16.mxu1 %vm1414_vm9, %v6668_v49  ;;  %v3754_v22 = vor.u32 %v3753_v10, %v3749_v48  ;;  %v3773_v24 = vrot.slane %v3771_v14, 5  ;;  %v3775_v25 = vshrl.u32 %v3523_v47, 16  ;;  %v3781_v26 = vshll.u32 %v3524_v3, 16  ;;  %v3529_v47 = vld [vmem:[#allocation2 + $0x94] sm:$0xf] }
 0x168   : > { %v3750_v30 = vsel %vm8374_vm15, %v3745_v17, %v3749_v48  ;;  %v3768_v50 = vor.u32 %v3767_v19, %v3764_v28  ;;  %v3786_v42 = vshrl.u32 %v3525_v15, 16  ;;  %v3789_v29 = vshll.u32 %v3525_v15, 16  ;;  %v3531_v15 = vld [vmem:[#allocation2 + $0x9c] sm:$0xf] }
 0x169   : > { %v3755_v44 = vrot.slane %v3754_v22, 4  ;;  %v3777_v51 = vrot.slane %v3775_v25, 4  ;;  %v3783_v53 = vrot.slane %v3781_v26, 5  ;;  %v3795_v45 = vshll.u32 %v3526_v21, 16  ;;  %v3532_v22 = vld [vmem:[#allocation2 + $0xa0] sm:$0xf] }
 0x16a   : > { %v3769_v35 = vrot.slane %v3768_v50, 4  ;;  %v3788_v52 = vrot.slane %v3786_v42, 4  ;;  %v3791_v32 = vrot.slane %v3789_v29, 5  ;;  %v3799_v34 = vshrl.u32 %v3526_v21, 16  ;;  %v3533_v29 = vld [vmem:[#allocation2 + $0xa4] sm:$0x1] }
 0x16b   : > { %v3760_v49 = vsel %vm8374_vm15, %v3755_v44, %v3759_v11  ;;  %v3778_v55 = vor.u32 %v3777_v51, %v3773_v24  ;;  %v3797_v57 = vrot.slane %v3795_v45, 5  ;;  %v3805_v58 = vshll.u32 %v3527_v31, 16 }
 0x16c   : > { %7177 = vmatmul.mubr.msk.bf16.gmra.mrb[44].mxu0 %vm363_vm1, %v7834_v27  ;;  %v6670_v59 = vcombine.low %v3750_v30, %v3760_v49  ;;  %v3774_v48 = vsel %vm8374_vm15, %v3769_v35, %v3773_v24  ;;  %v3792_v62 = vor.u32 %v3791_v32, %v3788_v52  ;;  %v3801_v63 = vrot.slane %v3799_v34, 4  ;;  %v7836_v24 = vld [vmem:[%s7950_s29 + $0x48] sm:$0xff]   ;;  %v7837_v30 = vld [vmem:[%s7950_s29 + $0x50] sm:$0xff]  }
 0x16d   : > { %7180 = vmatprep.mubr.msk.bf16.mxu0 %vm363_vm1, %v7835_v46  ;;  %v3779_v2 = vrot.slane %v3778_v55, 4  ;;  %v3807_v3 = vrot.slane %v3805_v58, 5  ;;  %v3810_v4 = vshrl.u32 %v3528_v43, 16  ;;  %v3813_v5 = vshll.u32 %v3528_v43, 16  ;;  %v3534_v35 = vld [vmem:[#allocation2 + $0xa8] sm:$0xf] }
 0x16e   : > { %7313 = vmatmul.mubr.msk.bf16.gmra.mrb[0].mxu1 %vm1414_vm9, %v6669_v6  ;;  %v3793_v9 = vrot.slane %v3792_v62, 4  ;;  %v3802_v10 = vor.u32 %v3801_v63, %v3797_v57  ;;  %v3819_v11 = vshll.u32 %v3529_v47, 16  ;;  %v3823_v14 = vshrl.u32 %v3529_v47, 16  ;;  %v3535_v49 = vld [vmem:[#allocation2 + $0xac] sm:$0xf] }
 0x16f   : > { %7316 = vmatprep.mubr.msk.bf16.mxu1 %vm1414_vm9, %v6670_v59  ;;  %v3784_v17 = vsel %vm8374_vm15, %v3779_v2, %v3783_v53  ;;  %v3812_v28 = vrot.slane %v3810_v4, 4  ;;  %v3815_v19 = vrot.slane %v3813_v5, 5  ;;  %v3829_v21 = vshll.u32 %v3530_v1, 16  ;;  %v3536_v4 = vld [vmem:[#allocation2 + $0xb0] sm:$0x1] }
 0x170   : > { %v6671_v25 = vcombine.low %v3774_v48, %v3784_v17  ;;  %v3798_v6 = vsel %vm8374_vm15, %v3793_v9, %v3797_v57  ;;  %v3803_v26 = vrot.slane %v3802_v10, 4  ;;  %v3821_v27 = vrot.slane %v3819_v11, 5  ;;  %v3537_v9 = vld [vmem:[#allocation2 + $0xb4] sm:$0xf]  ;;  %v3538_v17 = vld [vmem:[#allocation2 + $0xb8] sm:$0xf] }
 0x171   : > { %v3816_v50 = vor.u32 %v3815_v19, %v3812_v28  ;;  %v3825_v31 = vrot.slane %v3823_v14, 4  ;;  %v3831_v42 = vrot.slane %v3829_v21, 5  ;;  %v3834_v44 = vshrl.u32 %v3531_v15, 16  ;;  %v7838_v28 = vld [vmem:[%s7950_s29 + $0x58] sm:$0xff]  }
 0x172   : > { %v3808_v46 = vsel %vm8374_vm15, %v3803_v26, %v3807_v3  ;;  %v3837_v51 = vshll.u32 %v3531_v15, 16  ;;  %v3843_v53 = vshll.u32 %v3532_v22, 16  ;;  %v3847_v45 = vshrl.u32 %v3532_v22, 16 }
 0x173   : > { %v6672_v52 = vcombine.low %v3798_v6, %v3808_v46  ;;  %v3817_v32 = vrot.slane %v3816_v50, 4  ;;  %v3826_v34 = vor.u32 %v3825_v31, %v3821_v27  ;;  %v3836_v43 = vrot.slane %v3834_v44, 4  ;;  %v3540_v46 = vld [vmem:[#allocation2 + $0xc0] sm:$0xf] }
 0x174   : > { %7181 = vmatmul.mubr.msk.bf16.gmra.mrb[48].mxu0 %vm363_vm1, %v7836_v24  ;;  %v3839_v55 = vrot.slane %v3837_v51, 5  ;;  %v3845_v57 = vrot.slane %v3843_v53, 5  ;;  %v3849_v58 = vrot.slane %v3847_v45, 4  ;;  %v3853_v47 = vshll.u32 %v3533_v29, 16 }
 0x175   : > { %7184 = vmatprep.mubr.msk.bf16.mxu0 %vm363_vm1, %v7837_v30  ;;  %v3822_v59 = vsel %vm8374_vm15, %v3817_v32, %v3821_v27  ;;  %v3827_v48 = vrot.slane %v3826_v34, 4  ;;  %v3858_v62 = vshrl.u32 %v3534_v35, 16  ;;  %v3861_v63 = vshll.u32 %v3534_v35, 16 }
 0x176   : > { %7317 = vmatmul.mubr.msk.bf16.gmra.mrb[4].mxu1 %vm1414_vm9, %v6671_v25  ;;  %v3840_v1 = vor.u32 %v3839_v55, %v3836_v43  ;;  %v3850_v2 = vor.u32 %v3849_v58, %v3845_v57  ;;  %v3855_v3 = vrot.slane %v3853_v47, 5  ;;  %v3867_v5 = vshll.u32 %v3535_v49, 16  ;;  %v7839_v25 = vld [vmem:[%s7950_s29 + $0x60] sm:$0xff]  }
 0x177   : > { %7320 = vmatprep.mubr.msk.bf16.mxu1 %vm1414_vm9, %v6672_v52  ;;  %v3832_v10 = vsel %vm8374_vm15, %v3827_v48, %v3831_v42  ;;  %v3860_v11 = vrot.slane %v3858_v62, 4  ;;  %v3863_v14 = vrot.slane %v3861_v63, 5  ;;  %v3871_v15 = vshrl.u32 %v3535_v49, 16  ;;  %v3539_v42 = vld [vmem:[#allocation2 + $0xbc] sm:$0x1] }
 0x178   : > { %v6673_v19 = vcombine.low %v3822_v59, %v3832_v10  ;;  %v3841_v21 = vrot.slane %v3840_v1, 4  ;;  %v3851_v22 = vrot.slane %v3850_v2, 4  ;;  %v3869_v24 = vrot.slane %v3867_v5, 5  ;;  %v3541_v52 = vld [vmem:[#allocation2 + $0xc4] sm:$0xf] }
 0x179   : > { %v3864_v6 = vor.u32 %v3863_v14, %v3860_v11  ;;  %v3873_v26 = vrot.slane %v3871_v15, 4  ;;  %v3877_v27 = vshll.u32 %v3536_v4, 16  ;;  %v3882_v30 = vshrl.u32 %v3537_v9, 16  ;;  %v4221_v59 = vld [vmem:[#allocation2 + $0xc] sm:$0xe] }
 0x17a   : > { %v3846_v50 = vsel %vm8374_vm15, %v3841_v21, %v3845_v57  ;;  %v3856_v31 = vsel %vm8374_vm15, %v3851_v22, %v3855_v3  ;;  %v3885_v29 = vshll.u32 %v3537_v9, 16  ;;  %v3891_v44 = vshll.u32 %v3538_v17, 16  ;;  %v3542_v63 = vld [vmem:[#allocation2 + $0xc8] sm:$0x1]  ;;  %v7841_v9 = vld [vmem:[%s7950_s29 + $0x70] sm:$0xff]  }
 0x17b   : > { %v6674_v51 = vcombine.low %v3846_v50, %v3856_v31  ;;  %v3865_v53 = vrot.slane %v3864_v6, 4  ;;  %v3874_v45 = vor.u32 %v3873_v26, %v3869_v24  ;;  %v3879_v35 = vrot.slane %v3877_v27, 5  ;;  %v7840_v3 = vld [vmem:[%s7950_s29 + $0x68] sm:$0xff]   ;;  %v1935_v21 = vld [vmem:[#allocation2] sm:$0xf] }
 0x17c   : > { %7185 = vmatmul.mubr.msk.bf16.gmra.mrb[52].mxu0 %vm363_vm1, %v7838_v28  ;;  %v3884_v32 = vrot.slane %v3882_v30, 4  ;;  %v3887_v34 = vrot.slane %v3885_v29, 5  ;;  %v3893_v43 = vrot.slane %v3891_v44, 5  ;;  %v3895_v49 = vshrl.u32 %v3538_v17, 16 }
 0x17d   : > { %7188 = vmatprep.mubr.msk.bf16.mxu0 %vm363_vm1, %v7839_v25  ;;  %v3870_v55 = vsel %vm8374_vm15, %v3865_v53, %v3869_v24  ;;  %v3875_v57 = vrot.slane %v3874_v45, 4  ;;  %v3901_v58 = vshll.u32 %v3539_v42, 16  ;;  %v3906_v47 = vshrl.u32 %v3540_v46, 16  ;;  %v1936_v42 = vld [vmem:[#allocation2 + $0x4] sm:$0xf] }
 0x17e   : > { %7321 = vmatmul.mubr.msk.bf16.gmra.mrb[8].mxu1 %vm1414_vm9, %v6673_v19  ;;  %v3888_v48 = vor.u32 %v3887_v34, %v3884_v32  ;;  %v3897_v62 = vrot.slane %v3895_v49, 4  ;;  %v3909_v1 = vshll.u32 %v3540_v46, 16  ;;  %v3915_v2 = vshll.u32 %v3541_v52, 16  ;;  %v677_v19 = vld [vmem:[#allocation2 + $0x8] sm:$0x1] }
 0x17f   : > { %7324 = vmatprep.mubr.msk.bf16.mxu1 %vm1414_vm9, %v6674_v51  ;;  %v3880_v4 = vsel %vm8374_vm15, %v3875_v57, %v3879_v35  ;;  %v3903_v5 = vrot.slane %v3901_v58, 5  ;;  %v3908_v10 = vrot.slane %v3906_v47, 4  ;;  %v3919_v11 = vshrl.u32 %v3541_v52, 16  ;;  %v7865_v51 = vld [vmem:[%s9797_s2 + $0x4] sm:$0xf] }
 0x180   : > { %v6675_v14 = vcombine.low %v3870_v55, %v3880_v4  ;;  %v3889_v15 = vrot.slane %v3888_v48, 4  ;;  %v3898_v17 = vor.u32 %v3897_v62, %v3893_v43  ;;  %v3911_v28 = vrot.slane %v3909_v1, 5  ;;  %v1938_v45 = vld [vmem:[#allocation2 + $0xc] sm:$0xf]  ;;  %v6579_v35 = vld [vmem:[%s9797_s2 + $0x8] sm:$0xf] }
 0x181   : > { %v3917_v22 = vrot.slane %v3915_v2, 5  ;;  %v3921_v24 = vrot.slane %v3919_v11, 4  ;;  %v3925_v25 = vshll.u32 %v3542_v63, 16  ;;  %v6695_v26 = vrot.slane %v4221_v59, 9  ;;  %v1939_v34 = vld [vmem:[#allocation2 + $0x10] sm:$0xf] }
 0x182   : > { %v3894_v27 = vsel %vm8374_vm15, %v3889_v15, %v3893_v43  ;;  %v3899_v30 = vrot.slane %v3898_v17, 4  ;;  %v3912_v50 = vor.u32 %v3911_v28, %v3908_v10  ;;  %v4289_v31 = vrot.slane %v8336_v0, 5  ;;  %v1940_v62 = vld [vmem:[#allocation2 + $0x14] sm:$0x1]  ;;  %v1941_v4 = vld [vmem:[#allocation2 + $0x18] sm:$0xf] }
 0x183   : > { %v3922_v29 = vor.u32 %v3921_v24, %v3917_v22  ;;  %v3927_v44 = vrot.slane %v3925_v25, 5  ;;  %v4292_v46 = vrot.slane %v8339_v7, 5  ;;  %v2469_v53 = vsel %vm1463_vm8, %v7865_v51, 0  ;;  %v8561_v15 = vld [vmem:[#allocation2 + $0x1c] sm:$0xf] }
 0x184   : > { %7189 = vmatmul.mubr.msk.bf16.gmra.mrb[56].mxu0 %vm363_vm1, %v7840_v3  ;;  %v3904_v0 = vsel %vm8374_vm15, %v3899_v30, %v3903_v5  ;;  %v3913_v52 = vrot.slane %v3912_v50, 4  ;;  %v4290_v7 = vsel %vm8528_vm3, %v6695_v26, %v4289_v31  ;;  %v4291_v32 = vrot.slane %v4289_v31, 4  ;;  %v7842_v5 = vld [vmem:[%s7950_s29 + $0x78] sm:$0xff]  }
 0x185   : > { %v6676_v43 = vcombine.low %v3894_v27, %v3904_v0  ;;  %7192 = vmatprep.mubr.msk.bf16.mxu0 %vm363_vm1, %v7841_v9  ;;  %v3923_v49 = vrot.slane %v3922_v29, 4  ;;  %7197 = vmatpush3.bf16.msra.mxu0 %v2469_v53  ;;  %v678_v55 = vsel %vm7996_vm6, 0, %v677_v19  ;;  %v1989_v57 = vshrl.u32 %v1935_v21, 16  ;;  %v4222_v53 = vld [vmem:[#allocation2 + $0x18] sm:$0xe] }
 0x186   : > { %7325 = vmatmul.mubr.msk.bf16.gmra.mrb[12].mxu1 %vm1414_vm9, %v6675_v14  ;;  %v3918_v58 = vsel %vm8374_vm15, %v3913_v52, %v3917_v22  ;;  %v4293_v47 = vsel %vm8528_vm3, %v4291_v32, %v4292_v46  ;;  %679 = vst [vmem:[#allocation2 + $0x8] sm:$0x1] %v678_v55  ;;  %v1992_v59 = vshll.u32 %v1935_v21, 16  ;;  %v1998_v48 = vshll.u32 %v1936_v42, 16  ;;  %7762 = vmatprep.subr.msk.bf16.mxu0 %vm1463_vm8, %v6579_v35 }
 0x187   : > { %7328 = vmatprep.mubr.msk.bf16.mxu1 %vm1414_vm9, %v6676_v43  ;;  %v3928_v63 = vsel %vm8374_vm15, %v3923_v49, %v3927_v44  ;;  %v6711_v1 = vcombine.low %v4290_v7, %v4293_v47  ;;  %v1991_v2 = vrot.slane %v1989_v57, 4  ;;  %v2002_v3 = vshrl.u32 %v1936_v42, 16  ;;  %v8563_v42 = vld [vmem:[#allocation2 + $0x20] sm:$0x1] }
 0x188   : > { %v6677_v9 = vcombine.low %v3918_v58, %v3928_v63  ;;  %v1994_v10 = vrot.slane %v1992_v59, 5  ;;  %v2000_v11 = vrot.slane %v1998_v48, 5  ;;  %v2013_v14 = vshrl.u32 %v1938_v45, 16  ;;  %v4223_v59 = vld [vmem:[#allocation2 + $0x24] sm:$0xe] }
 0x189   : > { %v2004_v17 = vrot.slane %v2002_v3, 4  ;;  %v2016_v28 = vshll.u32 %v1938_v45, 16  ;;  %v2022_v19 = vshll.u32 %v1939_v34, 16  ;;  %v2026_v21 = vshrl.u32 %v1939_v34, 16 }
 0x18a   : > { %v1995_v22 = vor.u32 %v1994_v10, %v1991_v2  ;;  %v2015_v24 = vrot.slane %v2013_v14, 4  ;;  %v2032_v25 = vshll.u32 %v1940_v62, 16  ;;  %v2037_v26 = vshrl.u32 %v1941_v4, 16  ;;  %v8581_v10 = vld [vmem:[#allocation2 + $0x28] sm:$0xf] }
 0x18b   : > { %v2005_v27 = vor.u32 %v2004_v17, %v2000_v11  ;;  %v2018_v30 = vrot.slane %v2016_v28, 5  ;;  %v2024_v50 = vrot.slane %v2022_v19, 5  ;;  %v2028_v31 = vrot.slane %v2026_v21, 4 }
 0x18c   : > { %7193 = vmatmul.mubr.msk.bf16.gmra.mrb[60].mxu0 %vm363_vm1, %v7842_v5  ;;  %v1996_v29 = vrot.slane %v1995_v22, 4  ;;  %v2034_v44 = vrot.slane %v2032_v25, 5  ;;  %v2039_v46 = vrot.slane %v2037_v26, 4  ;;  %v2040_v51 = vshll.u32 %v1941_v4, 16  ;;  %v8588_v25 = vld [vmem:[#allocation2 + $0x2c] sm:$0x1] }
 0x18d   : > { %v8566_v45 = vld [vmem:[#allocation2 + $0x8] sm:$0x1]  ;;  %v2006_v35 = vrot.slane %v2005_v27, 4  ;;  %v2019_v0 = vor.u32 %v2018_v30, %v2015_v24  ;;  %v2029_v52 = vor.u32 %v2028_v31, %v2024_v50  ;;  %v2046_v7 = vshll.u32 %v8561_v15, 16  ;;  %v8594_v31 = vld [vmem:[#allocation2 + $0x34] sm:$0xf] }
 0x18e   : > { %7329 = vmatmul.mubr.msk.bf16.gmra.mrb[16].mxu1 %vm1414_vm9, %v6677_v9  ;;  %v2001_v32 = vsel %vm8374_vm15, %v1996_v29, %v2000_v11  ;;  %v2008_v34 = vshll.u32 %v8566_v45, 16  ;;  %v2042_v43 = vrot.slane %v2040_v51, 5  ;;  %v2050_v49 = vshrl.u32 %v8561_v15, 16  ;;  %v8604_v51 = vld [vmem:[%s9797_s2 + $0x1c] sm:$0xf] }
 0x18f   : > { %7334 = vmatprep.mubr.msk.bf16.mxu1 %vm1414_vm9, %v6711_v1  ;;  %v2020_v55 = vrot.slane %v2019_v0, 4  ;;  %v2030_v57 = vrot.slane %v2029_v52, 4  ;;  %v2048_v58 = vrot.slane %v2046_v7, 5  ;;  %v2056_v47 = vshll.u32 %v8563_v42, 16  ;;  %v1944_v1 = vld [vmem:[#allocation2 + $0x24] sm:$0xf] }
 0x190   : > { %v2010_v48 = vrot.slane %v2008_v34, 5  ;;  %v2043_v62 = vor.u32 %v2042_v43, %v2039_v46  ;;  %v2052_v63 = vrot.slane %v2050_v49, 4  ;;  %v6696_v2 = vrot.slane %v4222_v53, 9 }
 0x191   : > { %v2025_v3 = vsel %vm8374_vm15, %v2020_v55, %v2024_v50  ;;  %v2035_v4 = vsel %vm8374_vm15, %v2030_v57, %v2034_v44  ;;  %v2058_v5 = vrot.slane %v2056_v47, 5  ;;  %v4296_v9 = vrot.slane %v8349_v61, 5  ;;  %v1947_v50 = vld [vmem:[#allocation2 + $0x30] sm:$0xf]  ;;  %v8615_v55 = vld [vmem:[#allocation2 + $0x38] sm:$0x1] }
 0x192   : > { %v2011_v11 = vsel %vm8374_vm15, %v2006_v35, %v2010_v48  ;;  %v6548_v14 = vcombine.low %v2025_v3, %v2035_v4  ;;  %v2044_v17 = vrot.slane %v2043_v62, 4  ;;  %v2053_v28 = vor.u32 %v2052_v63, %v2048_v58  ;;  %v4224_v48 = vld [vmem:[#allocation2 + $0x30] sm:$0xe]  ;;  %v4225_v4 = vld [vmem:[#allocation2 + $0x3c] sm:$0xe] }
 0x193   : > { %v6547_v19 = vcombine.low %v2001_v32, %v2011_v11  ;;  %v4297_v21 = vsel %vm8528_vm3, %v6696_v2, %v4296_v9  ;;  %v4298_v22 = vrot.slane %v4296_v9, 4  ;;  %v4299_v24 = vrot.slane %v8351_v37, 5 }
 0x194   : > { %v2049_v61 = vsel %vm8374_vm15, %v2044_v17, %v2048_v58  ;;  %v2054_v26 = vrot.slane %v2053_v28, 4  ;;  %v4855_v27 = vsel %vm1463_vm8, %v8437_v39, 0  ;;  %v6697_v30 = vrot.slane %v4223_v59, 9 }
 0x195   : > { %7198 = vmatprep.mubr.msk.bf16.mxu0 %vm1414_vm9, %v6547_v19  ;;  %v4300_v29 = vsel %vm8528_vm3, %v4298_v22, %v4299_v24  ;;  %v4303_v37 = vrot.slane %v8367_v40, 5  ;;  %v4306_v44 = vrot.slane %v8382_v60, 5  ;;  %v2061_v46 = vshrl.u32 %v1944_v1, 16 }
 0x196   : > { %7199 = vmatmul.mubr.msk.bf16.vlgmr.msra.gmra.mrb[32].mxu0 %vm1414_vm9, %v6548_v14  ;;  %v2059_v39 = vsel %vm8374_vm15, %v2054_v26, %v2058_v5  ;;  %v6712_v53 = vcombine.low %v4297_v21, %v4300_v29  ;;  %v2064_v35 = vshll.u32 %v1944_v1, 16  ;;  %v2070_v0 = vshll.u32 %v8581_v10, 16  ;;  %v1950_v14 = vld [vmem:[#allocation2 + $0x3c] sm:$0xf] }
 0x197   : > { %v6549_v52 = vcombine.low %v2049_v61, %v2059_v39  ;;  %v4304_v40 = vsel %vm8528_vm3, %v6697_v30, %v4303_v37  ;;  %v4305_v60 = vrot.slane %v4303_v37, 4  ;;  %v2063_v7 = vrot.slane %v2061_v46, 4 }
 0x198   : > { %7335 = vmatmul.mubr.msk.bf16.vlgmr.msra.gmra.mrb[20].mxu1 %vm1414_vm9, %v6712_v53  ;;  %v2066_v32 = vrot.slane %v2064_v35, 5  ;;  %v2072_v34 = vrot.slane %v2070_v0, 5  ;;  %v2074_v43 = vshrl.u32 %v8581_v10, 16  ;;  %v2080_v49 = vshll.u32 %v8588_v25, 16  ;;  %v8632_v53 = vld [vmem:[#allocation2 + $0x40] sm:$0xf] }
 0x199   : > { %7202 = vmatprep.mubr.msk.bf16.mxu0 %vm1414_vm9, %v6549_v52  ;;  %7367 = vmatpush3.bf16.msra.mxu1 %v4855_v27  ;;  %v4307_v57 = vsel %vm8528_vm3, %v4305_v60, %v4306_v44  ;;  %v2085_v58 = vshrl.u32 %v1947_v50, 16  ;;  %v2088_v47 = vshll.u32 %v1947_v50, 16  ;;  %v2094_v59 = vshll.u32 %v8594_v31, 16  ;;  %v8638_v0 = vld [vmem:[#allocation2 + $0x44] sm:$0x1] }
 0x19a   : > { %v6713_v62 = vcombine.low %v4304_v40, %v4307_v57  ;;  %v2067_v63 = vor.u32 %v2066_v32, %v2063_v7  ;;  %v2076_v2 = vrot.slane %v2074_v43, 4  ;;  %v2082_v3 = vrot.slane %v2080_v49, 5  ;;  %7768 = vmatprep.subr.msk.bf16.mxu1 %vm1463_vm8, %v8604_v51  ;;  %v8644_v43 = vld [vmem:[#allocation2 + $0x4c] sm:$0xf] }
 0x19b   : > { %v2087_v5 = vrot.slane %v2085_v58, 4  ;;  %v2090_v9 = vrot.slane %v2088_v47, 5  ;;  %v2096_v1 = vrot.slane %v2094_v59, 5  ;;  %v2098_v11 = vshrl.u32 %v8594_v31, 16 }
 0x19c   : > { %7338 = vmatprep.mubr.msk.bf16.mxu1 %vm1414_vm9, %v6713_v62  ;;  %v2068_v17 = vrot.slane %v2067_v63, 4  ;;  %v2077_v28 = vor.u32 %v2076_v2, %v2072_v34  ;;  %v2104_v19 = vshll.u32 %v8615_v55, 16  ;;  %v6698_v21 = vrot.slane %v4224_v48, 9 }
 0x19d   : > { %v2091_v22 = vor.u32 %v2090_v9, %v2087_v5  ;;  %v2100_v24 = vrot.slane %v2098_v11, 4  ;;  %v4310_v61 = vrot.slane %v8391_v16, 5  ;;  %v4313_v26 = vrot.slane %v8396_v38, 5 }
 0x19e   : > { %v2073_v27 = vsel %vm8374_vm15, %v2068_v17, %v2072_v34  ;;  %v2078_v30 = vrot.slane %v2077_v28, 4  ;;  %v2106_v50 = vrot.slane %v2104_v19, 5  ;;  %v6699_v29 = vrot.slane %v4225_v4, 9  ;;  %v1953_v34 = vld [vmem:[#allocation2 + $0x48] sm:$0xf] }
 0x19f   : > { %v2092_v37 = vrot.slane %v2091_v22, 4  ;;  %v2101_v44 = vor.u32 %v2100_v24, %v2096_v1  ;;  %v4311_v46 = vsel %vm8528_vm3, %v6698_v21, %v4310_v61  ;;  %v4312_v39 = vrot.slane %v4310_v61, 4 }
 0x1a0   : > { %v2083_v35 = vsel %vm8374_vm15, %v2078_v30, %v2082_v3  ;;  %v4317_v16 = vrot.slane %v8407_v33, 5  ;;  %v4320_v38 = vrot.slane %v8414_v56, 5  ;;  %v2109_v52 = vshrl.u32 %v1950_v14, 16  ;;  %v8657_v3 = vld [vmem:[#allocation2 + $0x50] sm:$0x1] }
 0x1a1   : > { %v6550_v40 = vcombine.low %v2073_v27, %v2083_v35  ;;  %v2097_v60 = vsel %vm8374_vm15, %v2092_v37, %v2096_v1  ;;  %v2102_v7 = vrot.slane %v2101_v44, 4  ;;  %v4314_v32 = vsel %vm8528_vm3, %v4312_v39, %v4313_v26  ;;  %v4227_v27 = vld [vmem:[#allocation2 + $0x54] sm:$0xe] }
 0x1a2   : > { %v6714_v49 = vcombine.low %v4311_v46, %v4314_v32  ;;  %v4318_v33 = vsel %vm8528_vm3, %v6699_v29, %v4317_v16  ;;  %v4319_v57 = vrot.slane %v4317_v16, 4  ;;  %v2111_v56 = vrot.slane %v2109_v52, 4  ;;  %v1956_v44 = vld [vmem:[#allocation2 + $0x54] sm:$0xf] }
 0x1a3   : > { %7203 = vmatmul.mubr.msk.bf16.gmra.mrb[36].mxu0 %vm1414_vm9, %v6550_v40  ;;  %v2107_v58 = vsel %vm8374_vm15, %v2102_v7, %v2106_v50  ;;  %v2112_v47 = vshll.u32 %v1950_v14, 16  ;;  %v2118_v59 = vshll.u32 %v8632_v53, 16  ;;  %v2122_v48 = vshrl.u32 %v8632_v53, 16  ;;  %v4226_v14 = vld [vmem:[#allocation2 + $0x48] sm:$0xe] }
 0x1a4   : > { %v6551_v62 = vcombine.low %v2097_v60, %v2107_v58  ;;  %7339 = vmatmul.mubr.msk.bf16.gmra.mrb[24].mxu1 %vm1414_vm9, %v6714_v49  ;;  %v4321_v63 = vsel %vm8528_vm3, %v4319_v57, %v4320_v38  ;;  %v2128_v2 = vshll.u32 %v8638_v0, 16  ;;  %v2133_v4 = vshrl.u32 %v1953_v34, 16  ;;  %v8675_v58 = vld [vmem:[#allocation2 + $0x58] sm:$0xf] }
 0x1a5   : > { %v6715_v5 = vcombine.low %v4318_v33, %v4321_v63  ;;  %v2114_v9 = vrot.slane %v2112_v47, 5  ;;  %v2120_v1 = vrot.slane %v2118_v59, 5  ;;  %v2124_v11 = vrot.slane %v2122_v48, 4  ;;  %v8678_v48 = vld [vmem:[#allocation2 + $0x5c] sm:$0x1] }
 0x1a6   : > { %7206 = vmatprep.mubr.msk.bf16.mxu0 %vm1414_vm9, %v6551_v62  ;;  %v2130_v17 = vrot.slane %v2128_v2, 5  ;;  %v2135_v28 = vrot.slane %v2133_v4, 4  ;;  %v2136_v19 = vshll.u32 %v1953_v34, 16  ;;  %v2142_v21 = vshll.u32 %v8644_v43, 16 }
 0x1a7   : > { %7342 = vmatprep.mubr.msk.bf16.mxu1 %vm1414_vm9, %v6715_v5  ;;  %v2115_v22 = vor.u32 %v2114_v9, %v2111_v56  ;;  %v2125_v24 = vor.u32 %v2124_v11, %v2120_v1  ;;  %v2146_v61 = vshrl.u32 %v8644_v43, 16  ;;  %v2152_v26 = vshll.u32 %v8657_v3, 16  ;;  %v8685_v9 = vld [vmem:[#allocation2 + $0x64] sm:$0xf] }
 0x1a8   : > { %v2138_v30 = vrot.slane %v2136_v19, 5  ;;  %v2144_v50 = vrot.slane %v2142_v21, 5  ;;  %v6700_v29 = vrot.slane %v4226_v14, 9  ;;  %v4324_v37 = vrot.slane %v8420_v8, 5 }
 0x1a9   : > { %v2116_v46 = vrot.slane %v2115_v22, 4  ;;  %v2126_v39 = vrot.slane %v2125_v24, 4  ;;  %v2148_v35 = vrot.slane %v2146_v61, 4  ;;  %v2154_v16 = vrot.slane %v2152_v26, 5 }
 0x1aa   : > { %v2139_v38 = vor.u32 %v2138_v30, %v2135_v28  ;;  %v4325_v52 = vsel %vm8528_vm3, %v6700_v29, %v4324_v37  ;;  %v4326_v40 = vrot.slane %v4324_v37, 4  ;;  %v4327_v60 = vrot.slane %v8423_v18, 5  ;;  %v4228_v30 = vld [vmem:[#allocation2 + $0x60] sm:$0xe] }
 0x1ab   : > { %v2121_v7 = vsel %vm8374_vm15, %v2116_v46, %v2120_v1  ;;  %v2131_v32 = vsel %vm8374_vm15, %v2126_v39, %v2130_v17  ;;  %v2149_v34 = vor.u32 %v2148_v35, %v2144_v50  ;;  %v6701_v8 = vrot.slane %v4227_v27, 9  ;;  %v8692_v17 = vld [vmem:[#allocation2 + $0x68] sm:$0x1] }
 0x1ac   : > { %v6552_v49 = vcombine.low %v2121_v7, %v2131_v32  ;;  %v2140_v33 = vrot.slane %v2139_v38, 4  ;;  %v4328_v57 = vsel %vm8528_vm3, %v4326_v40, %v4327_v60  ;;  %v4331_v56 = vrot.slane %v8432_v36, 5  ;;  %v1959_v36 = vld [vmem:[#allocation2 + $0x60] sm:$0xf]  ;;  %v4229_v38 = vld [vmem:[#allocation2 + $0x6c] sm:$0xe] }
 0x1ad   : > { %v2150_v47 = vrot.slane %v2149_v34, 4  ;;  %v6716_v59 = vcombine.low %v4325_v52, %v4328_v57  ;;  %v4334_v18 = vrot.slane %v8447_v54, 5  ;;  %v2157_v62 = vshrl.u32 %v1956_v44, 16 }
 0x1ae   : > { %7207 = vmatmul.mubr.msk.bf16.gmra.mrb[40].mxu0 %vm1414_vm9, %v6552_v49  ;;  %v2145_v63 = vsel %vm8374_vm15, %v2140_v33, %v2144_v50  ;;  %v4332_v2 = vsel %vm8528_vm3, %v6701_v8, %v4331_v56  ;;  %v4333_v4 = vrot.slane %v4331_v56, 4  ;;  %v2160_v5 = vshll.u32 %v1956_v44, 16  ;;  %v7866_v49 = vld [vmem:[#allocation2 + $0x64] sm:$0xf] }
 0x1af   : > { %v2155_v1 = vsel %vm8374_vm15, %v2150_v47, %v2154_v16  ;;  %7343 = vmatmul.mubr.msk.bf16.gmra.mrb[28].mxu1 %vm1414_vm9, %v6716_v59  ;;  %v2159_v54 = vrot.slane %v2157_v62, 4  ;;  %v2166_v11 = vshll.u32 %v8675_v58, 16  ;;  %v2170_v14 = vshrl.u32 %v8675_v58, 16  ;;  %v7867_v47 = vld [vmem:[#allocation2 + $0x68] sm:$0x1] }
 0x1b0   : > { %v6553_v28 = vcombine.low %v2145_v63, %v2155_v1  ;;  %v4335_v19 = vsel %vm8528_vm3, %v4333_v4, %v4334_v18  ;;  %v2162_v21 = vrot.slane %v2160_v5, 5  ;;  %v2176_v22 = vshll.u32 %v8678_v48, 16  ;;  %v1962_v62 = vld [vmem:[#allocation2 + $0x6c] sm:$0xf] }
 0x1b1   : > { %v6717_v24 = vcombine.low %v4332_v2, %v4335_v19  ;;  %v2168_v61 = vrot.slane %v2166_v11, 5  ;;  %v2172_v26 = vrot.slane %v2170_v14, 4  ;;  %v2181_v27 = vshrl.u32 %v1959_v36, 16 }
 0x1b2   : > { %7210 = vmatprep.mubr.msk.bf16.mxu0 %vm1414_vm9, %v6553_v28  ;;  %v2163_v50 = vor.u32 %v2162_v21, %v2159_v54  ;;  %v2178_v29 = vrot.slane %v2176_v22, 5  ;;  %v2184_v37 = vshll.u32 %v1959_v36, 16  ;;  %v2190_v44 = vshll.u32 %v8685_v9, 16  ;;  %v7868_v54 = vld [vmem:[#allocation2 + $0x70] sm:$0xf] }
 0x1b3   : > { %7346 = vmatprep.mubr.msk.bf16.mxu1 %vm1414_vm9, %v6717_v24  ;;  %v2173_v46 = vor.u32 %v2172_v26, %v2168_v61  ;;  %v2183_v39 = vrot.slane %v2181_v27, 4  ;;  %v2194_v35 = vshrl.u32 %v8685_v9, 16  ;;  %v2200_v16 = vshll.u32 %v8692_v17, 16  ;;  %v8709_v28 = vld [vmem:[#allocation2 + $0x70] sm:$0xf] }
 0x1b4   : > { %v2164_v52 = vrot.slane %v2163_v50, 4  ;;  %v2186_v40 = vrot.slane %v2184_v37, 5  ;;  %v2192_v60 = vrot.slane %v2190_v44, 5  ;;  %v6702_v7 = vrot.slane %v4228_v30, 9  ;;  %v8713_v22 = vld [vmem:[#allocation2 + $0x74] sm:$0x1] }
 0x1b5   : > { %v2174_v32 = vrot.slane %v2173_v46, 4  ;;  %v2196_v34 = vrot.slane %v2194_v35, 4  ;;  %v2202_v8 = vrot.slane %v2200_v16, 5  ;;  %v4338_v33 = vrot.slane %v7866_v49, 5  ;;  %v1965_v50 = vld [vmem:[#allocation2 + $0x78] sm:$0xf] }
 0x1b6   : > { %v2169_v57 = vsel %vm8374_vm15, %v2164_v52, %v2168_v61  ;;  %v2187_v56 = vor.u32 %v2186_v40, %v2183_v39  ;;  %v4341_v59 = vrot.slane %v7867_v47, 5  ;;  %v6703_v18 = vrot.slane %v4229_v38, 9  ;;  %v8723_v39 = vld [vmem:[#allocation2 + $0x7c] sm:$0xf]  ;;  %v8730_v40 = vld [vmem:[#allocation2 + $0x80] sm:$0x1] }
 0x1b7   : > { %v2179_v63 = vsel %vm8374_vm15, %v2174_v32, %v2178_v29  ;;  %v2197_v2 = vor.u32 %v2196_v34, %v2192_v60  ;;  %v4339_v4 = vsel %vm8528_vm3, %v6702_v7, %v4338_v33  ;;  %v4340_v5 = vrot.slane %v4338_v33, 4 }
 0x1b8   : > { %v6554_v36 = vcombine.low %v2169_v57, %v2179_v63  ;;  %v2188_v1 = vrot.slane %v2187_v56, 4  ;;  %v4345_v11 = vrot.slane %v7868_v54, 5  ;;  %v4348_v14 = vrot.slane %v8468_v41, 5  ;;  %v4231_v63 = vld [vmem:[#allocation2 + $0x84] sm:$0xe] }
 0x1b9   : > { %v2198_v19 = vrot.slane %v2197_v2, 4  ;;  %v4342_v21 = vsel %vm8528_vm3, %v4340_v5, %v4341_v59  ;;  %v2205_v24 = vshrl.u32 %v1962_v62, 16  ;;  %v2208_v61 = vshll.u32 %v1962_v62, 16 }
 0x1ba   : > { %7211 = vmatmul.mubr.msk.bf16.gmra.mrb[44].mxu0 %vm1414_vm9, %v6554_v36  ;;  %v2193_v26 = vsel %vm8374_vm15, %v2188_v1, %v2192_v60  ;;  %v6718_v27 = vcombine.low %v4339_v4, %v4342_v21  ;;  %v4346_v30 = vsel %vm8528_vm3, %v6703_v18, %v4345_v11  ;;  %v4347_v41 = vrot.slane %v4345_v11, 4  ;;  %v1968_v21 = vld [vmem:[#allocation2 + $0x84] sm:$0xf] }
 0x1bb   : > { %v2203_v29 = vsel %vm8374_vm15, %v2198_v19, %v2202_v8  ;;  %v2207_v37 = vrot.slane %v2205_v24, 4  ;;  %v2210_v44 = vrot.slane %v2208_v61, 5  ;;  %v2214_v46 = vshll.u32 %v8709_v28, 16  ;;  %v4230_v8 = vld [vmem:[#allocation2 + $0x78] sm:$0xe] }
 0x1bc   : > { %v6555_v35 = vcombine.low %v2193_v26, %v2203_v29  ;;  %7347 = vmatmul.mubr.msk.bf16.gmra.mrb[0].mxu1 %vm1414_vm9, %v6718_v27  ;;  %v4349_v16 = vsel %vm8528_vm3, %v4347_v41, %v4348_v14  ;;  %v2218_v38 = vshrl.u32 %v8709_v28, 16  ;;  %v2224_v52 = vshll.u32 %v8713_v22, 16  ;;  %v7869_v14 = vld [vmem:[#allocation2 + $0x7c] sm:$0xf]  ;;  %v7870_v26 = vld [vmem:[#allocation2 + $0x80] sm:$0x1] }
 0x1bd   : > { %v6719_v60 = vcombine.low %v4346_v30, %v4349_v16  ;;  %v2211_v7 = vor.u32 %v2210_v44, %v2207_v37  ;;  %v2216_v32 = vrot.slane %v2214_v46, 5  ;;  %v2229_v34 = vshrl.u32 %v1965_v50, 16  ;;  %v7871_v37 = vld [vmem:[#allocation2 + $0x88] sm:$0xf]  ;;  %v7872_v16 = vld [vmem:[#allocation2 + $0x8c] sm:$0x1] }
 0x1be   : > { %7214 = vmatprep.mubr.msk.bf16.mxu0 %vm1414_vm9, %v6555_v35  ;;  %v2220_v49 = vrot.slane %v2218_v38, 4  ;;  %v2226_v33 = vrot.slane %v2224_v52, 5  ;;  %v2232_v57 = vshll.u32 %v1965_v50, 16  ;;  %v2238_v56 = vshll.u32 %v8723_v39, 16  ;;  %v8743_v52 = vld [vmem:[#allocation2 + $0x88] sm:$0xf] }
 0x1bf   : > { %7350 = vmatprep.mubr.msk.bf16.mxu1 %vm1414_vm9, %v6719_v60  ;;  %v2212_v47 = vrot.slane %v2211_v7, 4  ;;  %v2231_v59 = vrot.slane %v2229_v34, 4  ;;  %v2242_v18 = vshrl.u32 %v8723_v39, 16  ;;  %v2248_v62 = vshll.u32 %v8730_v40, 16 }
 0x1c0   : > { %v2221_v2 = vor.u32 %v2220_v49, %v2216_v32  ;;  %v2234_v4 = vrot.slane %v2232_v57, 5  ;;  %v2240_v5 = vrot.slane %v2238_v56, 5  ;;  %v6704_v36 = vrot.slane %v4230_v8, 9  ;;  %v8749_v49 = vld [vmem:[#allocation2 + $0x8c] sm:$0x1] }
 0x1c1   : > { %v2217_v1 = vsel %vm8374_vm15, %v2212_v47, %v2216_v32  ;;  %v2244_v54 = vrot.slane %v2242_v18, 4  ;;  %v2250_v11 = vrot.slane %v2248_v62, 5  ;;  %v4352_v19 = vrot.slane %v7869_v14, 5  ;;  %v1971_v57 = vld [vmem:[#allocation2 + $0x90] sm:$0xf] }
 0x1c2   : > { %v2222_v24 = vrot.slane %v2221_v2, 4  ;;  %v2235_v61 = vor.u32 %v2234_v4, %v2231_v59  ;;  %v4355_v27 = vrot.slane %v7870_v26, 5  ;;  %v6705_v30 = vrot.slane %v4231_v63, 9  ;;  %v8758_v4 = vld [vmem:[#allocation2 + $0x94] sm:$0xf] }
 0x1c3   : > { %v2245_v41 = vor.u32 %v2244_v54, %v2240_v5  ;;  %v4353_v50 = vsel %vm8528_vm3, %v6704_v36, %v4352_v19  ;;  %v4354_v29 = vrot.slane %v4352_v19, 4  ;;  %v4359_v44 = vrot.slane %v7871_v37, 5  ;;  %v8764_v54 = vld [vmem:[#allocation2 + $0x98] sm:$0x1] }
 0x1c4   : > { %v2227_v46 = vsel %vm8374_vm15, %v2222_v24, %v2226_v33  ;;  %v2236_v35 = vrot.slane %v2235_v61, 4  ;;  %v4362_v38 = vrot.slane %v7872_v16, 5  ;;  %v2253_v60 = vshrl.u32 %v1968_v21, 16  ;;  %v4232_v61 = vld [vmem:[#allocation2 + $0x90] sm:$0xe] }
 0x1c5   : > { %v6556_v7 = vcombine.low %v2217_v1, %v2227_v46  ;;  %v2246_v32 = vrot.slane %v2245_v41, 4  ;;  %v4356_v34 = vsel %vm8528_vm3, %v4354_v29, %v4355_v27  ;;  %v4360_v8 = vsel %vm8528_vm3, %v6705_v30, %v4359_v44 }
 0x1c6   : > { %v2241_v33 = vsel %vm8374_vm15, %v2236_v35, %v2240_v5  ;;  %v6720_v56 = vcombine.low %v4353_v50, %v4356_v34  ;;  %v4361_v47 = vrot.slane %v4359_v44, 4  ;;  %v2255_v59 = vrot.slane %v2253_v60, 4 }
 0x1c7   : > { %7215 = vmatmul.mubr.msk.bf16.gmra.mrb[48].mxu0 %vm1414_vm9, %v6556_v7  ;;  %v2251_v18 = vsel %vm8374_vm15, %v2246_v32, %v2250_v11  ;;  %v2256_v62 = vshll.u32 %v1968_v21, 16  ;;  %v2262_v63 = vshll.u32 %v8743_v52, 16  ;;  %v2266_v2 = vshrl.u32 %v8743_v52, 16  ;;  %v4233_v7 = vld [vmem:[#allocation2 + $0x9c] sm:$0xe] }
 0x1c8   : > { %v6557_v36 = vcombine.low %v2241_v33, %v2251_v18  ;;  %7351 = vmatmul.mubr.msk.bf16.gmra.mrb[4].mxu1 %vm1414_vm9, %v6720_v56  ;;  %v4363_v5 = vsel %vm8528_vm3, %v4361_v47, %v4362_v38  ;;  %v2272_v1 = vshll.u32 %v8749_v49, 16  ;;  %v2277_v14 = vshrl.u32 %v1971_v57, 16  ;;  %v7873_v38 = vld [vmem:[#allocation2 + $0x94] sm:$0xf] }
 0x1c9   : > { %v6721_v19 = vcombine.low %v4360_v8, %v4363_v5  ;;  %v2258_v11 = vrot.slane %v2256_v62, 5  ;;  %v2264_v21 = vrot.slane %v2262_v63, 5  ;;  %v2268_v24 = vrot.slane %v2266_v2, 4  ;;  %v1974_v62 = vld [vmem:[#allocation2 + $0x9c] sm:$0xf] }
 0x1ca   : > { %7218 = vmatprep.mubr.msk.bf16.mxu0 %vm1414_vm9, %v6557_v36  ;;  %v2274_v26 = vrot.slane %v2272_v1, 5  ;;  %v2279_v27 = vrot.slane %v2277_v14, 4  ;;  %v2280_v30 = vshll.u32 %v1971_v57, 16  ;;  %v2286_v41 = vshll.u32 %v8758_v4, 16 }
 0x1cb   : > { %7354 = vmatprep.mubr.msk.bf16.mxu1 %vm1414_vm9, %v6721_v19  ;;  %v2259_v50 = vor.u32 %v2258_v11, %v2255_v59  ;;  %v2269_v29 = vor.u32 %v2268_v24, %v2264_v21  ;;  %v2290_v37 = vshrl.u32 %v8758_v4, 16  ;;  %v2296_v44 = vshll.u32 %v8764_v54, 16  ;;  %v7874_v59 = vld [vmem:[#allocation2 + $0x98] sm:$0x1]  ;;  %v7875_v11 = vld [vmem:[#allocation2 + $0xa0] sm:$0xf] }
 0x1cc   : > { %v2282_v46 = vrot.slane %v2280_v30, 5  ;;  %v2288_v35 = vrot.slane %v2286_v41, 5  ;;  %v6706_v16 = vrot.slane %v4232_v61, 9  ;;  %v4366_v60 = vrot.slane %v7873_v38, 5  ;;  %v8779_v61 = vld [vmem:[#allocation2 + $0xa0] sm:$0xf] }
 0x1cd   : > { %v2260_v32 = vrot.slane %v2259_v50, 4  ;;  %v2270_v34 = vrot.slane %v2269_v29, 4  ;;  %v2292_v8 = vrot.slane %v2290_v37, 4  ;;  %v2298_v57 = vrot.slane %v2296_v44, 5  ;;  %v7876_v41 = vld [vmem:[#allocation2 + $0xa4] sm:$0x1] }
 0x1ce   : > { %v2283_v33 = vor.u32 %v2282_v46, %v2279_v27  ;;  %v4367_v56 = vsel %vm8528_vm3, %v6706_v16, %v4366_v60  ;;  %v4368_v47 = vrot.slane %v4366_v60, 4  ;;  %v4369_v18 = vrot.slane %v7874_v59, 5  ;;  %v8781_v29 = vld [vmem:[#allocation2 + $0xa4] sm:$0x1]  ;;  %v1977_v16 = vld [vmem:[#allocation2 + $0xa8] sm:$0xf] }
 0x1cf   : > { %v2265_v63 = vsel %vm8374_vm15, %v2260_v32, %v2264_v21  ;;  %v2275_v2 = vsel %vm8374_vm15, %v2270_v34, %v2274_v26  ;;  %v2293_v36 = vor.u32 %v2292_v8, %v2288_v35  ;;  %v6707_v5 = vrot.slane %v4233_v7, 9  ;;  %v8793_v34 = vld [vmem:[#allocation2 + $0xac] sm:$0xf] }
 0x1d0   : > { %v6558_v1 = vcombine.low %v2265_v63, %v2275_v2  ;;  %v2284_v14 = vrot.slane %v2283_v33, 4  ;;  %v4370_v19 = vsel %vm8528_vm3, %v4368_v47, %v4369_v18  ;;  %v4373_v24 = vrot.slane %v7875_v11, 5  ;;  %v8798_v47 = vld [vmem:[#allocation2 + $0xb0] sm:$0x1] }
 0x1d1   : > { %v2294_v27 = vrot.slane %v2293_v36, 4  ;;  %v6722_v30 = vcombine.low %v4367_v56, %v4370_v19  ;;  %v4376_v50 = vrot.slane %v7876_v41, 5  ;;  %v2301_v21 = vshrl.u32 %v1974_v62, 16 }
 0x1d2   : > { %7219 = vmatmul.mubr.msk.bf16.gmra.mrb[52].mxu0 %vm1414_vm9, %v6558_v1  ;;  %v2289_v26 = vsel %vm8374_vm15, %v2284_v14, %v2288_v35  ;;  %v4374_v37 = vsel %vm8528_vm3, %v6707_v5, %v4373_v24  ;;  %v4375_v44 = vrot.slane %v4373_v24, 4  ;;  %v2304_v46 = vshll.u32 %v1974_v62, 16  ;;  %v4234_v5 = vld [vmem:[#allocation2 + $0xa8] sm:$0xe] }
 0x1d3   : > { %v2299_v38 = vsel %vm8374_vm15, %v2294_v27, %v2298_v57  ;;  %7355 = vmatmul.mubr.msk.bf16.gmra.mrb[8].mxu1 %vm1414_vm9, %v6722_v30  ;;  %v2303_v60 = vrot.slane %v2301_v21, 4  ;;  %v2310_v7 = vshll.u32 %v8779_v61, 16  ;;  %v2314_v32 = vshrl.u32 %v8779_v61, 16 }
 0x1d4   : > { %v6559_v8 = vcombine.low %v2289_v26, %v2299_v38  ;;  %v4377_v35 = vsel %vm8528_vm3, %v4375_v44, %v4376_v50  ;;  %v2306_v33 = vrot.slane %v2304_v46, 5  ;;  %v2320_v56 = vshll.u32 %v8781_v29, 16  ;;  %v4235_v50 = vld [vmem:[#allocation2 + $0xb4] sm:$0xe]  ;;  %v7877_v44 = vld [vmem:[#allocation2 + $0xac] sm:$0xf] }
 0x1d5   : > { %v6723_v59 = vcombine.low %v4374_v37, %v4377_v35  ;;  %v2312_v57 = vrot.slane %v2310_v7, 5  ;;  %v2316_v18 = vrot.slane %v2314_v32, 4  ;;  %v2325_v62 = vshrl.u32 %v1977_v16, 16  ;;  %v7878_v7 = vld [vmem:[#allocation2 + $0xb0] sm:$0x1] }
 0x1d6   : > { %7222 = vmatprep.mubr.msk.bf16.mxu0 %vm1414_vm9, %v6559_v8  ;;  %v2307_v63 = vor.u32 %v2306_v33, %v2303_v60  ;;  %v2328_v2 = vshll.u32 %v1977_v16, 16  ;;  %v2334_v36 = vshll.u32 %v8793_v34, 16  ;;  %v2338_v19 = vshrl.u32 %v8793_v34, 16  ;;  %v1980_v8 = vld [vmem:[#allocation2 + $0xb4] sm:$0xf] }
 0x1d7   : > { %7358 = vmatprep.mubr.msk.bf16.mxu1 %vm1414_vm9, %v6723_v59  ;;  %v2317_v1 = vor.u32 %v2316_v18, %v2312_v57  ;;  %v2327_v14 = vrot.slane %v2325_v62, 4  ;;  %v2344_v11 = vshll.u32 %v8798_v47, 16  ;;  %v2322_v27 = vrot.slane %v2320_v56, 5 }
 0x1d8   : > { %v2308_v24 = vrot.slane %v2307_v63, 4  ;;  %v2330_v30 = vrot.slane %v2328_v2, 5  ;;  %v2336_v41 = vrot.slane %v2334_v36, 5  ;;  %v2340_v26 = vrot.slane %v2338_v19, 4  ;;  %v7879_v2 = vld [vmem:[#allocation2 + $0xb8] sm:$0xf] }
 0x1d9   : > { %v2318_v21 = vrot.slane %v2317_v1, 4  ;;  %v6708_v37 = vrot.slane %v4234_v5, 9  ;;  %v4380_v46 = vrot.slane %v7877_v44, 5  ;;  %v2346_v60 = vrot.slane %v2344_v11, 5  ;;  %v8811_v5 = vld [vmem:[#allocation2 + $0xb8] sm:$0xf] }
 0x1da   : > { %v2313_v16 = vsel %vm8374_vm15, %v2308_v24, %v2312_v57  ;;  %v2331_v38 = vor.u32 %v2330_v30, %v2327_v14  ;;  %v4383_v32 = vrot.slane %v7878_v7, 5  ;;  %v2341_v33 = vor.u32 %v2340_v26, %v2336_v41  ;;  %v7880_v30 = vld [vmem:[#allocation2 + $0xbc] sm:$0x1] }
 0x1db   : > { %v2323_v35 = vsel %vm8374_vm15, %v2318_v21, %v2322_v27  ;;  %v4382_v56 = vrot.slane %v4380_v46, 4  ;;  %v6709_v59 = vrot.slane %v4235_v50, 9  ;;  %v4381_v63 = vsel %vm8528_vm3, %v6708_v37, %v4380_v46  ;;  %v8818_v21 = vld [vmem:[#allocation2 + $0xbc] sm:$0x1] }
 0x1dc   : > { %v6560_v18 = vcombine.low %v2313_v16, %v2323_v35  ;;  %v2332_v62 = vrot.slane %v2331_v38, 4  ;;  %v4387_v36 = vrot.slane %v7879_v2, 5  ;;  %v2342_v57 = vrot.slane %v2341_v33, 4  ;;  %v4236_v16 = vld [vmem:[#allocation2 + $0xc0] sm:$0xe] }
 0x1dd   : > { %v4384_v1 = vsel %vm8528_vm3, %v4382_v56, %v4383_v32  ;;  %v2349_v14 = vshrl.u32 %v1980_v8, 16  ;;  %v2352_v19 = vshll.u32 %v1980_v8, 16  ;;  %v4390_v50 = vrot.slane %v7880_v30, 5  ;;  %v2664_v8 = vld [vmem:[#allocation2] sm:$0xe] }
 0x1de   : > { %7223 = vmatmul.mubr.msk.bf16.gmra.mrb[56].mxu0 %vm1414_vm9, %v6560_v18  ;;  %v2337_v11 = vsel %vm8374_vm15, %v2332_v62, %v2336_v41  ;;  %v6724_v24 = vcombine.low %v4381_v63, %v4384_v1  ;;  %v4389_v27 = vrot.slane %v4387_v36, 4  ;;  %v2347_v26 = vsel %vm8374_vm15, %v2342_v57, %v2346_v60  ;;  %v7881_v63 = vld [vmem:[#allocation2 + $0xc4] sm:$0xf]  ;;  %v7883_v57 = vld [vmem:[%s9797_s2 + $0x8] sm:$0xf] }
 0x1df   : > { %v2351_v37 = vrot.slane %v2349_v14, 4  ;;  %v2354_v44 = vrot.slane %v2352_v19, 5  ;;  %v2358_v46 = vshll.u32 %v8811_v5, 16  ;;  %v6561_v38 = vcombine.low %v2337_v11, %v2347_v26  ;;  %v7884_v19 = vld [vmem:[#allocation2 + $0x4] sm:$0xf] }
 0x1e0   : > { %7359 = vmatmul.mubr.msk.bf16.gmra.mrb[12].mxu1 %vm1414_vm9, %v6724_v24  ;;  %v4388_v41 = vsel %vm8528_vm3, %v6709_v59, %v4387_v36  ;;  %v4391_v7 = vsel %vm8528_vm3, %v4389_v27, %v4390_v50  ;;  %v2362_v32 = vshrl.u32 %v8811_v5, 16  ;;  %v2368_v56 = vshll.u32 %v8818_v21, 16  ;;  %v7882_v59 = vld [vmem:[#allocation2 + $0xc8] sm:$0x1] }
 0x1e1   : > { %v6725_v35 = vcombine.low %v4388_v41, %v4391_v7  ;;  %v2355_v33 = vor.u32 %v2354_v44, %v2351_v37  ;;  %v2360_v60 = vrot.slane %v2358_v46, 5  ;;  %7226 = vmatprep.mubr.msk.bf16.mxu0 %vm1414_vm9, %v6561_v38  ;;  %v6710_v62 = vrot.slane %v4236_v16, 9  ;;  %v7885_v46 = vld [vmem:[%s9797_s2 + $0xc] sm:$0xf]  ;;  %v7886_v7 = vld [vmem:[#allocation2 + $0x10] sm:$0xf] }
 0x1e2   : > { %v2364_v18 = vrot.slane %v2362_v32, 4  ;;  %v4394_v2 = vrot.slane %v7881_v63, 5  ;;  %v4397_v36 = vrot.slane %v7882_v59, 5  ;;  %v2942_v1 = vsel %vm1463_vm8, %v7883_v57, 0  ;;  %v7887_v57 = vld [vmem:[#allocation2 + $0x14] sm:$0x1] }
 0x1e3   : > { %7362 = vmatprep.mubr.msk.bf16.mxu1 %vm1414_vm9, %v6725_v35  ;;  %v6580_v14 = vrot.slane %v2664_v8, 9  ;;  %v2735_v11 = vrot.slane %v7884_v19, 5  ;;  %v2356_v24 = vrot.slane %v2355_v33, 4  ;;  %7231 = vmatpush3.bf16.msra.mxu0 %v2942_v1  ;;  %v2738_v50 = vrot.slane %v8566_v45, 5  ;;  %v2665_v35 = vld [vmem:[#allocation2 + $0xc] sm:$0xe] }
 0x1e4   : > { %v2365_v27 = vor.u32 %v2364_v18, %v2360_v60  ;;  %v4396_v30 = vrot.slane %v4394_v2, 4  ;;  %v2370_v26 = vrot.slane %v2368_v56, 5  ;;  %7763 = vmatprep.subr.msk.bf16.mxu0 %vm1463_vm8, %v7885_v46  ;;  %v4395_v38 = vsel %vm8528_vm3, %v6710_v62, %v4394_v2  ;;  %v2666_v33 = vld [vmem:[#allocation2 + $0x18] sm:$0xe] }
 0x1e5   : > { %v2736_v37 = vsel %vm8528_vm3, %v6580_v14, %v2735_v11  ;;  %v2737_v44 = vrot.slane %v2735_v11, 4  ;;  %v2742_v45 = vrot.slane %v7886_v7, 5  ;;  %v2749_v56 = vrot.slane %v8561_v15, 5  ;;  %v7843_v62 = vld [vmem:[#allocation2 + $0x18] sm:$0xff]   ;;  %v2667_v11 = vld [vmem:[#allocation2 + $0x24] sm:$0xe] }
 0x1e6   : > { %v2366_v16 = vrot.slane %v2365_v27, 4  ;;  %v4398_v41 = vsel %vm8528_vm3, %v4396_v30, %v4397_v36  ;;  %v2361_v18 = vsel %vm8374_vm15, %v2356_v24, %v2360_v60  ;;  %v2745_v1 = vrot.slane %v7887_v57, 5 }
 0x1e7   : > { %v6726_v32 = vcombine.low %v4395_v38, %v4398_v41  ;;  %v2739_v8 = vsel %vm8528_vm3, %v2737_v44, %v2738_v50  ;;  %v2744_v59 = vrot.slane %v2742_v45, 4  ;;  %v6581_v14 = vrot.slane %v2665_v35, 9  ;;  %v7844_v35 = vld [vmem:[#allocation2 + $0x24] sm:$0xff]  }
 0x1e8   : > { %v2371_v63 = vsel %vm8374_vm15, %v2366_v16, %v2370_v26  ;;  %v6596_v2 = vcombine.low %v2736_v37, %v2739_v8  ;;  %v6582_v19 = vrot.slane %v2666_v33, 9  ;;  %v2756_v15 = vrot.slane %v8581_v10, 5  ;;  %v2668_v26 = vld [vmem:[#allocation2 + $0x30] sm:$0xe]  ;;  %v2669_v16 = vld [vmem:[#allocation2 + $0x3c] sm:$0xe] }
 0x1e9   : > { %v6562_v36 = vcombine.low %v2361_v18, %v2371_v63  ;;  %7363 = vmatmul.mubr.msk.bf16.gmra.mrb[16].mxu1 %vm1414_vm9, %v6726_v32  ;;  %v2746_v60 = vsel %vm8528_vm3, %v2744_v59, %v2745_v1  ;;  %v2751_v24 = vrot.slane %v2749_v56, 4  ;;  %v2743_v27 = vsel %vm8528_vm3, %v6581_v14, %v2742_v45  ;;  %v2670_v33 = vld [vmem:[#allocation2 + $0x48] sm:$0xe]  ;;  %v8887_v63 = vld [vmem:[%s9797_s2 + $0x20] sm:$0xf] }
 0x1ea   : > { %7368 = vmatprep.mubr.msk.bf16.mxu1 %vm1414_vm9, %v7843_v62  ;;  %v2750_v30 = vsel %vm8528_vm3, %v6582_v19, %v2749_v56  ;;  %v2758_v50 = vrot.slane %v2756_v15, 4  ;;  %v2763_v37 = vrot.slane %v8594_v31, 5  ;;  %v2752_v10 = vrot.slane %v8563_v42, 5  ;;  %v7845_v56 = vld [vmem:[#allocation2 + $0x30] sm:$0xff]   ;;  %v2673_v14 = vld [vmem:[#allocation2 + $0x6c] sm:$0xe] }
 0x1eb   : > { %7227 = vmatmul.mubr.msk.bf16.gmra.mrb[60].mxu0 %vm1414_vm9, %v6562_v36  ;;  %v5581_v44 = vsel %vm1463_vm8, %v8604_v51, 0  ;;  %v6583_v46 = vrot.slane %v2667_v11, 9  ;;  %v2770_v38 = vrot.slane %v8632_v53, 5  ;;  %v6597_v41 = vcombine.low %v2743_v27, %v2746_v60 }
 0x1ec   : > { %7232 = vmatprep.mubr.msk.bf16.mxu0 %vm1414_vm9, %v6596_v2  ;;  %v2759_v7 = vrot.slane %v8588_v25, 5  ;;  %v2765_v45 = vrot.slane %v2763_v37, 4  ;;  %v2766_v32 = vrot.slane %v8615_v55, 5  ;;  %v2753_v8 = vsel %vm8528_vm3, %v2751_v24, %v2752_v10 }
 0x1ed   : > { %v2772_v31 = vrot.slane %v2770_v38, 4  ;;  %v2773_v42 = vrot.slane %v8638_v0, 5  ;;  %v2777_v51 = vrot.slane %v8644_v43, 5  ;;  %v6584_v18 = vrot.slane %v2668_v26, 9  ;;  %v2675_v26 = vld [vmem:[#allocation2 + $0x84] sm:$0xe] }
 0x1ee   : > { %v8878_v53 = vsel %vm8528_vm3, %v2758_v50, %v2759_v7  ;;  %v8882_v25 = vsel %vm8528_vm3, %v2765_v45, %v2766_v32  ;;  %v6585_v55 = vrot.slane %v2669_v16, 9  ;;  %v2780_v62 = vrot.slane %v8657_v3, 5 }
 0x1ef   : > { %v8892_v0 = vsel %vm8528_vm3, %v2772_v31, %v2773_v42  ;;  %v2779_v43 = vrot.slane %v2777_v51, 4  ;;  %v2784_v2 = vrot.slane %v8675_v58, 5  ;;  %v6598_v59 = vcombine.low %v2750_v30, %v2753_v8  ;;  %v7847_v31 = vld [vmem:[#allocation2 + $0x48] sm:$0xff]  }
 0x1f0   : > { %v2757_v36 = vsel %vm8528_vm3, %v6583_v46, %v2756_v15  ;;  %v2764_v57 = vsel %vm8528_vm3, %v6584_v18, %v2763_v37  ;;  %v6586_v1 = vrot.slane %v2670_v33, 9  ;;  %v8905_v3 = vsel %vm8528_vm3, %v6585_v55, %v2770_v38  ;;  %v2674_v15 = vld [vmem:[#allocation2 + $0x78] sm:$0xe] }
 0x1f1   : > { %7369 = vmatmul.mubr.msk.bf16.vlgmr.msra.gmra.mrb[20].mxu1 %vm1414_vm9, %v7844_v35  ;;  %v6599_v19 = vcombine.low %v2757_v36, %v8878_v53  ;;  %v8909_v11 = vsel %vm8528_vm3, %v2779_v43, %v2780_v62  ;;  %v2791_v60 = vrot.slane %v8685_v9, 5  ;;  %v6600_v24 = vcombine.low %v2764_v57, %v8882_v25  ;;  %v2676_v35 = vld [vmem:[#allocation2 + $0x90] sm:$0xe]  ;;  %v2678_v62 = vld [vmem:[#allocation2 + $0xa8] sm:$0xe] }
 0x1f2   : > { %7401 = vmatpush3.bf16.msra.mxu1 %v5581_v44  ;;  %7372 = vmatprep.mubr.msk.bf16.mxu1 %vm1414_vm9, %v7845_v56  ;;  %v6601_v27 = vcombine.low %v8905_v3, %v8892_v0  ;;  %v8920_v30 = vsel %vm8528_vm3, %v6586_v1, %v2777_v51  ;;  %v2798_v50 = vrot.slane %v8709_v28, 5  ;;  %v8928_v10 = vrot.slane %v2784_v2, 4  ;;  %v7846_v28 = vld [vmem:[#allocation2 + $0x3c] sm:$0xff]   ;;  %v2679_v1 = vld [vmem:[#allocation2 + $0xb4] sm:$0xe] }
 0x1f3   : > { %7233 = vmatmul.mubr.msk.bf16.vlgmr.msra.gmra.mrb[32].mxu0 %vm1414_vm9, %v6597_v41  ;;  %7769 = vmatprep.subr.msk.bf16.mxu1 %vm1463_vm8, %v8887_v63  ;;  %v6602_v37 = vcombine.low %v8920_v30, %v8909_v11  ;;  %v2787_v44 = vrot.slane %v8678_v48, 5  ;;  %v6589_v46 = vrot.slane %v2673_v14, 9  ;;  %v2801_v38 = vrot.slane %v8713_v22, 5  ;;  %v2677_v51 = vld [vmem:[#allocation2 + $0x9c] sm:$0xe] }
 0x1f4   : > { %7236 = vmatprep.mubr.msk.bf16.mxu0 %vm1414_vm9, %v6598_v59  ;;  %7265 = vmatpush3.bf16.msra.mxu0 %v8065_v13  ;;  %v2800_v16 = vrot.slane %v2798_v50, 4  ;;  %v6590_v41 = vrot.slane %v2674_v15, 9  ;;  %v2805_v7 = vrot.slane %v8723_v39, 5  ;;  %v8935_v13 = vrot.slane %v2791_v60, 4  ;;  %v9046_v0 = vld [vmem:[#allocation2 + $0x20] sm:$0x1] }
 0x1f5   : > { %v8939_v45 = vsel %vm8528_vm3, %v6589_v46, %v2798_v50  ;;  %v6591_v32 = vrot.slane %v2675_v26, 9  ;;  %v2812_v8 = vrot.slane %v8743_v52, 5  ;;  %v2808_v33 = vrot.slane %v8730_v40, 5  ;;  %v5050_v46 = vld [vmem:[#allocation2 + $0x18] sm:$0xf]  ;;  %9820 = vst [vmem:[#allocation3_spill] sm:$0xff] %v9046_v0 }
 0x1f6   : > { %v8944_v22 = vsel %vm8528_vm3, %v2800_v16, %v2801_v38  ;;  %v8948_v39 = vsel %vm8528_vm3, %v6590_v41, %v2805_v7  ;;  %v2807_v42 = vrot.slane %v2805_v7, 4  ;;  %v2815_v18 = vrot.slane %v8749_v49, 5  ;;  %v672_v7 = vld [vmem:[#allocation2 + $0xcc] sm:$0x1] }
 0x1f7   : > { %v6605_v56 = vcombine.low %v8939_v45, %v8944_v22  ;;  %v8956_v52 = vsel %vm8528_vm3, %v6591_v32, %v2812_v8  ;;  %v2814_v53 = vrot.slane %v2812_v8, 4  ;;  %v6592_v40 = vrot.slane %v2676_v35, 9  ;;  %v9003_v35 = vld [vmem:[#allocation2 + $0x1c] sm:$0xf] }
 0x1f8   : > { %v8962_v25 = vsel %vm8528_vm3, %v2807_v42, %v2808_v33  ;;  %v2819_v55 = vrot.slane %v8758_v4, 5  ;;  %v2822_v43 = vrot.slane %v8764_v54, 5  ;;  %v6593_v36 = vrot.slane %v2677_v51, 9 }
 0x1f9   : > { %7373 = vmatmul.mubr.msk.bf16.gmra.mrb[24].mxu1 %vm1414_vm9, %v7846_v28  ;;  %v6606_v59 = vcombine.low %v8948_v39, %v8962_v25  ;;  %v8971_v49 = vsel %vm8528_vm3, %v2814_v53, %v2815_v18  ;;  %v2826_v57 = vrot.slane %v8779_v61, 5  ;;  %v6594_v26 = vrot.slane %v2678_v62, 9 }
 0x1fa   : > { %7376 = vmatprep.mubr.msk.bf16.mxu1 %vm1414_vm9, %v7847_v31  ;;  %v6607_v4 = vcombine.low %v8956_v52, %v8971_v49  ;;  %v8979_v54 = vsel %vm8528_vm3, %v6592_v40, %v2819_v55  ;;  %v2821_v14 = vrot.slane %v2819_v55, 4  ;;  %v2833_v61 = vrot.slane %v8793_v34, 5  ;;  %v2671_v31 = vld [vmem:[#allocation2 + $0x54] sm:$0xe]  ;;  %v9170_v49 = vld [vmem:[#allocation2 + $0x70] sm:$0xf] }
 0x1fb   : > { %7237 = vmatmul.mubr.msk.bf16.gmra.mrb[36].mxu0 %vm1414_vm9, %v6599_v19  ;;  %v2829_v19 = vrot.slane %v8781_v29, 5  ;;  %v8984_v15 = vsel %vm8528_vm3, %v6593_v36, %v2826_v57  ;;  %v2828_v50 = vrot.slane %v2826_v57, 4  ;;  %v2836_v16 = vrot.slane %v8798_v47, 5  ;;  %v7848_v29 = vld [vmem:[#allocation2 + $0x54] sm:$0xff]   ;;  %v7849_v47 = vld [vmem:[#allocation2 + $0x60] sm:$0xff]  }
 0x1fc   : > { %7240 = vmatprep.mubr.msk.bf16.mxu0 %vm1414_vm9, %v6600_v24  ;;  %v8989_v24 = vsel %vm8528_vm3, %v2821_v14, %v2822_v43  ;;  %v6595_v38 = vrot.slane %v2679_v1, 9  ;;  %v2840_v41 = vrot.slane %v8811_v5, 5  ;;  %v9001_v34 = vsel %vm8528_vm3, %v6594_v26, %v2833_v61  ;;  %v5053_v43 = vld [vmem:[#allocation2 + $0x24] sm:$0xf]  ;;  %v9028_v1 = vld [vmem:[#allocation2 + $0x28] sm:$0xf] }
 0x1fd   : > { %v6608_v28 = vcombine.low %v8979_v54, %v8989_v24  ;;  %v8997_v32 = vsel %vm8528_vm3, %v2828_v50, %v2829_v19  ;;  %v2835_v8 = vrot.slane %v2833_v61, 4  ;;  %v2843_v51 = vrot.slane %v8818_v21, 5  ;;  %v2672_v19 = vld [vmem:[#allocation2 + $0x60] sm:$0xe] }
 0x1fe   : > { %v6609_v5 = vcombine.low %v8984_v15, %v8997_v32  ;;  %v9009_v42 = vsel %vm8528_vm3, %v6595_v38, %v2840_v41  ;;  %v2842_v33 = vrot.slane %v2840_v41, 4  ;;  %v673_v18 = vsel %vm7988_vm4, 0, %v672_v7  ;;  %v9060_v41 = vld [vmem:[#allocation2 + $0x34] sm:$0xf]  ;;  %v7850_v7 = vld [vmem:[#allocation2 + $0x6c] sm:$0xff]  }
 0x1ff   : > { %v9015_v53 = vsel %vm8528_vm3, %v2835_v8, %v2836_v16  ;;  %v5101_v40 = vshrl.u32 %v5050_v46, 16  ;;  %v5104_v55 = vshll.u32 %v5050_v46, 16  ;;  %674 = vst [vmem:[#allocation2 + $0xcc] sm:$0x1] %v673_v18  ;;  %v5110_v36 = vshll.u32 %v9003_v35, 16 }
 0x200   : > { %v6610_v62 = vcombine.low %v9001_v34, %v9015_v53  ;;  %v9024_v21 = vsel %vm8528_vm3, %v2842_v33, %v2843_v51  ;;  %v5114_v57 = vshrl.u32 %v9003_v35, 16  ;;  %v6587_v20 = vrot.slane %v2671_v31, 9  ;;  %v5056_v16 = vld [vmem:[#allocation2 + $0x30] sm:$0xf]  ;;  %v9216_v53 = vld [vmem:[#allocation2 + $0x80] sm:$0x1] }
 0x201   : > { %7377 = vmatmul.mubr.msk.bf16.gmra.mrb[28].mxu1 %vm1414_vm9, %v7848_v29  ;;  %v2788_v14 = vsel %vm8528_vm3, %v8928_v10, %v2787_v44  ;;  %v2794_v50 = vrot.slane %v8692_v17, 5  ;;  %v6611_v26 = vcombine.low %v9009_v42, %v9024_v21  ;;  %v9048_v3 = vrot.slane %v5110_v36, 5  ;;  %v9257_v21 = vld [vmem:[#allocation2 + $0xa0] sm:$0xf] }
 0x202   : > { %7380 = vmatprep.mubr.msk.bf16.mxu1 %vm1414_vm9, %v7849_v47  ;;  %v5116_v48 = vrot.slane %v5114_v57, 4  ;;  %v5128_v61 = vshll.u32 %v5053_v43, 16  ;;  %v5103_v46 = vrot.slane %v5101_v40, 4  ;;  %v5106_v10 = vrot.slane %v5104_v55, 5  ;;  %v5059_v57 = vld [vmem:[#allocation2 + $0x3c] sm:$0xf] }
 0x203   : > { %7241 = vmatmul.mubr.msk.bf16.gmra.mrb[40].mxu0 %vm1414_vm9, %v6601_v27  ;;  %v5125_v27 = vshrl.u32 %v5053_v43, 16  ;;  %v5134_v44 = vshll.u32 %v9028_v1, 16  ;;  %v5138_v17 = vshrl.u32 %v9028_v1, 16  ;;  %v2785_v11 = vsel %vm8528_vm3, %v6587_v20, %v2784_v2  ;;  %v7851_v2 = vld [vmem:[#allocation2 + $0x78] sm:$0xff]  }
 0x204   : > { %7244 = vmatprep.mubr.msk.bf16.mxu0 %vm1414_vm9, %v6602_v37  ;;  %v6588_v30 = vrot.slane %v2672_v19, 9  ;;  %v2795_v37 = vsel %vm8528_vm3, %v8935_v13, %v2794_v50  ;;  %v5117_v38 = vor.u32 %v5116_v48, %v9048_v3  ;;  %v5130_v8 = vrot.slane %v5128_v61, 5  ;;  %v9069_v13 = vld [vmem:[#allocation2 + $0x2c] sm:$0x1]  ;;  %v9076_v19 = vld [vmem:[#allocation2 + $0x40] sm:$0xf] }
 0x205   : > { %v5127_v29 = vrot.slane %v5125_v27, 4  ;;  %v9062_v47 = vrot.slane %v5134_v44, 5  ;;  %v5140_v31 = vrot.slane %v5138_v17, 4  ;;  %v6603_v33 = vcombine.low %v2785_v11, %v2788_v14 }
 0x206   : > { %v2792_v58 = vsel %vm8528_vm3, %v6588_v30, %v2791_v60  ;;  %v5120_v51 = vshll.u32 %v9046_v0, 16  ;;  %v5149_v18 = vshrl.u32 %v5056_v16, 16  ;;  %v5107_v55 = vor.u32 %v5106_v10, %v5103_v46  ;;  %v9083_v10 = vld [vmem:[#allocation2 + $0x38] sm:$0x1] }
 0x207   : > { %v6604_v40 = vcombine.low %v2792_v58, %v2795_v37  ;;  %v5152_v43 = vshll.u32 %v5056_v16, 16  ;;  %v5158_v36 = vshll.u32 %v9060_v41, 16  ;;  %v5118_v9 = vrot.slane %v5117_v38, 4  ;;  %v5062_v38 = vld [vmem:[#allocation2 + $0x48] sm:$0xf] }
 0x208   : > { %v5141_v20 = vor.u32 %v5140_v31, %v9062_v47  ;;  %v5151_v60 = vrot.slane %v5149_v18, 4  ;;  %v5162_v14 = vshrl.u32 %v9060_v41, 16  ;;  %v5131_v50 = vor.u32 %v5130_v8, %v5127_v29  ;;  %v7852_v58 = vld [vmem:[#allocation2 + $0x84] sm:$0xff]  }
 0x209   : > { %7381 = vmatmul.mubr.msk.bf16.gmra.mrb[0].mxu1 %vm1414_vm9, %v7850_v7  ;;  %v5154_v48 = vrot.slane %v5152_v43, 5  ;;  %v9079_v27 = vrot.slane %v5158_v36, 5  ;;  %v5122_v61 = vrot.slane %v5120_v51, 5  ;;  %v5144_v46 = vshll.u32 %v9069_v13, 16 }
 0x20a   : > { %7384 = vmatprep.mubr.msk.bf16.mxu1 %vm1414_vm9, %v7851_v2  ;;  %v5164_v44 = vrot.slane %v5162_v14, 4  ;;  %v5173_v17 = vshrl.u32 %v5059_v57, 16  ;;  %v5108_v16 = vrot.slane %v5107_v55, 4  ;;  %v9087_v11 = vsel %vm1463_vm8, %v8887_v63, 0 }
 0x20b   : > { %7245 = vmatmul.mubr.msk.bf16.gmra.mrb[44].mxu0 %vm1414_vm9, %v6603_v33  ;;  %v5176_v30 = vshll.u32 %v5059_v57, 16  ;;  %v5182_v37 = vshll.u32 %v9076_v19, 16  ;;  %v5123_v7 = vsel %vm8374_vm15, %v5118_v9, %v5122_v61  ;;  %v5142_v29 = vrot.slane %v5141_v20, 4  ;;  %v9093_v33 = vld [vmem:[#allocation2 + $0x4c] sm:$0xf] }
 0x20c   : > { %7248 = vmatprep.mubr.msk.bf16.mxu0 %vm1414_vm9, %v6604_v40  ;;  %v5155_v8 = vor.u32 %v5154_v48, %v5151_v60  ;;  %v5165_v31 = vor.u32 %v5164_v44, %v9079_v27  ;;  %v5132_v2 = vrot.slane %v5131_v50, 4  ;;  %v5175_v51 = vrot.slane %v5173_v17, 4  ;;  %v7853_v40 = vld [vmem:[#allocation2 + $0x90] sm:$0xff]   ;;  %v9109_v17 = vld [vmem:[#allocation2 + $0x58] sm:$0xf] }
 0x20d   : > { %v5178_v18 = vrot.slane %v5176_v30, 5  ;;  %v5186_v63 = vshrl.u32 %v9076_v19, 16  ;;  %v5146_v55 = vrot.slane %v5144_v46, 5  ;;  %v5168_v43 = vshll.u32 %v9083_v10, 16  ;;  %v5065_v50 = vld [vmem:[#allocation2 + $0x54] sm:$0xf] }
 0x20e   : > { %v5197_v36 = vshrl.u32 %v5062_v38, 16  ;;  %v5200_v57 = vshll.u32 %v5062_v38, 16  ;;  %v5113_v9 = vsel %vm8374_vm15, %v5108_v16, %v9048_v3  ;;  %v9101_v20 = vrot.slane %v5182_v37, 5  ;;  %v9118_v16 = vld [vmem:[#allocation2 + $0x44] sm:$0x1] }
 0x20f   : > { %v5188_v60 = vrot.slane %v5186_v63, 4  ;;  %v5206_v14 = vshll.u32 %v9093_v33, 16  ;;  %v9105_v48 = vcombine.low %v5113_v9, %v5123_v7  ;;  %v5147_v61 = vsel %vm8374_vm15, %v5142_v29, %v5146_v55  ;;  %v9124_v29 = vld [vmem:[#allocation2 + $0x50] sm:$0x1] }
 0x210   : > { %v5156_v46 = vrot.slane %v5155_v8, 4  ;;  %v5166_v44 = vrot.slane %v5165_v31, 4  ;;  %v5137_v3 = vsel %vm8374_vm15, %v5132_v2, %v9062_v47  ;;  %v5179_v30 = vor.u32 %v5178_v18, %v5175_v51  ;;  %v5068_v51 = vld [vmem:[#allocation2 + $0x60] sm:$0xf] }
 0x211   : > { %7385 = vmatmul.mubr.msk.bf16.gmra.mrb[4].mxu1 %vm1414_vm9, %v7852_v58  ;;  %v5199_v37 = vrot.slane %v5197_v36, 4  ;;  %v5202_v38 = vrot.slane %v5200_v57, 5  ;;  %v5170_v7 = vrot.slane %v5168_v43, 5  ;;  %v9126_v45 = vrot.slane %v5206_v14, 5  ;;  %v7854_v18 = vld [vmem:[#allocation2 + $0x9c] sm:$0xff]   ;;  %v7855_v57 = vld [vmem:[#allocation2 + $0xa8] sm:$0xff]  }
 0x212   : > { %7388 = vmatprep.mubr.msk.bf16.mxu1 %vm1414_vm9, %v7853_v40  ;;  %v5210_v22 = vshrl.u32 %v9093_v33, 16  ;;  %v9129_v8 = vcombine.low %v5137_v3, %v5147_v61  ;;  %v5189_v47 = vor.u32 %v5188_v60, %v9101_v20  ;;  %v5224_v31 = vshll.u32 %v5065_v50, 16  ;;  %v9141_v36 = vld [vmem:[#allocation2 + $0x64] sm:$0xf]  ;;  %v9147_v61 = vld [vmem:[#allocation2 + $0x5c] sm:$0x1] }
 0x213   : > { %7249 = vmatmul.mubr.msk.bf16.gmra.mrb[48].mxu0 %vm1414_vm9, %v6605_v56  ;;  %v5221_v56 = vshrl.u32 %v5065_v50, 16  ;;  %v5230_v58 = vshll.u32 %v9109_v17, 16  ;;  %v5161_v39 = vsel %vm8374_vm15, %v5156_v46, %v9079_v27  ;;  %v5171_v25 = vsel %vm8374_vm15, %v5166_v44, %v5170_v7 }
 0x214   : > { %7252 = vmatprep.mubr.msk.bf16.mxu0 %vm1414_vm9, %v6606_v59  ;;  %v5192_v59 = vshll.u32 %v9118_v16, 16  ;;  %v5212_v2 = vrot.slane %v5210_v22, 4  ;;  %v5180_v63 = vrot.slane %v5179_v30, 4  ;;  %v5203_v40 = vor.u32 %v5202_v38, %v5199_v37  ;;  %v9152_v38 = vld [vmem:[#allocation2 + $0x68] sm:$0x1] }
 0x215   : > { %v5216_v55 = vshll.u32 %v9124_v29, 16  ;;  %v5234_v43 = vshrl.u32 %v9109_v17, 16  ;;  %v5223_v27 = vrot.slane %v5221_v56, 4  ;;  %v5226_v60 = vrot.slane %v5224_v31, 5 }
 0x216   : > { %v5213_v9 = vor.u32 %v5212_v2, %v9126_v45  ;;  %v9144_v14 = vrot.slane %v5230_v58, 5  ;;  %v5190_v50 = vrot.slane %v5189_v47, 4  ;;  %v5245_v44 = vshrl.u32 %v5068_v51, 16 }
 0x217   : > { %v5236_v46 = vrot.slane %v5234_v43, 4  ;;  %v5248_v3 = vshll.u32 %v5068_v51, 16  ;;  %v9150_v30 = vcombine.low %v5161_v39, %v5171_v25  ;;  %v5194_v37 = vrot.slane %v5192_v59, 5  ;;  %v5071_v39 = vld [vmem:[#allocation2 + $0x6c] sm:$0xf]  ;;  %v7856_v43 = vld [vmem:[#allocation2 + $0xb4] sm:$0xff]  }
 0x218   : > { %v5254_v7 = vshll.u32 %v9141_v36, 16  ;;  %v5258_v22 = vshrl.u32 %v9141_v36, 16  ;;  %v5185_v56 = vsel %vm8374_vm15, %v5180_v63, %v9101_v20  ;;  %v5214_v47 = vrot.slane %v5213_v9, 4 }
 0x219   : > { %7389 = vmatmul.mubr.msk.bf16.gmra.mrb[8].mxu1 %vm1414_vm9, %v7854_v18  ;;  %v5247_v31 = vrot.slane %v5245_v44, 4  ;;  %v5250_v58 = vrot.slane %v5248_v3, 5  ;;  %v5227_v25 = vor.u32 %v5226_v60, %v5223_v27  ;;  %v5237_v59 = vor.u32 %v5236_v46, %v9144_v14 }
 0x21a   : > { %7392 = vmatprep.mubr.msk.bf16.mxu1 %vm1414_vm9, %v7855_v57  ;;  %v9168_v2 = vrot.slane %v5254_v7, 5  ;;  %v5260_v52 = vrot.slane %v5258_v22, 4  ;;  %v5204_v20 = vrot.slane %v5203_v40, 4  ;;  %v5218_v51 = vrot.slane %v5216_v55, 5  ;;  %v7857_v57 = vld [vmem:[#allocation2 + $0xc0] sm:$0xff]  }
 0x21b   : > { %7253 = vmatmul.mubr.msk.bf16.gmra.mrb[52].mxu0 %vm1414_vm9, %v6607_v4  ;;  %v5195_v4 = vsel %vm8374_vm15, %v5190_v50, %v5194_v37  ;;  %v5240_v18 = vshll.u32 %v9147_v61, 16  ;;  %v5264_v54 = vshll.u32 %v9152_v38, 16  ;;  %v5269_v24 = vshrl.u32 %v5071_v39, 16  ;;  %v5074_v40 = vld [vmem:[#allocation2 + $0x78] sm:$0xf] }
 0x21c   : > { %7256 = vmatprep.mubr.msk.bf16.mxu0 %vm1414_vm9, %v6608_v28  ;;  %v5261_v63 = vor.u32 %v5260_v52, %v9168_v2  ;;  %v5272_v28 = vshll.u32 %v5071_v39, 16  ;;  %v5219_v9 = vsel %vm8374_vm15, %v5214_v47, %v5218_v51  ;;  %v5251_v27 = vor.u32 %v5250_v58, %v5247_v31  ;;  %v9181_v37 = vld [vmem:[#allocation2 + $0x7c] sm:$0xf]  ;;  %v9189_v58 = vld [vmem:[#allocation2 + $0x74] sm:$0x1] }
 0x21d   : > { %v5278_v60 = vshll.u32 %v9170_v49, 16  ;;  %v5282_v50 = vshrl.u32 %v9170_v49, 16  ;;  %v5228_v55 = vrot.slane %v5227_v25, 4  ;;  %v5238_v46 = vrot.slane %v5237_v59, 4  ;;  %v5077_v51 = vld [vmem:[#allocation2 + $0x84] sm:$0xf] }
 0x21e   : > { %v5271_v44 = vrot.slane %v5269_v24, 4  ;;  %v5274_v3 = vrot.slane %v5272_v28, 5  ;;  %v9184_v7 = vcombine.low %v5185_v56, %v5195_v4  ;;  %v5209_v22 = vsel %vm8374_vm15, %v5204_v20, %v9126_v45 }
 0x21f   : > { %v5242_v47 = vrot.slane %v5240_v18, 5  ;;  %v5262_v31 = vrot.slane %v5261_v63, 4  ;;  %v9192_v39 = vcombine.low %v5209_v22, %v5219_v9  ;;  %v5266_v25 = vrot.slane %v5264_v54, 5  ;;  %v9211_v63 = vld [vmem:[#allocation2 + $0x88] sm:$0xf]  ;;  %v7859_v54 = vld [vmem:[#allocation2 + $0xcc] sm:$0xff]  }
 0x220   : > { %v5293_v59 = vshrl.u32 %v5074_v40, 16  ;;  %v5296_v52 = vshll.u32 %v5074_v40, 16  ;;  %v5252_v56 = vrot.slane %v5251_v27, 4  ;;  %v9198_v4 = vrot.slane %v5278_v60, 5  ;;  %v5080_v27 = vld [vmem:[#allocation2 + $0x90] sm:$0xf] }
 0x221   : > { %7393 = vmatmul.mubr.msk.bf16.gmra.mrb[12].mxu1 %vm1414_vm9, %v7856_v43  ;;  %v5284_v45 = vrot.slane %v5282_v50, 4  ;;  %v5302_v20 = vshll.u32 %v9181_v37, 16  ;;  %v5233_v18 = vsel %vm8374_vm15, %v5228_v55, %v9144_v14  ;;  %v5243_v15 = vsel %vm8374_vm15, %v5238_v46, %v5242_v47  ;;  %v9226_v55 = vld [vmem:[#allocation2 + $0x8c] sm:$0x1] }
 0x222   : > { %7396 = vmatprep.mubr.msk.bf16.mxu1 %vm1414_vm9, %v7857_v57  ;;  %v5275_v32 = vor.u32 %v5274_v3, %v5271_v44  ;;  %v5267_v24 = vsel %vm8374_vm15, %v5262_v31, %v5266_v25  ;;  %v5288_v34 = vshll.u32 %v9189_v58, 16  ;;  %v5317_v28 = vshrl.u32 %v5077_v51, 16  ;;  %v9232_v31 = vld [vmem:[#allocation2 + $0x94] sm:$0xf] }
 0x223   : > { %7257 = vmatmul.mubr.msk.bf16.gmra.mrb[56].mxu0 %vm1414_vm9, %v6609_v5  ;;  %v5306_v5 = vshrl.u32 %v9181_v37, 16  ;;  %v5298_v43 = vrot.slane %v5296_v52, 5  ;;  %v9218_v14 = vrot.slane %v5302_v20, 5  ;;  %v5320_v9 = vshll.u32 %v5077_v51, 16  ;;  %v7858_v51 = vld [vmem:[#allocation2 + $0xc] sm:$0xff]  }
 0x224   : > { %7260 = vmatprep.mubr.msk.bf16.mxu0 %vm1414_vm9, %v6610_v62  ;;  %v5295_v62 = vrot.slane %v5293_v59, 4  ;;  %v9220_v60 = vcombine.low %v5233_v18, %v5243_v15  ;;  %v5257_v50 = vsel %vm8374_vm15, %v5252_v56, %v9168_v2  ;;  %v5285_v40 = vor.u32 %v5284_v45, %v9198_v4 }
 0x225   : > { %v5308_v57 = vrot.slane %v5306_v5, 4  ;;  %v5326_v46 = vshll.u32 %v9211_v63, 16  ;;  %v9229_v44 = vrot.slane %v5275_v32, 4  ;;  %v5312_v3 = vshll.u32 %v9216_v53, 16 }
 0x226   : > { %v5319_v22 = vrot.slane %v5317_v28, 4  ;;  %v5322_v47 = vrot.slane %v5320_v9, 5  ;;  %v9235_v25 = vcombine.low %v5257_v50, %v5267_v24  ;;  %v5330_v2 = vshrl.u32 %v9211_v63, 16  ;;  %v5083_v24 = vld [vmem:[#allocation2 + $0x9c] sm:$0xf] }
 0x227   : > { %v9237_v59 = vrot.slane %v5326_v46, 5  ;;  %v5341_v52 = vshrl.u32 %v5080_v27, 16  ;;  %v9242_v56 = vrot.slane %v5288_v34, 5  ;;  %v5299_v45 = vor.u32 %v5298_v43, %v5295_v62  ;;  %v9262_v50 = vld [vmem:[#allocation2 + $0x98] sm:$0x1] }
 0x228   : > { %v5309_v20 = vor.u32 %v5308_v57, %v9218_v14  ;;  %v5344_v18 = vshll.u32 %v5080_v27, 16  ;;  %v5286_v15 = vrot.slane %v5285_v40, 4  ;;  %v5332_v32 = vrot.slane %v5330_v2, 4 }
 0x229   : > { %7397 = vmatmul.mubr.msk.bf16.gmra.mrb[16].mxu1 %vm1414_vm9, %v7859_v54  ;;  %v5336_v5 = vshll.u32 %v9226_v55, 16  ;;  %v5350_v54 = vshll.u32 %v9232_v31, 16  ;;  %v5314_v34 = vrot.slane %v5312_v3, 5  ;;  %v5323_v62 = vor.u32 %v5322_v47, %v5319_v22 }
 0x22a   : > { %7402 = vmatprep.mubr.msk.bf16.mxu1 %vm1414_vm9, %v9105_v48  ;;  %v5281_v48 = vsel %vm8374_vm15, %v9229_v44, %v9198_v4  ;;  %v5354_v42 = vshrl.u32 %v9232_v31, 16  ;;  %v5343_v28 = vrot.slane %v5341_v52, 4  ;;  %v5346_v43 = vrot.slane %v5344_v18, 5  ;;  %v5086_v18 = vld [vmem:[#allocation2 + $0xa8] sm:$0xf] }
 0x22b   : > { %7261 = vmatmul.mubr.msk.bf16.gmra.mrb[60].mxu0 %vm1414_vm9, %v6611_v26  ;;  %v5333_v26 = vor.u32 %v5332_v32, %v9237_v59  ;;  %v9260_v57 = vrot.slane %v5350_v54, 5  ;;  %v5300_v9 = vrot.slane %v5299_v45, 4  ;;  %v5310_v27 = vrot.slane %v5309_v20, 4  ;;  %v7860_v32 = vld [vmem:[#allocation2 + $0x18] sm:$0xff]  }
 0x22c   : > { %7266 = vmatprep.mubr.msk.bf16.mxu0 %vm1414_vm9, %v7858_v51  ;;  %v5356_v40 = vrot.slane %v5354_v42, 4  ;;  %v5365_v46 = vshrl.u32 %v5083_v24, 16  ;;  %v5338_v4 = vrot.slane %v5336_v5, 5  ;;  %v5368_v44 = vshll.u32 %v5083_v24, 16  ;;  %v9272_v5 = vld [vmem:[#allocation2 + $0xac] sm:$0xf] }
 0x22d   : > { %v5334_v2 = vrot.slane %v5333_v26, 4  ;;  %v5374_v3 = vshll.u32 %v9257_v21, 16  ;;  %v5324_v22 = vrot.slane %v5323_v62, 4  ;;  %v5378_v52 = vshrl.u32 %v9257_v21, 16  ;;  %9821 = vst [vmem:[#allocation4_spill] sm:$0xff] %v9272_v5  ;;  %v7861_v24 = vld [vmem:[#allocation2 + $0x24] sm:$0xff]  }
 0x22e   : > { %v5357_v47 = vor.u32 %v5356_v40, %v9260_v57  ;;  %v5367_v51 = vrot.slane %v5365_v46, 4  ;;  %v5347_v45 = vor.u32 %v5346_v43, %v5343_v28  ;;  %v5360_v20 = vshll.u32 %v9262_v50, 16  ;;  %v9285_v28 = vld [vmem:[#allocation2 + $0xa4] sm:$0x1] }
 0x22f   : > { %v5370_v54 = vrot.slane %v5368_v44, 5  ;;  %v9270_v42 = vrot.slane %v5374_v3, 5  ;;  %v5291_v62 = vsel %vm8374_vm15, %v5286_v15, %v9242_v56  ;;  %v5315_v26 = vsel %vm8374_vm15, %v5310_v27, %v5314_v34 }
 0x230   : > { %v5380_v43 = vrot.slane %v5378_v52, 4  ;;  %v5389_v46 = vshrl.u32 %v5086_v18, 16  ;;  %v5392_v56 = vshll.u32 %v5086_v18, 16  ;;  %v5398_v15 = vshll.u32 %v9272_v5, 16 }
 0x231   : > { %7403 = vmatmul.mubr.msk.bf16.vlgmr.msra.gmra.mrb[20].mxu1 %vm1414_vm9, %v9129_v8  ;;  %v5305_v8 = vsel %vm8374_vm15, %v5300_v9, %v9218_v14  ;;  %v5371_v40 = vor.u32 %v5370_v54, %v5367_v51  ;;  %v5329_v14 = vsel %vm8374_vm15, %v5324_v22, %v9237_v59  ;;  %v5402_v34 = vshrl.u32 %v9272_v5, 16  ;;  %v5089_v9 = vld [vmem:[#allocation2 + $0xb4] sm:$0xf]  ;;  %v9308_v22 = vld [vmem:[#allocation2 + $0xb0] sm:$0x1] }
 0x232   : > { %7435 = vmatpush3.bf16.msra.mxu1 %v9087_v11  ;;  %7406 = vmatprep.mubr.msk.bf16.mxu1 %vm1414_vm9, %v9150_v30  ;;  %v5339_v11 = vsel %vm8374_vm15, %v5334_v2, %v5338_v4  ;;  %v5358_v30 = vrot.slane %v5357_v47, 4  ;;  %v5348_v27 = vrot.slane %v5347_v45, 4  ;;  %v5362_v44 = vrot.slane %v5360_v20, 5  ;;  %v9298_v4 = vld [vmem:[#allocation2 + $0xb8] sm:$0xf]  ;;  %9823 = vst [vmem:[#allocation6_spill] sm:$0xff] %v9308_v22 }
 0x233   : > { %7267 = vmatmul.mubr.msk.bf16.vlgmr.msra.gmra.mrb[32].mxu0 %vm1414_vm9, %v7860_v32  ;;  %v5381_v3 = vor.u32 %v5380_v43, %v9270_v42  ;;  %v5384_v2 = vshll.u32 %v9285_v28, 16  ;;  %9822 = vst [vmem:[#allocation5_spill] sm:$0xff] %v9298_v4  ;;  %v9300_v47 = vcombine.low %v5281_v48, %v5291_v62  ;;  %v9302_v51 = vcombine.low %v5305_v8, %v5315_v26  ;;  %v5092_v62 = vld [vmem:[#allocation2 + $0xc0] sm:$0xf]  ;;  %v7862_v8 = vld [vmem:[#allocation2 + $0x30] sm:$0xff]  }
 0x234   : > { %7270 = vmatprep.mubr.msk.bf16.mxu0 %vm1414_vm9, %v7861_v24  ;;  %v9304_v52 = vcombine.low %v5329_v14, %v5339_v11  ;;  %v9306_v59 = vrot.slane %v5371_v40, 4  ;;  %v5363_v18 = vsel %vm8374_vm15, %v5358_v30, %v5362_v44  ;;  %v5391_v32 = vrot.slane %v5389_v46, 4  ;;  %v9325_v46 = vld [vmem:[#allocation2 + $0xc4] sm:$0xf]  ;;  %v7863_v14 = vld [vmem:[#allocation2 + $0x3c] sm:$0xff]  }
 0x235   : > { %v5413_v45 = vshrl.u32 %v5089_v9, 16  ;;  %v5416_v20 = vshll.u32 %v5089_v9, 16  ;;  %v5394_v54 = vrot.slane %v5392_v56, 5  ;;  %v9312_v24 = vrot.slane %v5398_v15, 5  ;;  %v9341_v44 = vld [vmem:[#allocation2 + $0xc8] sm:$0x1] }
 0x236   : > { %v5404_v43 = vrot.slane %v5402_v34, 4  ;;  %v5422_v48 = vshll.u32 %v9298_v4, 16  ;;  %v5353_v26 = vsel %vm8374_vm15, %v5348_v27, %v9260_v57  ;;  %v9320_v11 = vrot.slane %v5381_v3, 4  ;;  %v9335_v57 = vld [vmem:[#allocation2 + $0xbc] sm:$0x1]  ;;  %9825 = vst [vmem:[#allocation8_spill] sm:$0xff] %v9341_v44 }
 0x237   : > { %v9322_v30 = vrot.slane %v5384_v2, 5  ;;  %v5408_v40 = vshll.u32 %v9308_v22, 16  ;;  %v9329_v56 = vcombine.low %v5353_v26, %v5363_v18  ;;  %9824 = vst [vmem:[#allocation7_spill] sm:$0xff] %v9335_v57  ;;  %v5426_v34 = vshrl.u32 %v9298_v4, 16  ;;  %v5095_v26 = vld [vmem:[#allocation2 + $0xcc] sm:$0xf] }
 0x238   : > { %v9337_v15 = vrot.slane %v5422_v48, 5  ;;  %v5415_v9 = vrot.slane %v5413_v45, 4  ;;  %v5418_v27 = vrot.slane %v5416_v20, 5  ;;  %v5440_v3 = vshll.u32 %v5092_v62, 16  ;;  %v728_v48 = vld [vmem:[#allocation2 + $0xd4] sm:$0x1] }
 0x239   : > { %7407 = vmatmul.mubr.msk.bf16.gmra.mrb[24].mxu1 %vm1414_vm9, %v9184_v7  ;;  %v5377_v7 = vsel %vm8374_vm15, %v9306_v59, %v9270_v42  ;;  %v5395_v2 = vor.u32 %v5394_v54, %v5391_v32  ;;  %v5405_v18 = vor.u32 %v5404_v43, %v9312_v24  ;;  %v5428_v42 = vrot.slane %v5426_v34, 4  ;;  %v9353_v43 = vld [vmem:[#allocation2 + $0xd0] sm:$0xf] }
 0x23a   : > { %7410 = vmatprep.mubr.msk.bf16.mxu1 %vm1414_vm9, %v9192_v39  ;;  %v5437_v39 = vshrl.u32 %v5092_v62, 16  ;;  %v5446_v59 = vshll.u32 %v9325_v46, 16  ;;  %v5387_v45 = vsel %vm8374_vm15, %v9320_v11, %v9322_v30  ;;  %v5410_v20 = vrot.slane %v5408_v40, 5  ;;  %9826 = vst [vmem:[#allocation9_spill] sm:$0xff] %v9353_v43 }
 0x23b   : > { %7271 = vmatmul.mubr.msk.bf16.gmra.mrb[36].mxu0 %vm1414_vm9, %v7862_v8  ;;  %v5442_v0 = vrot.slane %v5440_v3, 5  ;;  %v5429_v62 = vor.u32 %v5428_v42, %v9337_v15  ;;  %v5450_v54 = vshrl.u32 %v9325_v46, 16  ;;  %v5419_v34 = vor.u32 %v5418_v27, %v5415_v9  ;;  %v7864_v3 = vld [vmem:[#allocation2 + $0x48] sm:$0xff]  }
 0x23c   : > { %7274 = vmatprep.mubr.msk.bf16.mxu0 %vm1414_vm9, %v7863_v14  ;;  %v5439_v8 = vrot.slane %v5437_v39, 4  ;;  %v5432_v14 = vshll.u32 %v9335_v57, 16  ;;  %v5448_v32 = vrot.slane %v5446_v59, 5  ;;  %v5456_v4 = vshll.u32 %v9341_v44, 16  ;;  %v5777_v44 = vld [vmem:[#allocation2 + $0x24] sm:$0xe] }
 0x23d   : > { %v729_v22 = vsel %vm7996_vm6, 0, %v728_v48  ;;  %v5461_v5 = vshrl.u32 %v5095_v26, 16  ;;  %v5406_v11 = vrot.slane %v5405_v18, 4  ;;  %v5452_v40 = vrot.slane %v5450_v54, 4 }
 0x23e   : > { %v5443_v30 = vor.u32 %v5442_v0, %v5439_v8  ;;  %730 = vst [vmem:[#allocation2 + $0xd4] sm:$0x1] %v729_v22  ;;  %v5464_v39 = vshll.u32 %v5095_v26, 16  ;;  %v5430_v42 = vrot.slane %v5429_v62, 4  ;;  %v5470_v57 = vshll.u32 %v9353_v43, 16 }
 0x23f   : > { %v5463_v59 = vrot.slane %v5461_v5, 4  ;;  %v5474_v9 = vshrl.u32 %v9353_v43, 16  ;;  %v5396_v23 = vrot.slane %v5395_v2, 4  ;;  %v5434_v27 = vrot.slane %v5432_v14, 5 }
 0x240   : > { %v5453_v18 = vor.u32 %v5452_v40, %v5448_v32  ;;  %v5466_v0 = vrot.slane %v5464_v39, 5  ;;  %v5420_v22 = vrot.slane %v5419_v34, 4  ;;  %v5458_v48 = vrot.slane %v5456_v4, 5 }
 0x241   : > { %7411 = vmatmul.mubr.msk.bf16.gmra.mrb[28].mxu1 %vm1414_vm9, %v9220_v60  ;;  %v9365_v26 = vrot.slane %v5470_v57, 5  ;;  %v5476_v60 = vrot.slane %v5474_v9, 4  ;;  %v5444_v8 = vrot.slane %v5443_v30, 4  ;;  %v5844_v54 = vrot.slane %v9003_v35, 5 }
 0x242   : > { %7414 = vmatprep.mubr.msk.bf16.mxu1 %vm1414_vm9, %v9235_v25  ;;  %v5454_v5 = vrot.slane %v5453_v18, 4  ;;  %v5467_v62 = vor.u32 %v5466_v0, %v5463_v59  ;;  %v9368_v43 = vcombine.low %v5377_v7, %v5387_v45  ;;  %v5411_v25 = vsel %vm8374_vm15, %v5406_v11, %v5410_v20  ;;  %v5780_v18 = vld [vmem:[#allocation2 + $0x48] sm:$0xe] }
 0x243   : > { %7275 = vmatmul.mubr.msk.bf16.gmra.mrb[40].mxu0 %vm1414_vm9, %v7864_v3  ;;  %v5435_v2 = vsel %vm8374_vm15, %v5430_v42, %v5434_v27  ;;  %v5851_v14 = vrot.slane %v9028_v1, 5  ;;  %v5401_v4 = vsel %vm8374_vm15, %v5396_v23, %v9312_v24  ;;  %v5477_v7 = vor.u32 %v5476_v60, %v9365_v26  ;;  %v5778_v3 = vld [vmem:[#allocation2 + $0x30] sm:$0xe]  ;;  %v5779_v42 = vld [vmem:[#allocation2 + $0x3c] sm:$0xe] }
 0x244   : > { %v5459_v57 = vsel %vm8374_vm15, %v5454_v5, %v5458_v48  ;;  %v9380_v34 = vrot.slane %v5467_v62, 4  ;;  %v5425_v45 = vsel %vm8374_vm15, %v5420_v22, %v9337_v15  ;;  %v6811_v20 = vrot.slane %v5777_v44, 9  ;;  %v5781_v62 = vld [vmem:[#allocation2 + $0x54] sm:$0xe] }
 0x245   : > { %v5853_v11 = vrot.slane %v5851_v14, 4  ;;  %v5854_v30 = vrot.slane %v9069_v13, 5  ;;  %v9387_v1 = vcombine.low %v5401_v4, %v5411_v25  ;;  %v9389_v40 = vcombine.low %v5425_v45, %v5435_v2  ;;  %v9401_v44 = vld [vmem:[#allocation2 + $0xd4] sm:$0x1] }
 0x246   : > { %v5449_v24 = vsel %vm8374_vm15, %v5444_v8, %v5448_v32  ;;  %v9395_v39 = vrot.slane %v5844_v54, 4  ;;  %v9405_v13 = vsel %vm8528_vm3, %v6811_v20, %v5851_v14  ;;  %v5858_v59 = vrot.slane %v9060_v41, 5  ;;  %v5782_v14 = vld [vmem:[#allocation2 + $0x60] sm:$0xe] }
 0x247   : > { %v9399_v15 = vcombine.low %v5449_v24, %v5459_v57  ;;  %v9409_v32 = vsel %vm8528_vm3, %v5853_v11, %v5854_v30  ;;  %v9418_v9 = vrot.slane %v5477_v7, 4  ;;  %v5865_v27 = vrot.slane %v9076_v19, 5  ;;  %v5783_v30 = vld [vmem:[#allocation2 + $0x6c] sm:$0xe] }
 0x248   : > { %v6827_v23 = vcombine.low %v9405_v13, %v9409_v32  ;;  %v6812_v0 = vrot.slane %v5778_v3, 9  ;;  %v5860_v22 = vrot.slane %v5858_v59, 4  ;;  %v5861_v41 = vrot.slane %v9083_v10, 5 }
 0x249   : > { %7415 = vmatmul.mubr.msk.bf16.gmra.mrb[0].mxu1 %vm1414_vm9, %v9300_v47  ;;  %v5473_v47 = vsel %vm8374_vm15, %v9380_v34, %v9365_v26  ;;  %v6813_v48 = vrot.slane %v5779_v42, 9  ;;  %v5867_v60 = vrot.slane %v5865_v27, 4  ;;  %v5868_v8 = vrot.slane %v9118_v16, 5 }
 0x24a   : > { %7418 = vmatprep.mubr.msk.bf16.mxu1 %vm1414_vm9, %v9302_v51  ;;  %v5480_v51 = vshll.u32 %v9401_v44, 16  ;;  %v5872_v5 = vrot.slane %v9093_v33, 5  ;;  %v9429_v25 = vsel %vm8528_vm3, %v6812_v0, %v5858_v59  ;;  %v9433_v19 = vsel %vm8528_vm3, %v5860_v22, %v5861_v41  ;;  %v5784_v0 = vld [vmem:[#allocation2 + $0x78] sm:$0xe] }
 0x24b   : > { %v9437_v10 = vsel %vm8528_vm3, %v6813_v48, %v5865_v27  ;;  %v6814_v2 = vrot.slane %v5780_v18, 9  ;;  %v6828_v16 = vcombine.low %v9429_v25, %v9433_v19  ;;  %v9443_v33 = vsel %vm8528_vm3, %v5867_v60, %v5868_v8 }
 0x24c   : > { %v5874_v4 = vrot.slane %v5872_v5, 4  ;;  %v5875_v57 = vrot.slane %v9124_v29, 5  ;;  %v6829_v7 = vcombine.low %v9437_v10, %v9443_v33  ;;  %v6815_v20 = vrot.slane %v5781_v62, 9 }
 0x24d   : > { %v9450_v45 = vsel %vm8528_vm3, %v6814_v2, %v5872_v5  ;;  %v5879_v11 = vrot.slane %v9109_v17, 5  ;;  %v5882_v3 = vrot.slane %v9147_v61, 5  ;;  %v6816_v42 = vrot.slane %v5782_v14, 9  ;;  %v5786_v2 = vld [vmem:[#allocation2 + $0x90] sm:$0xe] }
 0x24e   : > { %v9455_v24 = vsel %vm8528_vm3, %v5874_v4, %v5875_v57  ;;  %v5886_v29 = vrot.slane %v9141_v36, 5  ;;  %v5889_v18 = vrot.slane %v9152_v38, 5  ;;  %v5893_v17 = vrot.slane %v9170_v49, 5 }
 0x24f   : > { %v6830_v59 = vcombine.low %v9450_v45, %v9455_v24  ;;  %v5881_v27 = vrot.slane %v5879_v11, 4  ;;  %v9469_v61 = vsel %vm8528_vm3, %v6815_v20, %v5879_v11  ;;  %v6817_v22 = vrot.slane %v5783_v30, 9 }
 0x250   : > { %v9473_v36 = vsel %vm8528_vm3, %v6816_v42, %v5886_v29  ;;  %v5895_v38 = vrot.slane %v5893_v17, 4  ;;  %v5896_v49 = vrot.slane %v9189_v58, 5  ;;  %v5900_v48 = vrot.slane %v9181_v37, 5 }
 0x251   : > { %7419 = vmatmul.mubr.msk.bf16.gmra.mrb[4].mxu1 %vm1414_vm9, %v9304_v52  ;;  %v5888_v52 = vrot.slane %v5886_v29, 4  ;;  %v9477_v41 = vsel %vm8528_vm3, %v5881_v27, %v5882_v3  ;;  %v9489_v5 = vsel %vm8528_vm3, %v6817_v22, %v5893_v17  ;;  %v6818_v62 = vrot.slane %v5784_v0, 9  ;;  %v5787_v3 = vld [vmem:[#allocation2 + $0x9c] sm:$0xe]  ;;  %v5788_v22 = vld [vmem:[#allocation2 + $0xa8] sm:$0xe] }
 0x252   : > { %7422 = vmatprep.mubr.msk.bf16.mxu1 %vm1414_vm9, %v9329_v56  ;;  %v5785_v56 = vld [vmem:[#allocation2 + $0x84] sm:$0xe]  ;;  %v6831_v60 = vcombine.low %v9469_v61, %v9477_v41  ;;  %v9495_v37 = vsel %vm8528_vm3, %v5895_v38, %v5896_v49  ;;  %v5902_v58 = vrot.slane %v5900_v48, 4  ;;  %v5903_v4 = vrot.slane %v9216_v53, 5 }
 0x253   : > { %v9485_v8 = vsel %vm8528_vm3, %v5888_v52, %v5889_v18  ;;  %v6833_v57 = vcombine.low %v9489_v5, %v9495_v37  ;;  %v9502_v20 = vsel %vm8528_vm3, %v6818_v62, %v5900_v48  ;;  %v6819_v11 = vrot.slane %v5785_v56, 9  ;;  %v5789_v56 = vld [vmem:[#allocation2 + $0xb4] sm:$0xe] }
 0x254   : > { %v6832_v14 = vcombine.low %v9473_v36, %v9485_v8  ;;  %v5907_v30 = vrot.slane %v9211_v63, 5  ;;  %v9507_v42 = vsel %vm8528_vm3, %v5902_v58, %v5903_v4  ;;  %v5910_v29 = vrot.slane %v9226_v55, 5 }
 0x255   : > { %v6820_v27 = vrot.slane %v5786_v2, 9  ;;  %v5914_v53 = vrot.slane %v9232_v31, 5  ;;  %v6834_v18 = vcombine.low %v9502_v20, %v9507_v42  ;;  %v5917_v0 = vrot.slane %v9262_v50, 5 }
 0x256   : > { %v5909_v17 = vrot.slane %v5907_v30, 4  ;;  %v5921_v52 = vrot.slane %v9257_v21, 5  ;;  %v9519_v63 = vsel %vm8528_vm3, %v6819_v11, %v5907_v30  ;;  %v6821_v38 = vrot.slane %v5787_v3, 9  ;;  %v5791_v11 = vld [vmem:[#allocation2 + $0xcc] sm:$0xe] }
 0x257   : > { %v9523_v55 = vsel %vm8528_vm3, %v6820_v27, %v5914_v53  ;;  %v5916_v31 = vrot.slane %v5914_v53, 4  ;;  %v5924_v49 = vrot.slane %v9285_v28, 5  ;;  %v6822_v4 = vrot.slane %v5788_v22, 9  ;;  %v9828_v28 = vld [vmem:[#allocation6_spill] sm:$0xff] }
 0x258   : > { %v5911_v21 = vsel %vm8528_vm3, %v5909_v17, %v5910_v29  ;;  %v5923_v50 = vrot.slane %v5921_v52, 4  ;;  %v5922_v58 = vsel %vm8528_vm3, %v6821_v38, %v5921_v52  ;;  %v5931_v29 = vrot.slane %v9828_v28, 5 }
 0x259   : > { %7423 = vmatmul.mubr.msk.bf16.gmra.mrb[8].mxu1 %vm1414_vm9, %v9368_v43  ;;  %v9827_v43 = vld [vmem:[#allocation4_spill] sm:$0xff]  ;;  %v6835_v62 = vcombine.low %v9519_v63, %v5911_v21  ;;  %v5918_v2 = vsel %vm8528_vm3, %v5916_v31, %v5917_v0  ;;  %v5482_v27 = vrot.slane %v5480_v51, 5  ;;  %v6823_v17 = vrot.slane %v5789_v56, 9  ;;  %v9829_v63 = vld [vmem:[#allocation5_spill] sm:$0xff] }
 0x25a   : > { %7426 = vmatprep.mubr.msk.bf16.mxu1 %vm1414_vm9, %v9387_v1  ;;  %v5928_v48 = vrot.slane %v9827_v43, 5  ;;  %v6836_v1 = vcombine.low %v9523_v55, %v5918_v2  ;;  %v5925_v30 = vsel %vm8528_vm3, %v5923_v50, %v5924_v49  ;;  %v5935_v0 = vrot.slane %v9829_v63, 5  ;;  %v5790_v31 = vld [vmem:[#allocation2 + $0xc0] sm:$0xe]  ;;  %v9830_v49 = vld [vmem:[#allocation7_spill] sm:$0xff]  ;;  %v9831_v2 = vld [vmem:[#allocation9_spill] sm:$0xff] }
 0x25b   : > { %v6837_v53 = vcombine.low %v5922_v58, %v5925_v30  ;;  %v5942_v55 = vrot.slane %v9325_v46, 5  ;;  %v6825_v38 = vrot.slane %v5791_v11, 9  ;;  %v5938_v43 = vrot.slane %v9830_v49, 5  ;;  %v9832_v30 = vld [vmem:[#allocation8_spill] sm:$0xff] }
 0x25c   : > { %v5930_v3 = vrot.slane %v5928_v48, 4  ;;  %v5929_v52 = vsel %vm8528_vm3, %v6822_v4, %v5928_v48  ;;  %v5937_v50 = vrot.slane %v5935_v0, 4  ;;  %v5949_v51 = vrot.slane %v9831_v2, 5 }
 0x25d   : > { %v6824_v58 = vrot.slane %v5790_v31, 9  ;;  %v5944_v56 = vrot.slane %v5942_v55, 4  ;;  %v5945_v28 = vrot.slane %v9832_v30, 5  ;;  %v5952_v63 = vrot.slane %v9401_v44, 5 }
 0x25e   : > { %v5932_v22 = vsel %vm8528_vm3, %v5930_v3, %v5931_v29  ;;  %v5936_v48 = vsel %vm8528_vm3, %v6823_v17, %v5935_v0  ;;  %v5939_v46 = vsel %vm8528_vm3, %v5937_v50, %v5938_v43  ;;  %v5950_v4 = vsel %vm8528_vm3, %v6825_v38, %v5949_v51  ;;  %v5776_v3 = vld [vmem:[#allocation2 + $0x18] sm:$0xe] }
 0x25f   : > { %v6838_v21 = vcombine.low %v5929_v52, %v5932_v22  ;;  %v5951_v11 = vrot.slane %v5949_v51, 4  ;;  %v5483_v44 = vsel %vm8374_vm15, %v9418_v9, %v5482_v27  ;;  %v6839_v29 = vcombine.low %v5936_v48, %v5939_v46  ;;  %v9833_v0 = vld [vmem:[#allocation3_spill] sm:$0xff] }
 0x260   : > { %v5946_v17 = vsel %vm8528_vm3, %v5944_v56, %v5945_v28  ;;  %v5847_v31 = vrot.slane %v9833_v0, 5  ;;  %v6810_v9 = vrot.slane %v5776_v3, 9 }
 0x261   : > { %7427 = vmatmul.mubr.msk.bf16.gmra.mrb[12].mxu1 %vm1414_vm9, %v9389_v40  ;;  %v5943_v40 = vsel %vm8528_vm3, %v6824_v58, %v5942_v55  ;;  %v5953_v22 = vsel %vm8528_vm3, %v5951_v11, %v5952_v63 }
 0x262   : > { %7430 = vmatprep.mubr.msk.bf16.mxu1 %vm1414_vm9, %v9399_v15  ;;  %v6840_v52 = vcombine.low %v5943_v40, %v5946_v17  ;;  %v6841_v38 = vcombine.low %v5950_v4, %v5953_v22  ;;  %v6792_v15 = vcombine.low %v5473_v47, %v5483_v44  ;;  %v5848_v27 = vsel %vm8528_vm3, %v9395_v39, %v5847_v31 }
 0x263   : > { %v5845_v55 = vsel %vm8528_vm3, %v6810_v9, %v5844_v54 }
 0x264   : > { %v6826_v50 = vcombine.low %v5845_v55, %v5848_v27 }
 0x269   : > { %7431 = vmatmul.mubr.msk.bf16.gmra.mrb[16].mxu1 %vm1414_vm9, %v6792_v15 }
 0x26a   : > { %7436 = vmatprep.mubr.msk.bf16.mxu1 %vm1414_vm9, %v6826_v50 }
 0x271   : > { %7437 = vmatmul.mubr.msk.bf16.vlgmr.msra.gmra.mrb[20].mxu1 %vm1414_vm9, %v6827_v23 }
 0x272   : > { %7440 = vmatprep.mubr.msk.bf16.mxu1 %vm1414_vm9, %v6828_v16 }
 0x279   : > { %7441 = vmatmul.mubr.msk.bf16.gmra.mrb[24].mxu1 %vm1414_vm9, %v6829_v7 }
 0x27a   : > { %7444 = vmatprep.mubr.msk.bf16.mxu1 %vm1414_vm9, %v6830_v59 }
 0x281   : > { %7445 = vmatmul.mubr.msk.bf16.gmra.mrb[28].mxu1 %vm1414_vm9, %v6831_v60 }
 0x282   : > { %7448 = vmatprep.mubr.msk.bf16.mxu1 %vm1414_vm9, %v6832_v14 }
 0x289   : > { %7449 = vmatmul.mubr.msk.bf16.gmra.mrb[0].mxu1 %vm1414_vm9, %v6833_v57 }
 0x28a   : > { %7452 = vmatprep.mubr.msk.bf16.mxu1 %vm1414_vm9, %v6834_v18 }
 0x291   : > { %7453 = vmatmul.mubr.msk.bf16.gmra.mrb[4].mxu1 %vm1414_vm9, %v6835_v62 }
 0x292   : > { %7456 = vmatprep.mubr.msk.bf16.mxu1 %vm1414_vm9, %v6836_v1  ;;  %v9668_v1 = vld [vmem:[%s9799_s4 + $0x1] ss:$0 sm:$0xff] }
 0x299   : > { %7457 = vmatmul.mubr.msk.bf16.gmra.mrb[8].mxu1 %vm1414_vm9, %v6837_v53 }
 0x29a   : > { %7460 = vmatprep.mubr.msk.bf16.mxu1 %vm1414_vm9, %v6838_v21 }
 0x2a1   : > { %7461 = vmatmul.mubr.msk.bf16.gmra.mrb[12].mxu1 %vm1414_vm9, %v6839_v29 }
 0x2a2   : > { %7464 = vmatprep.mubr.msk.bf16.mxu1 %vm1414_vm9, %v6840_v52 }
 0x2a9   : > { %7465 = vmatmul.mubr.msk.bf16.gmra.mrb[16].mxu1 %vm1414_vm9, %v6841_v38 }
 0x2de   : > { %v9625_v12 = vpop.f32.mrb[44].mxu0 }
 0x2df   : > { %v9627_v6 = vpop.f32.mrb[45].mxu0 }
 0x2e0   : > { %v9629_v35 = vpop.f32.mrb[46].mxu0 }
 0x2e1   : > { %v9631_v26 = vpop.f32.mrb[47].mxu0 }
 0x2e6   : > { %v9633_v54 = vpop.f32.mrb[48].mxu0 }
 0x2e7   : > { %v9635_v34 = vpop.f32.mrb[49].mxu0 }
 0x2e8   : > { %v9637_v39 = vpop.f32.mrb[50].mxu0 }
 0x2e9   : > { %v9639_v13 = vpop.f32.mrb[51].mxu0 }
 0x2ee   : > { %v9641_v32 = vpop.f32.mrb[52].mxu0 }
 0x2ef   : > { %v9643_v47 = vpop.f32.mrb[53].mxu0 }
 0x2f0   : > { %v9645_v23 = vpop.f32.mrb[54].mxu0 }
 0x2f1   : > { %v9647_v25 = vpop.f32.mrb[55].mxu0 }
 0x2f6   : > { %v9649_v19 = vpop.f32.mrb[56].mxu0 }
 0x2f7   : > { %v9651_v10 = vpop.f32.mrb[57].mxu0 }
 0x2f8   : > { %v9653_v16 = vpop.f32.mrb[58].mxu0 }
 0x2f9   : > { %v9655_v33 = vpop.f32.mrb[59].mxu0 }
 0x2fe   : > { %v9657_v7 = vpop.f32.mrb[60].mxu0 }
 0x2ff   : > { %v9659_v45 = vpop.f32.mrb[61].mxu0 }
 0x300   : > { %v9661_v24 = vpop.f32.mrb[62].mxu0 }
 0x301   : > { %v9663_v59 = vpop.f32.mrb[63].mxu0 }
 0x306   : > { %v7268_v61 = vpop.f32.mrb[32].mxu0 }
 0x307   : > { %v3336_v36 = vpop.f32.mrb[33].mxu0 }
 0x308   : > { %v7269_v41 = vpop.f32.mrb[34].mxu0 }
 0x309   : > { %v3339_v60 = vpop.f32.mrb[35].mxu0 }
 0x30e   : > { %v7272_v8 = vpop.f32.mrb[36].mxu0 }
 0x30f   : > { %v3352_v5 = vpop.f32.mrb[37].mxu0 }
 0x310   : > { %v7273_v14 = vpop.f32.mrb[38].mxu0 }
 0x311   : > { %v3355_v37 = vpop.f32.mrb[39].mxu0 }
 0x316   : > { %v7276_v57 = vpop.f32.mrb[40].mxu0 }
 0x317   : > { %v3368_v20 = vpop.f32.mrb[41].mxu0 }
 0x318   : > { %v7277_v42 = vpop.f32.mrb[42].mxu0 }
 0x319   : > { %v3371_v18 = vpop.f32.mrb[43].mxu0 }
 0x344   : > { %v7438_v62 = vpop.f32.mrb[20].mxu1 }
 0x345   : > { %v7470_v53 = vadd.f32 %v7438_v62, %v7268_v61  ;;  %v6087_v21 = vpop.f32.mrb[21].mxu1 }
 0x346   : > { %v7471_v49 = vadd.f32 %v6087_v21, %v3336_v36  ;;  %v7439_v43 = vpop.f32.mrb[22].mxu1 }
 0x347   : > { %v6253_v2 = vadd.f32 %v7470_v53, %v9668_v1  ;;  %v7472_v51 = vadd.f32 %v7439_v43, %v7269_v41  ;;  %v6090_v58 = vpop.f32.mrb[23].mxu1 }
 0x348   : > { %v6251_v56 = vadd.f32 %v7471_v49, %v9668_v1  ;;  %v7473_v30 = vadd.f32 %v6090_v58, %v3339_v60 }
 0x349   : > { %v6285_v28 = vmax.f32 %v6253_v2, 0.0  ;;  %v6254_v63 = vadd.f32 %v7472_v51, %v9668_v1 }
 0x34a   : > { %v6283_v48 = vmax.f32 %v6251_v56, 0.0  ;;  %v6252_v46 = vadd.f32 %v7473_v30, %v9668_v1 }
 0x34b   : > { %6317 = vst.msk [vmem:[%s9675_s21 + $0x10] sm:$0xff] %vm1414_vm9, %v6285_v28  ;;  %v6286_v4 = vmax.f32 %v6254_v63, 0.0 }
 0x34c   : > { %6315 = vst.msk [vmem:[%s9675_s21] sm:$0xff] %vm1414_vm9, %v6283_v48  ;;  %v6284_v11 = vmax.f32 %v6252_v46, 0.0  ;;  %v7442_v44 = vpop.f32.mrb[24].mxu1 }
 0x34d   : > { %6318 = vst.msk [vmem:[%s9675_s21 + $0x18] sm:$0xff] %vm1414_vm9, %v6286_v4  ;;  %v7474_v3 = vadd.f32 %v7442_v44, %v7272_v8  ;;  %v6103_v29 = vpop.f32.mrb[25].mxu1 }
 0x34e   : > { %6316 = vst.msk [vmem:[%s9675_s21 + $0x8] sm:$0xff] %vm1414_vm9, %v6284_v11  ;;  %v7475_v40 = vadd.f32 %v6103_v29, %v3352_v5  ;;  %v7443_v17 = vpop.f32.mrb[26].mxu1 }
 0x34f   : > { %v6257_v0 = vadd.f32 %v7474_v3, %v9668_v1  ;;  %v7476_v31 = vadd.f32 %v7443_v17, %v7273_v14  ;;  %v6106_v52 = vpop.f32.mrb[27].mxu1 }
 0x350   : > { %v6255_v22 = vadd.f32 %v7475_v40, %v9668_v1  ;;  %v7477_v38 = vadd.f32 %v6106_v52, %v3355_v37 }
 0x351   : > { %v6289_v15 = vmax.f32 %v6257_v0, 0.0  ;;  %v6258_v9 = vadd.f32 %v7476_v31, %v9668_v1 }
 0x352   : > { %v6287_v27 = vmax.f32 %v6255_v22, 0.0  ;;  %v6256_v55 = vadd.f32 %v7477_v38, %v9668_v1 }
 0x353   : > { %6321 = vst.msk [vmem:[%s9675_s21 + $0x30] sm:$0xff] %vm1414_vm9, %v6289_v15  ;;  %v6290_v50 = vmax.f32 %v6258_v9, 0.0 }
 0x354   : > { %6319 = vst.msk [vmem:[%s9675_s21 + $0x20] sm:$0xff] %vm1414_vm9, %v6287_v27  ;;  %v6288_v61 = vmax.f32 %v6256_v55, 0.0  ;;  %v7446_v36 = vpop.f32.mrb[28].mxu1 }
 0x355   : > { %6322 = vst.msk [vmem:[%s9675_s21 + $0x38] sm:$0xff] %vm1414_vm9, %v6290_v50  ;;  %v7478_v41 = vadd.f32 %v7446_v36, %v7276_v57  ;;  %v6119_v60 = vpop.f32.mrb[29].mxu1 }
 0x356   : > { %6320 = vst.msk [vmem:[%s9675_s21 + $0x28] sm:$0xff] %vm1414_vm9, %v6288_v61  ;;  %v7479_v8 = vadd.f32 %v6119_v60, %v3368_v20  ;;  %v7447_v5 = vpop.f32.mrb[30].mxu1 }
 0x357   : > { %v6261_v14 = vadd.f32 %v7478_v41, %v9668_v1  ;;  %v7480_v37 = vadd.f32 %v7447_v5, %v7277_v42  ;;  %v6122_v62 = vpop.f32.mrb[31].mxu1 }
 0x358   : > { %v6259_v53 = vadd.f32 %v7479_v8, %v9668_v1  ;;  %v7481_v21 = vadd.f32 %v6122_v62, %v3371_v18 }
 0x359   : > { %v6293_v49 = vmax.f32 %v6261_v14, 0.0  ;;  %v6262_v43 = vadd.f32 %v7480_v37, %v9668_v1 }
 0x35a   : > { %v6291_v2 = vmax.f32 %v6259_v53, 0.0  ;;  %v6260_v57 = vadd.f32 %v7481_v21, %v9668_v1 }
 0x35b   : > { %6325 = vst.msk [vmem:[%s9675_s21 + $0x50] sm:$0xff] %vm1414_vm9, %v6293_v49  ;;  %v6294_v51 = vmax.f32 %v6262_v43, 0.0 }
 0x35c   : > { %6323 = vst.msk [vmem:[%s9675_s21 + $0x40] sm:$0xff] %vm1414_vm9, %v6291_v2  ;;  %v6292_v20 = vmax.f32 %v6260_v57, 0.0  ;;  %v7450_v58 = vpop.f32.mrb[0].mxu1 }
 0x35d   : > { %6326 = vst.msk [vmem:[%s9675_s21 + $0x58] sm:$0xff] %vm1414_vm9, %v6294_v51  ;;  %v7482_v42 = vadd.f32 %v7450_v58, %v9625_v12  ;;  %v6135_v18 = vpop.f32.mrb[1].mxu1 }
 0x35e   : > { %6324 = vst.msk [vmem:[%s9675_s21 + $0x48] sm:$0xff] %vm1414_vm9, %v6292_v20  ;;  %v7483_v56 = vadd.f32 %v6135_v18, %v9627_v6  ;;  %v7451_v30 = vpop.f32.mrb[2].mxu1 }
 0x35f   : > { %v6265_v28 = vadd.f32 %v7482_v42, %v9668_v1  ;;  %v7484_v63 = vadd.f32 %v7451_v30, %v9629_v35  ;;  %v6138_v48 = vpop.f32.mrb[3].mxu1 }
 0x360   : > { %v6263_v46 = vadd.f32 %v7483_v56, %v9668_v1  ;;  %v7485_v4 = vadd.f32 %v6138_v48, %v9631_v26 }
 0x361   : > { %v6297_v11 = vmax.f32 %v6265_v28, 0.0  ;;  %v6266_v12 = vadd.f32 %v7484_v63, %v9668_v1 }
 0x362   : > { %v6295_v44 = vmax.f32 %v6263_v46, 0.0  ;;  %v6264_v3 = vadd.f32 %v7485_v4, %v9668_v1 }
 0x363   : > { %6329 = vst.msk [vmem:[%s9675_s21 + $0x70] sm:$0xff] %vm1414_vm9, %v6297_v11  ;;  %v6298_v6 = vmax.f32 %v6266_v12, 0.0 }
 0x364   : > { %6327 = vst.msk [vmem:[%s9675_s21 + $0x60] sm:$0xff] %vm1414_vm9, %v6295_v44  ;;  %v6296_v29 = vmax.f32 %v6264_v3, 0.0  ;;  %v7454_v40 = vpop.f32.mrb[4].mxu1 }
 0x365   : > { %6330 = vst.msk [vmem:[%s9675_s21 + $0x78] sm:$0xff] %vm1414_vm9, %v6298_v6  ;;  %v7486_v35 = vadd.f32 %v7454_v40, %v9633_v54  ;;  %v6151_v26 = vpop.f32.mrb[5].mxu1 }
 0x366   : > { %6328 = vst.msk [vmem:[%s9675_s21 + $0x68] sm:$0xff] %vm1414_vm9, %v6296_v29  ;;  %v7487_v17 = vadd.f32 %v6151_v26, %v9635_v34  ;;  %v7455_v0 = vpop.f32.mrb[6].mxu1 }
 0x367   : > { %v6269_v31 = vadd.f32 %v7486_v35, %v9668_v1  ;;  %v7488_v52 = vadd.f32 %v7455_v0, %v9637_v39  ;;  %v6154_v22 = vpop.f32.mrb[7].mxu1 }
 0x368   : > { %v6267_v38 = vadd.f32 %v7487_v17, %v9668_v1  ;;  %v7489_v15 = vadd.f32 %v6154_v22, %v9639_v13 }
 0x369   : > { %v6301_v9 = vmax.f32 %v6269_v31, 0.0  ;;  %v6270_v54 = vadd.f32 %v7488_v52, %v9668_v1 }
 0x36a   : > { %v6299_v27 = vmax.f32 %v6267_v38, 0.0  ;;  %v6268_v55 = vadd.f32 %v7489_v15, %v9668_v1 }
 0x36b   : > { %6333 = vst.msk [vmem:[%s9675_s21 + $0x90] sm:$0xff] %vm1414_vm9, %v6301_v9  ;;  %v6302_v34 = vmax.f32 %v6270_v54, 0.0 }
 0x36c   : > { %6331 = vst.msk [vmem:[%s9675_s21 + $0x80] sm:$0xff] %vm1414_vm9, %v6299_v27  ;;  %v6300_v50 = vmax.f32 %v6268_v55, 0.0  ;;  %v7458_v61 = vpop.f32.mrb[8].mxu1 }
 0x36d   : > { %6334 = vst.msk [vmem:[%s9675_s21 + $0x98] sm:$0xff] %vm1414_vm9, %v6302_v34  ;;  %v7490_v39 = vadd.f32 %v7458_v61, %v9641_v32  ;;  %v6167_v13 = vpop.f32.mrb[9].mxu1 }
 0x36e   : > { %6332 = vst.msk [vmem:[%s9675_s21 + $0x88] sm:$0xff] %vm1414_vm9, %v6300_v50  ;;  %v7491_v36 = vadd.f32 %v6167_v13, %v9643_v47  ;;  %v7459_v41 = vpop.f32.mrb[10].mxu1 }
 0x36f   : > { %v6273_v60 = vadd.f32 %v7490_v39, %v9668_v1  ;;  %v7492_v8 = vadd.f32 %v7459_v41, %v9645_v23  ;;  %v6170_v5 = vpop.f32.mrb[11].mxu1 }
 0x370   : > { %v6271_v14 = vadd.f32 %v7491_v36, %v9668_v1  ;;  %v7493_v37 = vadd.f32 %v6170_v5, %v9647_v25 }
 0x371   : > { %v6305_v62 = vmax.f32 %v6273_v60, 0.0  ;;  %v6274_v32 = vadd.f32 %v7492_v8, %v9668_v1 }
 0x372   : > { %v6303_v53 = vmax.f32 %v6271_v14, 0.0  ;;  %v6272_v21 = vadd.f32 %v7493_v37, %v9668_v1 }
 0x373   : > { %6337 = vst.msk [vmem:[%s9675_s21 + $0xb0] sm:$0xff] %vm1414_vm9, %v6305_v62  ;;  %v6306_v47 = vmax.f32 %v6274_v32, 0.0 }
 0x374   : > { %6335 = vst.msk [vmem:[%s9675_s21 + $0xa0] sm:$0xff] %vm1414_vm9, %v6303_v53  ;;  %v6304_v49 = vmax.f32 %v6272_v21, 0.0  ;;  %v7462_v43 = vpop.f32.mrb[12].mxu1 }
 0x375   : > { %6338 = vst.msk [vmem:[%s9675_s21 + $0xb8] sm:$0xff] %vm1414_vm9, %v6306_v47  ;;  %v7494_v23 = vadd.f32 %v7462_v43, %v9649_v19  ;;  %v6183_v25 = vpop.f32.mrb[13].mxu1 }
 0x376   : > { %6336 = vst.msk [vmem:[%s9675_s21 + $0xa8] sm:$0xff] %vm1414_vm9, %v6304_v49  ;;  %v7495_v2 = vadd.f32 %v6183_v25, %v9651_v10  ;;  %v7463_v57 = vpop.f32.mrb[14].mxu1 }
 0x377   : > { %v6277_v51 = vadd.f32 %v7494_v23, %v9668_v1  ;;  %v7496_v20 = vadd.f32 %v7463_v57, %v9653_v16  ;;  %v6186_v58 = vpop.f32.mrb[15].mxu1 }
 0x378   : > { %v6275_v42 = vadd.f32 %v7495_v2, %v9668_v1  ;;  %v7497_v18 = vadd.f32 %v6186_v58, %v9655_v33 }
 0x379   : > { %v6309_v56 = vmax.f32 %v6277_v51, 0.0  ;;  %v6278_v19 = vadd.f32 %v7496_v20, %v9668_v1 }
 0x37a   : > { %v6307_v30 = vmax.f32 %v6275_v42, 0.0  ;;  %v6276_v28 = vadd.f32 %v7497_v18, %v9668_v1 }
 0x37b   : > { %6341 = vst.msk [vmem:[%s9675_s21 + $0xd0] sm:$0xff] %vm1414_vm9, %v6309_v56  ;;  %v6310_v10 = vmax.f32 %v6278_v19, 0.0 }
 0x37c   : > { %6339 = vst.msk [vmem:[%s9675_s21 + $0xc0] sm:$0xff] %vm1414_vm9, %v6307_v30  ;;  %v6308_v63 = vmax.f32 %v6276_v28, 0.0  ;;  %v7466_v48 = vpop.f32.mrb[16].mxu1 }
 0x37d   : > { %6342 = vst.msk [vmem:[%s9675_s21 + $0xd8] sm:$0xff] %vm1414_vm9, %v6310_v10  ;;  %v7498_v16 = vadd.f32 %v7466_v48, %v9657_v7  ;;  %v6199_v33 = vpop.f32.mrb[17].mxu1 }
 0x37e   : > { %6340 = vst.msk [vmem:[%s9675_s21 + $0xc8] sm:$0xff] %vm1414_vm9, %v6308_v63  ;;  %v7499_v46 = vadd.f32 %v6199_v33, %v9659_v45  ;;  %v7467_v4 = vpop.f32.mrb[18].mxu1 }
 0x37f   : > { %v6281_v11 = vadd.f32 %v7498_v16, %v9668_v1  ;;  %v7500_v12 = vadd.f32 %v7467_v4, %v9661_v24  ;;  %v6202_v44 = vpop.f32.mrb[19].mxu1 }
 0x380   : > { %v6279_v3 = vadd.f32 %v7499_v46, %v9668_v1  ;;  %v7501_v6 = vadd.f32 %v6202_v44, %v9663_v59 }
 0x381   : > { %v6313_v29 = vmax.f32 %v6281_v11, 0.0  ;;  %v6282_v7 = vadd.f32 %v7500_v12, %v9668_v1 }
 0x382   : > { %v6311_v40 = vmax.f32 %v6279_v3, 0.0  ;;  %v6280_v35 = vadd.f32 %v7501_v6, %v9668_v1 }
 0x383   : > { %6345 = vst.msk [vmem:[%s9675_s21 + $0xf0] sm:$0xff] %vm1414_vm9, %v6313_v29  ;;  %v6314_v45 = vmax.f32 %v6282_v7, 0.0 }
 0x384   : > { %6343 = vst.msk [vmem:[%s9675_s21 + $0xe0] sm:$0xff] %vm1414_vm9, %v6311_v40  ;;  %v6312_v26 = vmax.f32 %v6280_v35, 0.0 }
 0x385   : > { %6346 = vst.msk [vmem:[%s9675_s21 + $0xf8] sm:$0xff] %vm1414_vm9, %v6314_v45 }
 0x386   : > { %6344 = vst.msk [vmem:[%s9675_s21 + $0xe8] sm:$0xff] %vm1414_vm9, %v6312_v26 }
 0x387 PF: > { %s15_s18 = sadd.s32 1, %s7894_s18  }
 0x388   : > { %p12_p4 = scmp.ge.s32.totalorder %s15_s18, 4  }
 0x38a   :  { %14 = sbr.rel (!%p12_p4) target bundleno = 1 (0x1), region = 81 }

</bundles_post_ra>
